<compile_context>
chip_gen: v5e
topology: v5e:2x2
jax: 0.10.0
libtpu: 0.0.40
codegen_flags: <defaults>
</compile_context>

<pallas_src>
import jax
import jax.numpy as jnp
import numpy as np
from jax.experimental import pallas as pl
from jax.experimental.pallas import tpu as pltpu

# ----- small test configuration (consistent with the module structure) -------
BATCH = 2
INPUT_SIZE = 1
OUTPUT_SIZE = 1
CTRL = 32                 # controller_size
MEM_N = 16                # memory_size
MEM_V = 16                # memory_vector_size (== MEM_N, see TODO above)
SEQ_LEN = 8               # timesteps fused into one kernel launch

XPAD = 16                 # x padded so XPAD + MEM_V + CTRL == 64 (one fused K=64 gate matmul)
OUT_PAD = 32              # output features padded so the packed row is exactly 128 lanes
GATES = 4 * CTRL          # 128 (one full vreg of lanes)
GIN = XPAD + MEM_V + CTRL # 64

# packed per-step output slab layout (lane offsets inside 128 lanes)
PK_LANES = 128
PK_H = 0
PK_C = CTRL
PK_RW = 2 * CTRL
PK_WW = 2 * CTRL + MEM_N
PK_OUT = 2 * CTRL + 2 * MEM_N          # 96; 96 + OUT_PAD = 128


# ----------------------------- Pallas kernel ---------------------------------
def ntm_seq_kernel(
    # inputs (whole arrays, resident in VMEM)
    xs_ref,       # (T, B, XPAD)
    state0_ref,   # (B, 128)            packed h0|c0|rw0
    mem0_ref,     # (B, N, V)
    wg_ref,       # (GIN, 4C) = (64, 128)   fused gate weight slab
    bg_ref,       # (1, 4C)             fused gate bias
    wpost_ref,    # (C, 2N+OUT_PAD) = (32, 64)   [W_rh.T | W_wh.T | W_out_h.T]
    woutr_ref,    # (V, OUT_PAD)        W_out_read.T
    bpost_ref,    # (1, 2N+OUT_PAD)     [b_rh | b_wh | b_out]
    # outputs
    packed_ref,   # (T, B, 128)         per-step packed h|c|rw|ww|out
    memout_ref,   # (B, N, V)           final memory
):
  T = xs_ref.shape[0]
  B = state0_ref.shape[0]

  # weights: loaded once, live across the whole unrolled loop
  wg = wg_ref[...]
  bg = bg_ref[...]
  wpost = wpost_ref[...]
  woutr = woutr_ref[...]
  bpost = bpost_ref[...]

  st = state0_ref[...]
  h = st[:, PK_H:PK_H + CTRL]            # (B, C)
  c = st[:, PK_C:PK_C + CTRL]            # (B, C)
  rw = st[:, PK_RW:PK_RW + MEM_N]        # (B, N)
  mem = mem0_ref[...]                    # (B, N, V)

  for t in range(T):                     # static trip count -> fully unrolled
    x = xs_ref[t]                        # (B, XPAD), lanes >= INPUT_SIZE zero

    # --- read_memory(prev read weights): batched matmul on the MXU ---
    read_prev = jnp.einsum(
        "bqn,bnv->bqv", rw[:, None, :], mem,
        preferred_element_type=jnp.float32)[:, 0, :]          # (B, V)

    # --- LSTMCell: single fused (B,64)@(64,128) gates matmul ---
    xin = jnp.concatenate([x, read_prev, h], axis=1)           # (B, GIN)
    gates = jnp.dot(xin, wg, preferred_element_type=jnp.float32) + bg

    # full-vreg activations, then 32-lane slices (torch gate order i, f, g, o)
    sg = jax.nn.sigmoid(gates)
    th = jnp.tanh(gates)
    i_g = sg[:, 0:CTRL]
    f_g = sg[:, CTRL:2 * CTRL]
    g_g = th[:, 2 * CTRL:3 * CTRL]
    o_g = sg[:, 3 * CTRL:4 * CTRL]
    c = f_g * c + i_g * g_g
    h = o_g * jnp.tanh(c)

    # --- heads + output(h) part in one matmul ---
    post = jnp.dot(h, wpost, preferred_element_type=jnp.float32) + bpost
    logits = post[:, 0:2 * MEM_N]        # read logits | write logits (32 lanes)
    write_pre = post[:, MEM_N:2 * MEM_N]
    out_h = post[:, 2 * MEM_N:]          # (B, OUT_PAD)

    # one exp pass for both softmaxes (shared max shift cancels per segment)
    m = jnp.max(logits, axis=1, keepdims=True)
    e = jnp.exp(logits - m)
    e_r = e[:, 0:MEM_N]
    e_w = e[:, MEM_N:2 * MEM_N]
    read_w = e_r / jnp.sum(e_r, axis=1, keepdims=True)          # (B, N)
    write_w = e_w / jnp.sum(e_w, axis=1, keepdims=True)         # (B, N)
    erase = jax.nn.sigmoid(write_pre)                            # (B, V)
    add = jnp.tanh(write_pre)                                    # (B, V)

    # --- write_memory: M = M*(1 - w⊗e) + w⊗a ---
    mem = (mem * (1.0 - write_w[:, :, None] * erase[:, None, :])
           + write_w[:, :, None] * add[:, None, :])

    # --- read with new weights from updated memory (MXU) ---
    read_new = jnp.einsum(
        "bqn,bnv->bqv", read_w[:, None, :], mem,
        preferred_element_type=jnp.float32)[:, 0, :]            # (B, V)

    # --- output linear on concat([h, read_new]) (bias already in post) ---
    out = out_h + jnp.dot(read_new, woutr,
                          preferred_element_type=jnp.float32)   # (B, OUT_PAD)

    rw = read_w

    # one lane-dense (B, 128) packed row, one unmasked store per step
    row = jnp.concatenate([h, c, read_w, write_w, out], axis=1)
    packed_ref[t] = row

  memout_ref[...] = mem                  # final memory written exactly once


# ------------------------- one-time parameter packing ------------------------
def pack_params(params):
  f32 = jnp.float32
  W_ih = params["W_ih"].astype(f32)              # (4C, I+V)
  W_hh = params["W_hh"].astype(f32)              # (4C, C)

  wih_x = W_ih[:, :INPUT_SIZE].T                 # (I, 4C)
  wih_r = W_ih[:, INPUT_SIZE:].T                 # (V, 4C)
  wih_x_pad = jnp.zeros((XPAD, GATES), f32).at[:INPUT_SIZE].set(wih_x)
  w_gate = jnp.concatenate([wih_x_pad, wih_r, W_hh.T], axis=0)  # (GIN, 4C)
  b_gate = (params["b_ih"] + params["b_hh"]).astype(f32).reshape(1, GATES)

  W_out = params["W_out"].astype(f32)            # (O, C+V)
  b_out = params["b_out"].astype(f32)            # (O,)
  W_out_pad = jnp.zeros((OUT_PAD, CTRL + MEM_V), f32).at[:OUTPUT_SIZE].set(W_out)
  b_out_pad = jnp.zeros((OUT_PAD,), f32).at[:OUTPUT_SIZE].set(b_out)

  w_post = jnp.concatenate(
      [params["W_rh"].astype(f32).T,             # (C, N)
       params["W_wh"].astype(f32).T,             # (C, N)
       W_out_pad[:, :CTRL].T],                   # (C, OUT_PAD)
      axis=1)                                    # (C, 2N+OUT_PAD)
  b_post = jnp.concatenate(
      [params["b_rh"].astype(f32), params["b_wh"].astype(f32), b_out_pad]
  ).reshape(1, 2 * MEM_N + OUT_PAD)
  w_outr = W_out_pad[:, CTRL:].T                 # (V, OUT_PAD)

  return dict(w_gate=w_gate, b_gate=b_gate, w_post=w_post,
              b_post=b_post, w_outr=w_outr)


# ------------------------------ JAX wrappers ----------------------------------
@jax.jit
def ntm_forward_seq(packed, xs, init_state):
  """Runs all T timesteps of the NTM forward pass in ONE pallas_call."""
  (h0, c0), mem_state = init_state
  mem0 = mem_state["memory"].astype(jnp.float32)        # (B, N, V)
  rw0 = mem_state["read_weights"].astype(jnp.float32)   # (B, N)
  T, B = xs.shape[0], xs.shape[1]

  xs_pad = jnp.zeros((T, B, XPAD), jnp.float32)
  xs_pad = xs_pad.at[:, :, :INPUT_SIZE].set(xs.astype(jnp.float32))

  state0 = jnp.zeros((B, PK_LANES), jnp.float32)
  state0 = (state0.at[:, PK_H:PK_H + CTRL].set(h0.astype(jnp.float32))
                  .at[:, PK_C:PK_C + CTRL].set(c0.astype(jnp.float32))
                  .at[:, PK_RW:PK_RW + MEM_N].set(rw0))

  vmem_spec = pl.BlockSpec(memory_space=pltpu.MemorySpace.VMEM)

  packed_seq, mem_final = pl.pallas_call(
      ntm_seq_kernel,
      out_shape=(
          jax.ShapeDtypeStruct((T, B, PK_LANES), jnp.float32),  # packed per-step
          jax.ShapeDtypeStruct((B, MEM_N, MEM_V), jnp.float32), # final memory
      ),
      in_specs=[vmem_spec] * 8,
      out_specs=(vmem_spec, vmem_spec),
  )(xs_pad, state0, mem0, packed["w_gate"], packed["b_gate"],
    packed["w_post"], packed["w_outr"], packed["b_post"])

  out_seq = packed_seq[:, :, PK_OUT:PK_OUT + OUTPUT_SIZE]
  h_seq = packed_seq[:, :, PK_H:PK_H + CTRL]
  c_seq = packed_seq[:, :, PK_C:PK_C + CTRL]
  rw_seq = packed_seq[:, :, PK_RW:PK_RW + MEM_N]
  ww_seq = packed_seq[:, :, PK_WW:PK_WW + MEM_N]
  return out_seq, (h_seq, c_seq, rw_seq, ww_seq, mem_final)


def ntm_forward(packed, x, prev_state):
  """Single-step API, semantics of NTM.forward(x, prev_state)."""
  out_seq, (h_seq, c_seq, rw_seq, ww_seq, mem_final) = ntm_forward_seq(
      packed, x[None], prev_state)
  new_state = ((h_seq[0], c_seq[0]),
               {"read_weights": rw_seq[0], "write_weights": ww_seq[0],
                "memory": mem_final})
  return out_seq[0], new_state


# --------------------------- pure-JAX reference ------------------------------
def ntm_step_ref(params, x, prev_state):
  (h_prev, c_prev), mem_state = prev_state
  mem = mem_state["memory"]
  rw_prev = mem_state["read_weights"]

  read_prev = jnp.einsum("bn,bnv->bv", rw_prev, mem)
  xcat = jnp.concatenate([x, read_prev], axis=1)
  gates = (xcat @ params["W_ih"].T + params["b_ih"]
           + h_prev @ params["W_hh"].T + params["b_hh"])
  i_g, f_g, g_g, o_g = jnp.split(gates, 4, axis=1)
  i_g, f_g, o_g = map(jax.nn.sigmoid, (i_g, f_g, o_g))
  g_g = jnp.tanh(g_g)
  c_new = f_g * c_prev + i_g * g_g
  h_new = o_g * jnp.tanh(c_new)

  read_w = jax.nn.softmax(h_new @ params["W_rh"].T + params["b_rh"], axis=1)
  write_pre = h_new @ params["W_wh"].T + params["b_wh"]
  write_w = jax.nn.softmax(write_pre, axis=1)
  erase = jax.nn.sigmoid(write_pre)
  add = jnp.tanh(write_pre)

  mem_new = (mem * (1.0 - write_w[:, :, None] * erase[:, None, :])
             + write_w[:, :, None] * add[:, None, :])
  read_new = jnp.einsum("bn,bnv->bv", read_w, mem_new)
  out = (jnp.concatenate([h_new, read_new], axis=1) @ params["W_out"].T
         + params["b_out"])
  new_state = ((h_new, c_new),
               {"read_weights": read_w, "write_weights": write_w,
                "memory": mem_new})
  return out, new_state


# --------------------------- deterministic init ------------------------------
def init_params(key):
  def linear(k, out_d, in_d):
    bound = 1.0 / np.sqrt(in_d)
    kw, kb = jax.random.split(k)
    w = jax.random.uniform(kw, (out_d, in_d), jnp.float32, -bound, bound)
    b = jax.random.uniform(kb, (out_d,), jnp.float32, -bound, bound)
    return w, b

  ks = jax.random.split(key, 6)
  W_ih, b_ih = linear(ks[0], 4 * CTRL, INPUT_SIZE + MEM_V)
  W_hh, b_hh = linear(ks[1], 4 * CTRL, CTRL)
  W_rh, b_rh = linear(ks[2], MEM_N, CTRL)
  W_wh, b_wh = linear(ks[3], MEM_N, CTRL)
  W_out, b_out = linear(ks[4], OUTPUT_SIZE, CTRL + MEM_V)
  memory = jax.random.normal(ks[5], (1, MEM_N, MEM_V), jnp.float32)
  return dict(W_ih=W_ih, b_ih=b_ih, W_hh=W_hh, b_hh=b_hh,
              W_rh=W_rh, b_rh=b_rh, W_wh=W_wh, b_wh=b_wh,
              W_out=W_out, b_out=b_out, memory=memory)


if __name__ == "__main__":
  assert MEM_N == MEM_V, "module is only shape-consistent when N == V"

  key = jax.random.PRNGKey(0)
  kp, kx, krw = jax.random.split(key, 3)
  params = init_params(kp)
  packed = pack_params(params)           # weight transposes/splits done once

  xs = jax.random.normal(kx, (SEQ_LEN, BATCH, INPUT_SIZE), jnp.float32)
  h0 = jnp.zeros((BATCH, CTRL), jnp.float32)
  c0 = jnp.zeros((BATCH, CTRL), jnp.float32)
  rw0 = jax.nn.softmax(jax.random.normal(krw, (BATCH, MEM_N)), axis=1)
  mem0 = jnp.broadcast_to(params["memory"], (BATCH, MEM_N, MEM_V))
  state0 = ((h0, c0), {"read_weights": rw0, "memory": mem0})

  # ---- fused sequence kernel (the whole recurrence in one pallas_call) ----
  out_seq, (h_seq, c_seq, rw_seq, ww_seq, mem_final) = ntm_forward_seq(
      packed, xs, state0)
  out_seq = jax.block_until_ready(out_seq)

  # ---- reference: T applications of the module's forward in pure JAX ----
  state = state0
  ref_out, ref_h, ref_c, ref_rw, ref_ww = [], [], [], [], []
  for t in range(SEQ_LEN):
    o, state = ntm_step_ref(params, xs[t], state)
    ref_out.append(o)
    ref_h.append(state[0][0])
    ref_c.append(state[0][1])
    ref_rw.append(state[1]["read_weights"])
    ref_ww.append(state[1]["write_weights"])
  ref_mem = state[1]["memory"]

  def chk(got, want):
    np.testing.assert_allclose(np.asarray(got), np.asarray(want),
                               rtol=1e-4, atol=1e-5)

  chk(out_seq, jnp.stack(ref_out))
  chk(h_seq, jnp.stack(ref_h))
  chk(c_seq, jnp.stack(ref_c))
  chk(rw_seq, jnp.stack(ref_rw))
  chk(ww_seq, jnp.stack(ref_ww))
  chk(mem_final, ref_mem)

  # ---- single-step API (exactly the PyTorch module's forward) ----
  out1, new_state1 = ntm_forward(packed, xs[0], state0)
  out1 = jax.block_until_ready(out1)
  ref_out1, ref_state1 = ntm_step_ref(params, xs[0], state0)
  chk(out1, ref_out1)
  chk(new_state1[0][0], ref_state1[0][0])
  chk(new_state1[1]["memory"], ref_state1[1]["memory"])

  print("KERNEL_OK")
</pallas_src>

<mosaic_0001>
module attributes {stable_mosaic.version = 11 : i64} {
  func.func @ntm_seq_kernel(%arg0: memref<8x2x16xf32, #tpu.memory_space<vmem>>, %arg1: memref<2x128xf32, #tpu.memory_space<vmem>>, %arg2: memref<2x16x16xf32, #tpu.memory_space<vmem>>, %arg3: memref<64x128xf32, #tpu.memory_space<vmem>>, %arg4: memref<1x128xf32, #tpu.memory_space<vmem>>, %arg5: memref<32x64xf32, #tpu.memory_space<vmem>>, %arg6: memref<16x32xf32, #tpu.memory_space<vmem>>, %arg7: memref<1x64xf32, #tpu.memory_space<vmem>>, %arg8: memref<8x2x128xf32, #tpu.memory_space<vmem>>, %arg9: memref<2x16x16xf32, #tpu.memory_space<vmem>>) attributes {dimension_semantics = [], scalar_prefetch = 0 : i64, scratch_operands = 0 : i64, tpu.core_type = #tpu.core_type<tc>} {
    %c0 = arith.constant 0 : index
    %c0_0 = arith.constant 0 : index
    %0 = vector.load %arg3[%c0, %c0_0] : memref<64x128xf32, #tpu.memory_space<vmem>>, vector<64x128xf32>
    %c0_1 = arith.constant 0 : index
    %c0_2 = arith.constant 0 : index
    %1 = vector.load %arg4[%c0_1, %c0_2] : memref<1x128xf32, #tpu.memory_space<vmem>>, vector<1x128xf32>
    %c0_3 = arith.constant 0 : index
    %c0_4 = arith.constant 0 : index
    %2 = vector.load %arg5[%c0_3, %c0_4] : memref<32x64xf32, #tpu.memory_space<vmem>>, vector<32x64xf32>
    %c0_5 = arith.constant 0 : index
    %c0_6 = arith.constant 0 : index
    %3 = vector.load %arg6[%c0_5, %c0_6] : memref<16x32xf32, #tpu.memory_space<vmem>>, vector<16x32xf32>
    %c0_7 = arith.constant 0 : index
    %c0_8 = arith.constant 0 : index
    %4 = vector.load %arg7[%c0_7, %c0_8] : memref<1x64xf32, #tpu.memory_space<vmem>>, vector<1x64xf32>
    %c0_9 = arith.constant 0 : index
    %c0_10 = arith.constant 0 : index
    %5 = vector.load %arg1[%c0_9, %c0_10] : memref<2x128xf32, #tpu.memory_space<vmem>>, vector<2x128xf32>
    %6 = vector.extract_strided_slice %5 {offsets = [0, 0], sizes = [2, 32], strides = [1, 1]} : vector<2x128xf32> to vector<2x32xf32>
    %7 = vector.extract_strided_slice %5 {offsets = [0, 32], sizes = [2, 32], strides = [1, 1]} : vector<2x128xf32> to vector<2x32xf32>
    %8 = vector.extract_strided_slice %5 {offsets = [0, 64], sizes = [2, 16], strides = [1, 1]} : vector<2x128xf32> to vector<2x16xf32>
    %c0_11 = arith.constant 0 : index
    %c0_12 = arith.constant 0 : index
    %c0_13 = arith.constant 0 : index
    %9 = vector.load %arg2[%c0_11, %c0_12, %c0_13] : memref<2x16x16xf32, #tpu.memory_space<vmem>>, vector<2x16x16xf32>
    %c0_14 = arith.constant 0 : index
    %c0_15 = arith.constant 0 : index
    %c0_16 = arith.constant 0 : index
    %10 = vector.load %arg0[%c0_14, %c0_15, %c0_16] : memref<8x2x16xf32, #tpu.memory_space<vmem>>, vector<1x2x16xf32>
    %11 = vector.shape_cast %10 : vector<1x2x16xf32> to vector<2x16xf32>
    %12 = vector.shape_cast %8 : vector<2x16xf32> to vector<2x1x16xf32>
    "tpu.trace_start"() <{level = 10 : i32, message = "bqn,bnv->bqv"}> : () -> ()
    %cst = arith.constant dense<0.000000e+00> : vector<2x1x16xf32>
    %13 = tpu.matmul %12, %9, %cst {dimension_numbers = #tpu.dot_dimension_numbers<[2], [1], [1], [2], [0, 0, 0, 1, 1, 2], [0], [0]>} : vector<2x1x16xf32>, vector<2x16x16xf32>, vector<2x1x16xf32> -> vector<2x1x16xf32>
    "tpu.trace_stop"() : () -> ()
    %14 = vector.shape_cast %13 : vector<2x1x16xf32> to vector<2x16xf32>
    %15 = tpu.concatenate %11, %14, %6 in 1 : vector<2x16xf32>, vector<2x16xf32>, vector<2x32xf32> -> vector<2x64xf32>
    %cst_17 = arith.constant dense<0.000000e+00> : vector<2x128xf32>
    %16 = tpu.matmul %15, %0, %cst_17 {dimension_numbers = #tpu.dot_dimension_numbers<[1], [0], [0], [1], [0, 0, 1, 1], [], []>} : vector<2x64xf32>, vector<64x128xf32>, vector<2x128xf32> -> vector<2x128xf32>
    %17 = vector.broadcast %1 : vector<1x128xf32> to vector<2x128xf32>
    %18 = arith.addf %16, %17 : vector<2x128xf32>
    %19 = arith.negf %18 : vector<2x128xf32>
    %20 = math.exp %19 : vector<2x128xf32>
    %cst_18 = arith.constant 1.000000e+00 : f32
    %21 = vector.broadcast %cst_18 : f32 to vector<2x128xf32>
    %22 = arith.addf %21, %20 : vector<2x128xf32>
    %23 = arith.divf %21, %22 : vector<2x128xf32>
    %24 = math.tanh %18 : vector<2x128xf32>
    %25 = vector.extract_strided_slice %23 {offsets = [0, 0], sizes = [2, 32], strides = [1, 1]} : vector<2x128xf32> to vector<2x32xf32>
    %26 = vector.extract_strided_slice %23 {offsets = [0, 32], sizes = [2, 32], strides = [1, 1]} : vector<2x128xf32> to vector<2x32xf32>
    %27 = vector.extract_strided_slice %24 {offsets = [0, 64], sizes = [2, 32], strides = [1, 1]} : vector<2x128xf32> to vector<2x32xf32>
    %28 = vector.extract_strided_slice %23 {offsets = [0, 96], sizes = [2, 32], strides = [1, 1]} : vector<2x128xf32> to vector<2x32xf32>
    %29 = arith.mulf %26, %7 : vector<2x32xf32>
    %30 = arith.mulf %25, %27 : vector<2x32xf32>
    %31 = arith.addf %29, %30 : vector<2x32xf32>
    %32 = math.tanh %31 : vector<2x32xf32>
    %33 = arith.mulf %28, %32 : vector<2x32xf32>
    %cst_19 = arith.constant dense<0.000000e+00> : vector<2x64xf32>
    %34 = tpu.matmul %33, %2, %cst_19 {dimension_numbers = #tpu.dot_dimension_numbers<[1], [0], [0], [1], [0, 0, 1, 1], [], []>} : vector<2x32xf32>, vector<32x64xf32>, vector<2x64xf32> -> vector<2x64xf32>
    %35 = vector.broadcast %4 : vector<1x64xf32> to vector<2x64xf32>
    %36 = arith.addf %34, %35 : vector<2x64xf32>
    %37 = vector.extract_strided_slice %36 {offsets = [0, 0], sizes = [2, 32], strides = [1, 1]} : vector<2x64xf32> to vector<2x32xf32>
    %38 = vector.extract_strided_slice %36 {offsets = [0, 16], sizes = [2, 16], strides = [1, 1]} : vector<2x64xf32> to vector<2x16xf32>
    %39 = vector.extract_strided_slice %36 {offsets = [0, 32], sizes = [2, 32], strides = [1, 1]} : vector<2x64xf32> to vector<2x32xf32>
    %cst_20 = arith.constant dense<0xFF800000> : vector<2xf32>
    %40 = vector.multi_reduction <maximumf>, %37, %cst_20 [1] : vector<2x32xf32> to vector<2xf32>
    %41 = vector.shape_cast %40 : vector<2xf32> to vector<2x1xf32>
    %42 = vector.broadcast %41 : vector<2x1xf32> to vector<2x32xf32>
    %43 = arith.subf %37, %42 : vector<2x32xf32>
    %44 = math.exp %43 : vector<2x32xf32>
    %45 = vector.extract_strided_slice %44 {offsets = [0, 0], sizes = [2, 16], strides = [1, 1]} : vector<2x32xf32> to vector<2x16xf32>
    %46 = vector.extract_strided_slice %44 {offsets = [0, 16], sizes = [2, 16], strides = [1, 1]} : vector<2x32xf32> to vector<2x16xf32>
    %cst_21 = arith.constant dense<0.000000e+00> : vector<2xf32>
    %47 = vector.multi_reduction <add>, %45, %cst_21 [1] : vector<2x16xf32> to vector<2xf32>
    %48 = vector.shape_cast %47 : vector<2xf32> to vector<2x1xf32>
    %49 = vector.broadcast %48 : vector<2x1xf32> to vector<2x16xf32>
    %50 = arith.divf %45, %49 : vector<2x16xf32>
    %cst_22 = arith.constant dense<0.000000e+00> : vector<2xf32>
    %51 = vector.multi_reduction <add>, %46, %cst_22 [1] : vector<2x16xf32> to vector<2xf32>
    %52 = vector.shape_cast %51 : vector<2xf32> to vector<2x1xf32>
    %53 = vector.broadcast %52 : vector<2x1xf32> to vector<2x16xf32>
    %54 = arith.divf %46, %53 : vector<2x16xf32>
    %55 = arith.negf %38 : vector<2x16xf32>
    %56 = math.exp %55 : vector<2x16xf32>
    %cst_23 = arith.constant 1.000000e+00 : f32
    %57 = vector.broadcast %cst_23 : f32 to vector<2x16xf32>
    %58 = arith.addf %57, %56 : vector<2x16xf32>
    %59 = arith.divf %57, %58 : vector<2x16xf32>
    %60 = math.tanh %38 : vector<2x16xf32>
    %61 = vector.shape_cast %54 : vector<2x16xf32> to vector<2x16x1xf32>
    %62 = vector.shape_cast %59 : vector<2x16xf32> to vector<2x1x16xf32>
    %63 = vector.broadcast %61 : vector<2x16x1xf32> to vector<2x16x16xf32>
    %64 = vector.broadcast %62 : vector<2x1x16xf32> to vector<2x16x16xf32>
    %65 = arith.mulf %63, %64 : vector<2x16x16xf32>
    %cst_24 = arith.constant 1.000000e+00 : f32
    %66 = vector.broadcast %cst_24 : f32 to vector<2x16x16xf32>
    %67 = arith.subf %66, %65 : vector<2x16x16xf32>
    %68 = arith.mulf %9, %67 : vector<2x16x16xf32>
    %69 = vector.shape_cast %54 : vector<2x16xf32> to vector<2x16x1xf32>
    %70 = vector.shape_cast %60 : vector<2x16xf32> to vector<2x1x16xf32>
    %71 = vector.broadcast %69 : vector<2x16x1xf32> to vector<2x16x16xf32>
    %72 = vector.broadcast %70 : vector<2x1x16xf32> to vector<2x16x16xf32>
    %73 = arith.mulf %71, %72 : vector<2x16x16xf32>
    %74 = arith.addf %68, %73 : vector<2x16x16xf32>
    %75 = vector.shape_cast %50 : vector<2x16xf32> to vector<2x1x16xf32>
    "tpu.trace_start"() <{level = 10 : i32, message = "bqn,bnv->bqv"}> : () -> ()
    %cst_25 = arith.constant dense<0.000000e+00> : vector<2x1x16xf32>
    %76 = tpu.matmul %75, %74, %cst_25 {dimension_numbers = #tpu.dot_dimension_numbers<[2], [1], [1], [2], [0, 0, 0, 1, 1, 2], [0], [0]>} : vector<2x1x16xf32>, vector<2x16x16xf32>, vector<2x1x16xf32> -> vector<2x1x16xf32>
    "tpu.trace_stop"() : () -> ()
    %77 = vector.shape_cast %76 : vector<2x1x16xf32> to vector<2x16xf32>
    %cst_26 = arith.constant dense<0.000000e+00> : vector<2x32xf32>
    %78 = tpu.matmul %77, %3, %cst_26 {dimension_numbers = #tpu.dot_dimension_numbers<[1], [0], [0], [1], [0, 0, 1, 1], [], []>} : vector<2x16xf32>, vector<16x32xf32>, vector<2x32xf32> -> vector<2x32xf32>
    %79 = arith.addf %39, %78 : vector<2x32xf32>
    %80 = tpu.concatenate %33, %31, %50, %54, %79 in 1 : vector<2x32xf32>, vector<2x32xf32>, vector<2x16xf32>, vector<2x16xf32>, vector<2x32xf32> -> vector<2x128xf32>
    %c0_27 = arith.constant 0 : index
    %c0_28 = arith.constant 0 : index
    %c0_29 = arith.constant 0 : index
    %81 = vector.load %arg8[%c0_27, %c0_28, %c0_29] : memref<8x2x128xf32, #tpu.memory_space<vmem>>, vector<1x2x128xf32>
    %82 = vector.shape_cast %81 : vector<1x2x128xf32> to vector<2x128xf32>
    %83 = vector.shape_cast %80 : vector<2x128xf32> to vector<1x2x128xf32>
    tpu.vector_store %arg8[%c0_27, %c0_28, %c0_29], %83 {strides = array<i32>} : memref<8x2x128xf32, #tpu.memory_space<vmem>>, vector<1x2x128xf32>,
    %c1 = arith.constant 1 : index
    %c0_30 = arith.constant 0 : index
    %c0_31 = arith.constant 0 : index
    %84 = vector.load %arg0[%c1, %c0_30, %c0_31] : memref<8x2x16xf32, #tpu.memory_space<vmem>>, vector<1x2x16xf32>
    %85 = vector.shape_cast %84 : vector<1x2x16xf32> to vector<2x16xf32>
    %86 = vector.shape_cast %50 : vector<2x16xf32> to vector<2x1x16xf32>
    "tpu.trace_start"() <{level = 10 : i32, message = "bqn,bnv->bqv"}> : () -> ()
    %cst_32 = arith.constant dense<0.000000e+00> : vector<2x1x16xf32>
    %87 = tpu.matmul %86, %74, %cst_32 {dimension_numbers = #tpu.dot_dimension_numbers<[2], [1], [1], [2], [0, 0, 0, 1, 1, 2], [0], [0]>} : vector<2x1x16xf32>, vector<2x16x16xf32>, vector<2x1x16xf32> -> vector<2x1x16xf32>
    "tpu.trace_stop"() : () -> ()
    %88 = vector.shape_cast %87 : vector<2x1x16xf32> to vector<2x16xf32>
    %89 = tpu.concatenate %85, %88, %33 in 1 : vector<2x16xf32>, vector<2x16xf32>, vector<2x32xf32> -> vector<2x64xf32>
    %cst_33 = arith.constant dense<0.000000e+00> : vector<2x128xf32>
    %90 = tpu.matmul %89, %0, %cst_33 {dimension_numbers = #tpu.dot_dimension_numbers<[1], [0], [0], [1], [0, 0, 1, 1], [], []>} : vector<2x64xf32>, vector<64x128xf32>, vector<2x128xf32> -> vector<2x128xf32>
    %91 = vector.broadcast %1 : vector<1x128xf32> to vector<2x128xf32>
    %92 = arith.addf %90, %91 : vector<2x128xf32>
    %93 = arith.negf %92 : vector<2x128xf32>
    %94 = math.exp %93 : vector<2x128xf32>
    %cst_34 = arith.constant 1.000000e+00 : f32
    %95 = vector.broadcast %cst_34 : f32 to vector<2x128xf32>
    %96 = arith.addf %95, %94 : vector<2x128xf32>
    %97 = arith.divf %95, %96 : vector<2x128xf32>
    %98 = math.tanh %92 : vector<2x128xf32>
    %99 = vector.extract_strided_slice %97 {offsets = [0, 0], sizes = [2, 32], strides = [1, 1]} : vector<2x128xf32> to vector<2x32xf32>
    %100 = vector.extract_strided_slice %97 {offsets = [0, 32], sizes = [2, 32], strides = [1, 1]} : vector<2x128xf32> to vector<2x32xf32>
    %101 = vector.extract_strided_slice %98 {offsets = [0, 64], sizes = [2, 32], strides = [1, 1]} : vector<2x128xf32> to vector<2x32xf32>
    %102 = vector.extract_strided_slice %97 {offsets = [0, 96], sizes = [2, 32], strides = [1, 1]} : vector<2x128xf32> to vector<2x32xf32>
    %103 = arith.mulf %100, %31 : vector<2x32xf32>
    %104 = arith.mulf %99, %101 : vector<2x32xf32>
    %105 = arith.addf %103, %104 : vector<2x32xf32>
    %106 = math.tanh %105 : vector<2x32xf32>
    %107 = arith.mulf %102, %106 : vector<2x32xf32>
    %cst_35 = arith.constant dense<0.000000e+00> : vector<2x64xf32>
    %108 = tpu.matmul %107, %2, %cst_35 {dimension_numbers = #tpu.dot_dimension_numbers<[1], [0], [0], [1], [0, 0, 1, 1], [], []>} : vector<2x32xf32>, vector<32x64xf32>, vector<2x64xf32> -> vector<2x64xf32>
    %109 = vector.broadcast %4 : vector<1x64xf32> to vector<2x64xf32>
    %110 = arith.addf %108, %109 : vector<2x64xf32>
    %111 = vector.extract_strided_slice %110 {offsets = [0, 0], sizes = [2, 32], strides = [1, 1]} : vector<2x64xf32> to vector<2x32xf32>
    %112 = vector.extract_strided_slice %110 {offsets = [0, 16], sizes = [2, 16], strides = [1, 1]} : vector<2x64xf32> to vector<2x16xf32>
    %113 = vector.extract_strided_slice %110 {offsets = [0, 32], sizes = [2, 32], strides = [1, 1]} : vector<2x64xf32> to vector<2x32xf32>
    %cst_36 = arith.constant dense<0xFF800000> : vector<2xf32>
    %114 = vector.multi_reduction <maximumf>, %111, %cst_36 [1] : vector<2x32xf32> to vector<2xf32>
    %115 = vector.shape_cast %114 : vector<2xf32> to vector<2x1xf32>
    %116 = vector.broadcast %115 : vector<2x1xf32> to vector<2x32xf32>
    %117 = arith.subf %111, %116 : vector<2x32xf32>
    %118 = math.exp %117 : vector<2x32xf32>
    %119 = vector.extract_strided_slice %118 {offsets = [0, 0], sizes = [2, 16], strides = [1, 1]} : vector<2x32xf32> to vector<2x16xf32>
    %120 = vector.extract_strided_slice %118 {offsets = [0, 16], sizes = [2, 16], strides = [1, 1]} : vector<2x32xf32> to vector<2x16xf32>
    %cst_37 = arith.constant dense<0.000000e+00> : vector<2xf32>
    %121 = vector.multi_reduction <add>, %119, %cst_37 [1] : vector<2x16xf32> to vector<2xf32>
    %122 = vector.shape_cast %121 : vector<2xf32> to vector<2x1xf32>
    %123 = vector.broadcast %122 : vector<2x1xf32> to vector<2x16xf32>
    %124 = arith.divf %119, %123 : vector<2x16xf32>
    %cst_38 = arith.constant dense<0.000000e+00> : vector<2xf32>
    %125 = vector.multi_reduction <add>, %120, %cst_38 [1] : vector<2x16xf32> to vector<2xf32>
    %126 = vector.shape_cast %125 : vector<2xf32> to vector<2x1xf32>
    %127 = vector.broadcast %126 : vector<2x1xf32> to vector<2x16xf32>
    %128 = arith.divf %120, %127 : vector<2x16xf32>
    %129 = arith.negf %112 : vector<2x16xf32>
    %130 = math.exp %129 : vector<2x16xf32>
    %cst_39 = arith.constant 1.000000e+00 : f32
    %131 = vector.broadcast %cst_39 : f32 to vector<2x16xf32>
    %132 = arith.addf %131, %130 : vector<2x16xf32>
    %133 = arith.divf %131, %132 : vector<2x16xf32>
    %134 = math.tanh %112 : vector<2x16xf32>
    %135 = vector.shape_cast %128 : vector<2x16xf32> to vector<2x16x1xf32>
    %136 = vector.shape_cast %133 : vector<2x16xf32> to vector<2x1x16xf32>
    %137 = vector.broadcast %135 : vector<2x16x1xf32> to vector<2x16x16xf32>
    %138 = vector.broadcast %136 : vector<2x1x16xf32> to vector<2x16x16xf32>
    %139 = arith.mulf %137, %138 : vector<2x16x16xf32>
    %cst_40 = arith.constant 1.000000e+00 : f32
    %140 = vector.broadcast %cst_40 : f32 to vector<2x16x16xf32>
    %141 = arith.subf %140, %139 : vector<2x16x16xf32>
    %142 = arith.mulf %74, %141 : vector<2x16x16xf32>
    %143 = vector.shape_cast %128 : vector<2x16xf32> to vector<2x16x1xf32>
    %144 = vector.shape_cast %134 : vector<2x16xf32> to vector<2x1x16xf32>
    %145 = vector.broadcast %143 : vector<2x16x1xf32> to vector<2x16x16xf32>
    %146 = vector.broadcast %144 : vector<2x1x16xf32> to vector<2x16x16xf32>
    %147 = arith.mulf %145, %146 : vector<2x16x16xf32>
    %148 = arith.addf %142, %147 : vector<2x16x16xf32>
    %149 = vector.shape_cast %124 : vector<2x16xf32> to vector<2x1x16xf32>
    "tpu.trace_start"() <{level = 10 : i32, message = "bqn,bnv->bqv"}> : () -> ()
    %cst_41 = arith.constant dense<0.000000e+00> : vector<2x1x16xf32>
    %150 = tpu.matmul %149, %148, %cst_41 {dimension_numbers = #tpu.dot_dimension_numbers<[2], [1], [1], [2], [0, 0, 0, 1, 1, 2], [0], [0]>} : vector<2x1x16xf32>, vector<2x16x16xf32>, vector<2x1x16xf32> -> vector<2x1x16xf32>
    "tpu.trace_stop"() : () -> ()
    %151 = vector.shape_cast %150 : vector<2x1x16xf32> to vector<2x16xf32>
    %cst_42 = arith.constant dense<0.000000e+00> : vector<2x32xf32>
    %152 = tpu.matmul %151, %3, %cst_42 {dimension_numbers = #tpu.dot_dimension_numbers<[1], [0], [0], [1], [0, 0, 1, 1], [], []>} : vector<2x16xf32>, vector<16x32xf32>, vector<2x32xf32> -> vector<2x32xf32>
    %153 = arith.addf %113, %152 : vector<2x32xf32>
    %154 = tpu.concatenate %107, %105, %124, %128, %153 in 1 : vector<2x32xf32>, vector<2x32xf32>, vector<2x16xf32>, vector<2x16xf32>, vector<2x32xf32> -> vector<2x128xf32>
    %c1_43 = arith.constant 1 : index
    %c0_44 = arith.constant 0 : index
    %c0_45 = arith.constant 0 : index
    %155 = vector.load %arg8[%c1_43, %c0_44, %c0_45] : memref<8x2x128xf32, #tpu.memory_space<vmem>>, vector<1x2x128xf32>
    %156 = vector.shape_cast %155 : vector<1x2x128xf32> to vector<2x128xf32>
    %157 = vector.shape_cast %154 : vector<2x128xf32> to vector<1x2x128xf32>
    tpu.vector_store %arg8[%c1_43, %c0_44, %c0_45], %157 {strides = array<i32>} : memref<8x2x128xf32, #tpu.memory_space<vmem>>, vector<1x2x128xf32>,
    %c2 = arith.constant 2 : index
    %c0_46 = arith.constant 0 : index
    %c0_47 = arith.constant 0 : index
    %158 = vector.load %arg0[%c2, %c0_46, %c0_47] : memref<8x2x16xf32, #tpu.memory_space<vmem>>, vector<1x2x16xf32>
    %159 = vector.shape_cast %158 : vector<1x2x16xf32> to vector<2x16xf32>
    %160 = vector.shape_cast %124 : vector<2x16xf32> to vector<2x1x16xf32>
    "tpu.trace_start"() <{level = 10 : i32, message = "bqn,bnv->bqv"}> : () -> ()
    %cst_48 = arith.constant dense<0.000000e+00> : vector<2x1x16xf32>
    %161 = tpu.matmul %160, %148, %cst_48 {dimension_numbers = #tpu.dot_dimension_numbers<[2], [1], [1], [2], [0, 0, 0, 1, 1, 2], [0], [0]>} : vector<2x1x16xf32>, vector<2x16x16xf32>, vector<2x1x16xf32> -> vector<2x1x16xf32>
    "tpu.trace_stop"() : () -> ()
    %162 = vector.shape_cast %161 : vector<2x1x16xf32> to vector<2x16xf32>
    %163 = tpu.concatenate %159, %162, %107 in 1 : vector<2x16xf32>, vector<2x16xf32>, vector<2x32xf32> -> vector<2x64xf32>
    %cst_49 = arith.constant dense<0.000000e+00> : vector<2x128xf32>
    %164 = tpu.matmul %163, %0, %cst_49 {dimension_numbers = #tpu.dot_dimension_numbers<[1], [0], [0], [1], [0, 0, 1, 1], [], []>} : vector<2x64xf32>, vector<64x128xf32>, vector<2x128xf32> -> vector<2x128xf32>
    %165 = vector.broadcast %1 : vector<1x128xf32> to vector<2x128xf32>
    %166 = arith.addf %164, %165 : vector<2x128xf32>
    %167 = arith.negf %166 : vector<2x128xf32>
    %168 = math.exp %167 : vector<2x128xf32>
    %cst_50 = arith.constant 1.000000e+00 : f32
    %169 = vector.broadcast %cst_50 : f32 to vector<2x128xf32>
    %170 = arith.addf %169, %168 : vector<2x128xf32>
    %171 = arith.divf %169, %170 : vector<2x128xf32>
    %172 = math.tanh %166 : vector<2x128xf32>
    %173 = vector.extract_strided_slice %171 {offsets = [0, 0], sizes = [2, 32], strides = [1, 1]} : vector<2x128xf32> to vector<2x32xf32>
    %174 = vector.extract_strided_slice %171 {offsets = [0, 32], sizes = [2, 32], strides = [1, 1]} : vector<2x128xf32> to vector<2x32xf32>
    %175 = vector.extract_strided_slice %172 {offsets = [0, 64], sizes = [2, 32], strides = [1, 1]} : vector<2x128xf32> to vector<2x32xf32>
    %176 = vector.extract_strided_slice %171 {offsets = [0, 96], sizes = [2, 32], strides = [1, 1]} : vector<2x128xf32> to vector<2x32xf32>
    %177 = arith.mulf %174, %105 : vector<2x32xf32>
    %178 = arith.mulf %173, %175 : vector<2x32xf32>
    %179 = arith.addf %177, %178 : vector<2x32xf32>
    %180 = math.tanh %179 : vector<2x32xf32>
    %181 = arith.mulf %176, %180 : vector<2x32xf32>
    %cst_51 = arith.constant dense<0.000000e+00> : vector<2x64xf32>
    %182 = tpu.matmul %181, %2, %cst_51 {dimension_numbers = #tpu.dot_dimension_numbers<[1], [0], [0], [1], [0, 0, 1, 1], [], []>} : vector<2x32xf32>, vector<32x64xf32>, vector<2x64xf32> -> vector<2x64xf32>
    %183 = vector.broadcast %4 : vector<1x64xf32> to vector<2x64xf32>
    %184 = arith.addf %182, %183 : vector<2x64xf32>
    %185 = vector.extract_strided_slice %184 {offsets = [0, 0], sizes = [2, 32], strides = [1, 1]} : vector<2x64xf32> to vector<2x32xf32>
    %186 = vector.extract_strided_slice %184 {offsets = [0, 16], sizes = [2, 16], strides = [1, 1]} : vector<2x64xf32> to vector<2x16xf32>
    %187 = vector.extract_strided_slice %184 {offsets = [0, 32], sizes = [2, 32], strides = [1, 1]} : vector<2x64xf32> to vector<2x32xf32>
    %cst_52 = arith.constant dense<0xFF800000> : vector<2xf32>
    %188 = vector.multi_reduction <maximumf>, %185, %cst_52 [1] : vector<2x32xf32> to vector<2xf32>
    %189 = vector.shape_cast %188 : vector<2xf32> to vector<2x1xf32>
    %190 = vector.broadcast %189 : vector<2x1xf32> to vector<2x32xf32>
    %191 = arith.subf %185, %190 : vector<2x32xf32>
    %192 = math.exp %191 : vector<2x32xf32>
    %193 = vector.extract_strided_slice %192 {offsets = [0, 0], sizes = [2, 16], strides = [1, 1]} : vector<2x32xf32> to vector<2x16xf32>
    %194 = vector.extract_strided_slice %192 {offsets = [0, 16], sizes = [2, 16], strides = [1, 1]} : vector<2x32xf32> to vector<2x16xf32>
    %cst_53 = arith.constant dense<0.000000e+00> : vector<2xf32>
    %195 = vector.multi_reduction <add>, %193, %cst_53 [1] : vector<2x16xf32> to vector<2xf32>
    %196 = vector.shape_cast %195 : vector<2xf32> to vector<2x1xf32>
    %197 = vector.broadcast %196 : vector<2x1xf32> to vector<2x16xf32>
    %198 = arith.divf %193, %197 : vector<2x16xf32>
    %cst_54 = arith.constant dense<0.000000e+00> : vector<2xf32>
    %199 = vector.multi_reduction <add>, %194, %cst_54 [1] : vector<2x16xf32> to vector<2xf32>
    %200 = vector.shape_cast %199 : vector<2xf32> to vector<2x1xf32>
    %201 = vector.broadcast %200 : vector<2x1xf32> to vector<2x16xf32>
    %202 = arith.divf %194, %201 : vector<2x16xf32>
    %203 = arith.negf %186 : vector<2x16xf32>
    %204 = math.exp %203 : vector<2x16xf32>
    %cst_55 = arith.constant 1.000000e+00 : f32
    %205 = vector.broadcast %cst_55 : f32 to vector<2x16xf32>
    %206 = arith.addf %205, %204 : vector<2x16xf32>
    %207 = arith.divf %205, %206 : vector<2x16xf32>
    %208 = math.tanh %186 : vector<2x16xf32>
    %209 = vector.shape_cast %202 : vector<2x16xf32> to vector<2x16x1xf32>
    %210 = vector.shape_cast %207 : vector<2x16xf32> to vector<2x1x16xf32>
    %211 = vector.broadcast %209 : vector<2x16x1xf32> to vector<2x16x16xf32>
    %212 = vector.broadcast %210 : vector<2x1x16xf32> to vector<2x16x16xf32>
    %213 = arith.mulf %211, %212 : vector<2x16x16xf32>
    %cst_56 = arith.constant 1.000000e+00 : f32
    %214 = vector.broadcast %cst_56 : f32 to vector<2x16x16xf32>
    %215 = arith.subf %214, %213 : vector<2x16x16xf32>
    %216 = arith.mulf %148, %215 : vector<2x16x16xf32>
    %217 = vector.shape_cast %202 : vector<2x16xf32> to vector<2x16x1xf32>
    %218 = vector.shape_cast %208 : vector<2x16xf32> to vector<2x1x16xf32>
    %219 = vector.broadcast %217 : vector<2x16x1xf32> to vector<2x16x16xf32>
    %220 = vector.broadcast %218 : vector<2x1x16xf32> to vector<2x16x16xf32>
    %221 = arith.mulf %219, %220 : vector<2x16x16xf32>
    %222 = arith.addf %216, %221 : vector<2x16x16xf32>
    %223 = vector.shape_cast %198 : vector<2x16xf32> to vector<2x1x16xf32>
    "tpu.trace_start"() <{level = 10 : i32, message = "bqn,bnv->bqv"}> : () -> ()
    %cst_57 = arith.constant dense<0.000000e+00> : vector<2x1x16xf32>
    %224 = tpu.matmul %223, %222, %cst_57 {dimension_numbers = #tpu.dot_dimension_numbers<[2], [1], [1], [2], [0, 0, 0, 1, 1, 2], [0], [0]>} : vector<2x1x16xf32>, vector<2x16x16xf32>, vector<2x1x16xf32> -> vector<2x1x16xf32>
    "tpu.trace_stop"() : () -> ()
    %225 = vector.shape_cast %224 : vector<2x1x16xf32> to vector<2x16xf32>
    %cst_58 = arith.constant dense<0.000000e+00> : vector<2x32xf32>
    %226 = tpu.matmul %225, %3, %cst_58 {dimension_numbers = #tpu.dot_dimension_numbers<[1], [0], [0], [1], [0, 0, 1, 1], [], []>} : vector<2x16xf32>, vector<16x32xf32>, vector<2x32xf32> -> vector<2x32xf32>
    %227 = arith.addf %187, %226 : vector<2x32xf32>
    %228 = tpu.concatenate %181, %179, %198, %202, %227 in 1 : vector<2x32xf32>, vector<2x32xf32>, vector<2x16xf32>, vector<2x16xf32>, vector<2x32xf32> -> vector<2x128xf32>
    %c2_59 = arith.constant 2 : index
    %c0_60 = arith.constant 0 : index
    %c0_61 = arith.constant 0 : index
    %229 = vector.load %arg8[%c2_59, %c0_60, %c0_61] : memref<8x2x128xf32, #tpu.memory_space<vmem>>, vector<1x2x128xf32>
    %230 = vector.shape_cast %229 : vector<1x2x128xf32> to vector<2x128xf32>
    %231 = vector.shape_cast %228 : vector<2x128xf32> to vector<1x2x128xf32>
    tpu.vector_store %arg8[%c2_59, %c0_60, %c0_61], %231 {strides = array<i32>} : memref<8x2x128xf32, #tpu.memory_space<vmem>>, vector<1x2x128xf32>,
    %c3 = arith.constant 3 : index
    %c0_62 = arith.constant 0 : index
    %c0_63 = arith.constant 0 : index
    %232 = vector.load %arg0[%c3, %c0_62, %c0_63] : memref<8x2x16xf32, #tpu.memory_space<vmem>>, vector<1x2x16xf32>
    %233 = vector.shape_cast %232 : vector<1x2x16xf32> to vector<2x16xf32>
    %234 = vector.shape_cast %198 : vector<2x16xf32> to vector<2x1x16xf32>
    "tpu.trace_start"() <{level = 10 : i32, message = "bqn,bnv->bqv"}> : () -> ()
    %cst_64 = arith.constant dense<0.000000e+00> : vector<2x1x16xf32>
    %235 = tpu.matmul %234, %222, %cst_64 {dimension_numbers = #tpu.dot_dimension_numbers<[2], [1], [1], [2], [0, 0, 0, 1, 1, 2], [0], [0]>} : vector<2x1x16xf32>, vector<2x16x16xf32>, vector<2x1x16xf32> -> vector<2x1x16xf32>
    "tpu.trace_stop"() : () -> ()
    %236 = vector.shape_cast %235 : vector<2x1x16xf32> to vector<2x16xf32>
    %237 = tpu.concatenate %233, %236, %181 in 1 : vector<2x16xf32>, vector<2x16xf32>, vector<2x32xf32> -> vector<2x64xf32>
    %cst_65 = arith.constant dense<0.000000e+00> : vector<2x128xf32>
    %238 = tpu.matmul %237, %0, %cst_65 {dimension_numbers = #tpu.dot_dimension_numbers<[1], [0], [0], [1], [0, 0, 1, 1], [], []>} : vector<2x64xf32>, vector<64x128xf32>, vector<2x128xf32> -> vector<2x128xf32>
    %239 = vector.broadcast %1 : vector<1x128xf32> to vector<2x128xf32>
    %240 = arith.addf %238, %239 : vector<2x128xf32>
    %241 = arith.negf %240 : vector<2x128xf32>
    %242 = math.exp %241 : vector<2x128xf32>
    %cst_66 = arith.constant 1.000000e+00 : f32
    %243 = vector.broadcast %cst_66 : f32 to vector<2x128xf32>
    %244 = arith.addf %243, %242 : vector<2x128xf32>
    %245 = arith.divf %243, %244 : vector<2x128xf32>
    %246 = math.tanh %240 : vector<2x128xf32>
    %247 = vector.extract_strided_slice %245 {offsets = [0, 0], sizes = [2, 32], strides = [1, 1]} : vector<2x128xf32> to vector<2x32xf32>
    %248 = vector.extract_strided_slice %245 {offsets = [0, 32], sizes = [2, 32], strides = [1, 1]} : vector<2x128xf32> to vector<2x32xf32>
    %249 = vector.extract_strided_slice %246 {offsets = [0, 64], sizes = [2, 32], strides = [1, 1]} : vector<2x128xf32> to vector<2x32xf32>
    %250 = vector.extract_strided_slice %245 {offsets = [0, 96], sizes = [2, 32], strides = [1, 1]} : vector<2x128xf32> to vector<2x32xf32>
    %251 = arith.mulf %248, %179 : vector<2x32xf32>
    %252 = arith.mulf %247, %249 : vector<2x32xf32>
    %253 = arith.addf %251, %252 : vector<2x32xf32>
    %254 = math.tanh %253 : vector<2x32xf32>
    %255 = arith.mulf %250, %254 : vector<2x32xf32>
    %cst_67 = arith.constant dense<0.000000e+00> : vector<2x64xf32>
    %256 = tpu.matmul %255, %2, %cst_67 {dimension_numbers = #tpu.dot_dimension_numbers<[1], [0], [0], [1], [0, 0, 1, 1], [], []>} : vector<2x32xf32>, vector<32x64xf32>, vector<2x64xf32> -> vector<2x64xf32>
    %257 = vector.broadcast %4 : vector<1x64xf32> to vector<2x64xf32>
    %258 = arith.addf %256, %257 : vector<2x64xf32>
    %259 = vector.extract_strided_slice %258 {offsets = [0, 0], sizes = [2, 32], strides = [1, 1]} : vector<2x64xf32> to vector<2x32xf32>
    %260 = vector.extract_strided_slice %258 {offsets = [0, 16], sizes = [2, 16], strides = [1, 1]} : vector<2x64xf32> to vector<2x16xf32>
    %261 = vector.extract_strided_slice %258 {offsets = [0, 32], sizes = [2, 32], strides = [1, 1]} : vector<2x64xf32> to vector<2x32xf32>
    %cst_68 = arith.constant dense<0xFF800000> : vector<2xf32>
    %262 = vector.multi_reduction <maximumf>, %259, %cst_68 [1] : vector<2x32xf32> to vector<2xf32>
    %263 = vector.shape_cast %262 : vector<2xf32> to vector<2x1xf32>
    %264 = vector.broadcast %263 : vector<2x1xf32> to vector<2x32xf32>
    %265 = arith.subf %259, %264 : vector<2x32xf32>
    %266 = math.exp %265 : vector<2x32xf32>
    %267 = vector.extract_strided_slice %266 {offsets = [0, 0], sizes = [2, 16], strides = [1, 1]} : vector<2x32xf32> to vector<2x16xf32>
    %268 = vector.extract_strided_slice %266 {offsets = [0, 16], sizes = [2, 16], strides = [1, 1]} : vector<2x32xf32> to vector<2x16xf32>
    %cst_69 = arith.constant dense<0.000000e+00> : vector<2xf32>
    %269 = vector.multi_reduction <add>, %267, %cst_69 [1] : vector<2x16xf32> to vector<2xf32>
    %270 = vector.shape_cast %269 : vector<2xf32> to vector<2x1xf32>
    %271 = vector.broadcast %270 : vector<2x1xf32> to vector<2x16xf32>
    %272 = arith.divf %267, %271 : vector<2x16xf32>
    %cst_70 = arith.constant dense<0.000000e+00> : vector<2xf32>
    %273 = vector.multi_reduction <add>, %268, %cst_70 [1] : vector<2x16xf32> to vector<2xf32>
    %274 = vector.shape_cast %273 : vector<2xf32> to vector<2x1xf32>
    %275 = vector.broadcast %274 : vector<2x1xf32> to vector<2x16xf32>
    %276 = arith.divf %268, %275 : vector<2x16xf32>
    %277 = arith.negf %260 : vector<2x16xf32>
    %278 = math.exp %277 : vector<2x16xf32>
    %cst_71 = arith.constant 1.000000e+00 : f32
    %279 = vector.broadcast %cst_71 : f32 to vector<2x16xf32>
    %280 = arith.addf %279, %278 : vector<2x16xf32>
    %281 = arith.divf %279, %280 : vector<2x16xf32>
    %282 = math.tanh %260 : vector<2x16xf32>
    %283 = vector.shape_cast %276 : vector<2x16xf32> to vector<2x16x1xf32>
    %284 = vector.shape_cast %281 : vector<2x16xf32> to vector<2x1x16xf32>
    %285 = vector.broadcast %283 : vector<2x16x1xf32> to vector<2x16x16xf32>
    %286 = vector.broadcast %284 : vector<2x1x16xf32> to vector<2x16x16xf32>
    %287 = arith.mulf %285, %286 : vector<2x16x16xf32>
    %cst_72 = arith.constant 1.000000e+00 : f32
    %288 = vector.broadcast %cst_72 : f32 to vector<2x16x16xf32>
    %289 = arith.subf %288, %287 : vector<2x16x16xf32>
    %290 = arith.mulf %222, %289 : vector<2x16x16xf32>
    %291 = vector.shape_cast %276 : vector<2x16xf32> to vector<2x16x1xf32>
    %292 = vector.shape_cast %282 : vector<2x16xf32> to vector<2x1x16xf32>
    %293 = vector.broadcast %291 : vector<2x16x1xf32> to vector<2x16x16xf32>
    %294 = vector.broadcast %292 : vector<2x1x16xf32> to vector<2x16x16xf32>
    %295 = arith.mulf %293, %294 : vector<2x16x16xf32>
    %296 = arith.addf %290, %295 : vector<2x16x16xf32>
    %297 = vector.shape_cast %272 : vector<2x16xf32> to vector<2x1x16xf32>
    "tpu.trace_start"() <{level = 10 : i32, message = "bqn,bnv->bqv"}> : () -> ()
    %cst_73 = arith.constant dense<0.000000e+00> : vector<2x1x16xf32>
    %298 = tpu.matmul %297, %296, %cst_73 {dimension_numbers = #tpu.dot_dimension_numbers<[2], [1], [1], [2], [0, 0, 0, 1, 1, 2], [0], [0]>} : vector<2x1x16xf32>, vector<2x16x16xf32>, vector<2x1x16xf32> -> vector<2x1x16xf32>
    "tpu.trace_stop"() : () -> ()
    %299 = vector.shape_cast %298 : vector<2x1x16xf32> to vector<2x16xf32>
    %cst_74 = arith.constant dense<0.000000e+00> : vector<2x32xf32>
    %300 = tpu.matmul %299, %3, %cst_74 {dimension_numbers = #tpu.dot_dimension_numbers<[1], [0], [0], [1], [0, 0, 1, 1], [], []>} : vector<2x16xf32>, vector<16x32xf32>, vector<2x32xf32> -> vector<2x32xf32>
    %301 = arith.addf %261, %300 : vector<2x32xf32>
    %302 = tpu.concatenate %255, %253, %272, %276, %301 in 1 : vector<2x32xf32>, vector<2x32xf32>, vector<2x16xf32>, vector<2x16xf32>, vector<2x32xf32> -> vector<2x128xf32>
    %c3_75 = arith.constant 3 : index
    %c0_76 = arith.constant 0 : index
    %c0_77 = arith.constant 0 : index
    %303 = vector.load %arg8[%c3_75, %c0_76, %c0_77] : memref<8x2x128xf32, #tpu.memory_space<vmem>>, vector<1x2x128xf32>
    %304 = vector.shape_cast %303 : vector<1x2x128xf32> to vector<2x128xf32>
    %305 = vector.shape_cast %302 : vector<2x128xf32> to vector<1x2x128xf32>
    tpu.vector_store %arg8[%c3_75, %c0_76, %c0_77], %305 {strides = array<i32>} : memref<8x2x128xf32, #tpu.memory_space<vmem>>, vector<1x2x128xf32>,
    %c4 = arith.constant 4 : index
    %c0_78 = arith.constant 0 : index
    %c0_79 = arith.constant 0 : index
    %306 = vector.load %arg0[%c4, %c0_78, %c0_79] : memref<8x2x16xf32, #tpu.memory_space<vmem>>, vector<1x2x16xf32>
    %307 = vector.shape_cast %306 : vector<1x2x16xf32> to vector<2x16xf32>
    %308 = vector.shape_cast %272 : vector<2x16xf32> to vector<2x1x16xf32>
    "tpu.trace_start"() <{level = 10 : i32, message = "bqn,bnv->bqv"}> : () -> ()
    %cst_80 = arith.constant dense<0.000000e+00> : vector<2x1x16xf32>
    %309 = tpu.matmul %308, %296, %cst_80 {dimension_numbers = #tpu.dot_dimension_numbers<[2], [1], [1], [2], [0, 0, 0, 1, 1, 2], [0], [0]>} : vector<2x1x16xf32>, vector<2x16x16xf32>, vector<2x1x16xf32> -> vector<2x1x16xf32>
    "tpu.trace_stop"() : () -> ()
    %310 = vector.shape_cast %309 : vector<2x1x16xf32> to vector<2x16xf32>
    %311 = tpu.concatenate %307, %310, %255 in 1 : vector<2x16xf32>, vector<2x16xf32>, vector<2x32xf32> -> vector<2x64xf32>
    %cst_81 = arith.constant dense<0.000000e+00> : vector<2x128xf32>
    %312 = tpu.matmul %311, %0, %cst_81 {dimension_numbers = #tpu.dot_dimension_numbers<[1], [0], [0], [1], [0, 0, 1, 1], [], []>} : vector<2x64xf32>, vector<64x128xf32>, vector<2x128xf32> -> vector<2x128xf32>
    %313 = vector.broadcast %1 : vector<1x128xf32> to vector<2x128xf32>
    %314 = arith.addf %312, %313 : vector<2x128xf32>
    %315 = arith.negf %314 : vector<2x128xf32>
    %316 = math.exp %315 : vector<2x128xf32>
    %cst_82 = arith.constant 1.000000e+00 : f32
    %317 = vector.broadcast %cst_82 : f32 to vector<2x128xf32>
    %318 = arith.addf %317, %316 : vector<2x128xf32>
    %319 = arith.divf %317, %318 : vector<2x128xf32>
    %320 = math.tanh %314 : vector<2x128xf32>
    %321 = vector.extract_strided_slice %319 {offsets = [0, 0], sizes = [2, 32], strides = [1, 1]} : vector<2x128xf32> to vector<2x32xf32>
    %322 = vector.extract_strided_slice %319 {offsets = [0, 32], sizes = [2, 32], strides = [1, 1]} : vector<2x128xf32> to vector<2x32xf32>
    %323 = vector.extract_strided_slice %320 {offsets = [0, 64], sizes = [2, 32], strides = [1, 1]} : vector<2x128xf32> to vector<2x32xf32>
    %324 = vector.extract_strided_slice %319 {offsets = [0, 96], sizes = [2, 32], strides = [1, 1]} : vector<2x128xf32> to vector<2x32xf32>
    %325 = arith.mulf %322, %253 : vector<2x32xf32>
    %326 = arith.mulf %321, %323 : vector<2x32xf32>
    %327 = arith.addf %325, %326 : vector<2x32xf32>
    %328 = math.tanh %327 : vector<2x32xf32>
    %329 = arith.mulf %324, %328 : vector<2x32xf32>
    %cst_83 = arith.constant dense<0.000000e+00> : vector<2x64xf32>
    %330 = tpu.matmul %329, %2, %cst_83 {dimension_numbers = #tpu.dot_dimension_numbers<[1], [0], [0], [1], [0, 0, 1, 1], [], []>} : vector<2x32xf32>, vector<32x64xf32>, vector<2x64xf32> -> vector<2x64xf32>
    %331 = vector.broadcast %4 : vector<1x64xf32> to vector<2x64xf32>
    %332 = arith.addf %330, %331 : vector<2x64xf32>
    %333 = vector.extract_strided_slice %332 {offsets = [0, 0], sizes = [2, 32], strides = [1, 1]} : vector<2x64xf32> to vector<2x32xf32>
    %334 = vector.extract_strided_slice %332 {offsets = [0, 16], sizes = [2, 16], strides = [1, 1]} : vector<2x64xf32> to vector<2x16xf32>
    %335 = vector.extract_strided_slice %332 {offsets = [0, 32], sizes = [2, 32], strides = [1, 1]} : vector<2x64xf32> to vector<2x32xf32>
    %cst_84 = arith.constant dense<0xFF800000> : vector<2xf32>
    %336 = vector.multi_reduction <maximumf>, %333, %cst_84 [1] : vector<2x32xf32> to vector<2xf32>
    %337 = vector.shape_cast %336 : vector<2xf32> to vector<2x1xf32>
    %338 = vector.broadcast %337 : vector<2x1xf32> to vector<2x32xf32>
    %339 = arith.subf %333, %338 : vector<2x32xf32>
    %340 = math.exp %339 : vector<2x32xf32>
    %341 = vector.extract_strided_slice %340 {offsets = [0, 0], sizes = [2, 16], strides = [1, 1]} : vector<2x32xf32> to vector<2x16xf32>
    %342 = vector.extract_strided_slice %340 {offsets = [0, 16], sizes = [2, 16], strides = [1, 1]} : vector<2x32xf32> to vector<2x16xf32>
    %cst_85 = arith.constant dense<0.000000e+00> : vector<2xf32>
    %343 = vector.multi_reduction <add>, %341, %cst_85 [1] : vector<2x16xf32> to vector<2xf32>
    %344 = vector.shape_cast %343 : vector<2xf32> to vector<2x1xf32>
    %345 = vector.broadcast %344 : vector<2x1xf32> to vector<2x16xf32>
    %346 = arith.divf %341, %345 : vector<2x16xf32>
    %cst_86 = arith.constant dense<0.000000e+00> : vector<2xf32>
    %347 = vector.multi_reduction <add>, %342, %cst_86 [1] : vector<2x16xf32> to vector<2xf32>
    %348 = vector.shape_cast %347 : vector<2xf32> to vector<2x1xf32>
    %349 = vector.broadcast %348 : vector<2x1xf32> to vector<2x16xf32>
    %350 = arith.divf %342, %349 : vector<2x16xf32>
    %351 = arith.negf %334 : vector<2x16xf32>
    %352 = math.exp %351 : vector<2x16xf32>
    %cst_87 = arith.constant 1.000000e+00 : f32
    %353 = vector.broadcast %cst_87 : f32 to vector<2x16xf32>
    %354 = arith.addf %353, %352 : vector<2x16xf32>
    %355 = arith.divf %353, %354 : vector<2x16xf32>
    %356 = math.tanh %334 : vector<2x16xf32>
    %357 = vector.shape_cast %350 : vector<2x16xf32> to vector<2x16x1xf32>
    %358 = vector.shape_cast %355 : vector<2x16xf32> to vector<2x1x16xf32>
    %359 = vector.broadcast %357 : vector<2x16x1xf32> to vector<2x16x16xf32>
    %360 = vector.broadcast %358 : vector<2x1x16xf32> to vector<2x16x16xf32>
    %361 = arith.mulf %359, %360 : vector<2x16x16xf32>
    %cst_88 = arith.constant 1.000000e+00 : f32
    %362 = vector.broadcast %cst_88 : f32 to vector<2x16x16xf32>
    %363 = arith.subf %362, %361 : vector<2x16x16xf32>
    %364 = arith.mulf %296, %363 : vector<2x16x16xf32>
    %365 = vector.shape_cast %350 : vector<2x16xf32> to vector<2x16x1xf32>
    %366 = vector.shape_cast %356 : vector<2x16xf32> to vector<2x1x16xf32>
    %367 = vector.broadcast %365 : vector<2x16x1xf32> to vector<2x16x16xf32>
    %368 = vector.broadcast %366 : vector<2x1x16xf32> to vector<2x16x16xf32>
    %369 = arith.mulf %367, %368 : vector<2x16x16xf32>
    %370 = arith.addf %364, %369 : vector<2x16x16xf32>
    %371 = vector.shape_cast %346 : vector<2x16xf32> to vector<2x1x16xf32>
    "tpu.trace_start"() <{level = 10 : i32, message = "bqn,bnv->bqv"}> : () -> ()
    %cst_89 = arith.constant dense<0.000000e+00> : vector<2x1x16xf32>
    %372 = tpu.matmul %371, %370, %cst_89 {dimension_numbers = #tpu.dot_dimension_numbers<[2], [1], [1], [2], [0, 0, 0, 1, 1, 2], [0], [0]>} : vector<2x1x16xf32>, vector<2x16x16xf32>, vector<2x1x16xf32> -> vector<2x1x16xf32>
    "tpu.trace_stop"() : () -> ()
    %373 = vector.shape_cast %372 : vector<2x1x16xf32> to vector<2x16xf32>
    %cst_90 = arith.constant dense<0.000000e+00> : vector<2x32xf32>
    %374 = tpu.matmul %373, %3, %cst_90 {dimension_numbers = #tpu.dot_dimension_numbers<[1], [0], [0], [1], [0, 0, 1, 1], [], []>} : vector<2x16xf32>, vector<16x32xf32>, vector<2x32xf32> -> vector<2x32xf32>
    %375 = arith.addf %335, %374 : vector<2x32xf32>
    %376 = tpu.concatenate %329, %327, %346, %350, %375 in 1 : vector<2x32xf32>, vector<2x32xf32>, vector<2x16xf32>, vector<2x16xf32>, vector<2x32xf32> -> vector<2x128xf32>
    %c4_91 = arith.constant 4 : index
    %c0_92 = arith.constant 0 : index
    %c0_93 = arith.constant 0 : index
    %377 = vector.load %arg8[%c4_91, %c0_92, %c0_93] : memref<8x2x128xf32, #tpu.memory_space<vmem>>, vector<1x2x128xf32>
    %378 = vector.shape_cast %377 : vector<1x2x128xf32> to vector<2x128xf32>
    %379 = vector.shape_cast %376 : vector<2x128xf32> to vector<1x2x128xf32>
    tpu.vector_store %arg8[%c4_91, %c0_92, %c0_93], %379 {strides = array<i32>} : memref<8x2x128xf32, #tpu.memory_space<vmem>>, vector<1x2x128xf32>,
    %c5 = arith.constant 5 : index
    %c0_94 = arith.constant 0 : index
    %c0_95 = arith.constant 0 : index
    %380 = vector.load %arg0[%c5, %c0_94, %c0_95] : memref<8x2x16xf32, #tpu.memory_space<vmem>>, vector<1x2x16xf32>
    %381 = vector.shape_cast %380 : vector<1x2x16xf32> to vector<2x16xf32>
    %382 = vector.shape_cast %346 : vector<2x16xf32> to vector<2x1x16xf32>
    "tpu.trace_start"() <{level = 10 : i32, message = "bqn,bnv->bqv"}> : () -> ()
    %cst_96 = arith.constant dense<0.000000e+00> : vector<2x1x16xf32>
    %383 = tpu.matmul %382, %370, %cst_96 {dimension_numbers = #tpu.dot_dimension_numbers<[2], [1], [1], [2], [0, 0, 0, 1, 1, 2], [0], [0]>} : vector<2x1x16xf32>, vector<2x16x16xf32>, vector<2x1x16xf32> -> vector<2x1x16xf32>
    "tpu.trace_stop"() : () -> ()
    %384 = vector.shape_cast %383 : vector<2x1x16xf32> to vector<2x16xf32>
    %385 = tpu.concatenate %381, %384, %329 in 1 : vector<2x16xf32>, vector<2x16xf32>, vector<2x32xf32> -> vector<2x64xf32>
    %cst_97 = arith.constant dense<0.000000e+00> : vector<2x128xf32>
    %386 = tpu.matmul %385, %0, %cst_97 {dimension_numbers = #tpu.dot_dimension_numbers<[1], [0], [0], [1], [0, 0, 1, 1], [], []>} : vector<2x64xf32>, vector<64x128xf32>, vector<2x128xf32> -> vector<2x128xf32>
    %387 = vector.broadcast %1 : vector<1x128xf32> to vector<2x128xf32>
    %388 = arith.addf %386, %387 : vector<2x128xf32>
    %389 = arith.negf %388 : vector<2x128xf32>
    %390 = math.exp %389 : vector<2x128xf32>
    %cst_98 = arith.constant 1.000000e+00 : f32
    %391 = vector.broadcast %cst_98 : f32 to vector<2x128xf32>
    %392 = arith.addf %391, %390 : vector<2x128xf32>
    %393 = arith.divf %391, %392 : vector<2x128xf32>
    %394 = math.tanh %388 : vector<2x128xf32>
    %395 = vector.extract_strided_slice %393 {offsets = [0, 0], sizes = [2, 32], strides = [1, 1]} : vector<2x128xf32> to vector<2x32xf32>
    %396 = vector.extract_strided_slice %393 {offsets = [0, 32], sizes = [2, 32], strides = [1, 1]} : vector<2x128xf32> to vector<2x32xf32>
    %397 = vector.extract_strided_slice %394 {offsets = [0, 64], sizes = [2, 32], strides = [1, 1]} : vector<2x128xf32> to vector<2x32xf32>
    %398 = vector.extract_strided_slice %393 {offsets = [0, 96], sizes = [2, 32], strides = [1, 1]} : vector<2x128xf32> to vector<2x32xf32>
    %399 = arith.mulf %396, %327 : vector<2x32xf32>
    %400 = arith.mulf %395, %397 : vector<2x32xf32>
    %401 = arith.addf %399, %400 : vector<2x32xf32>
    %402 = math.tanh %401 : vector<2x32xf32>
    %403 = arith.mulf %398, %402 : vector<2x32xf32>
    %cst_99 = arith.constant dense<0.000000e+00> : vector<2x64xf32>
    %404 = tpu.matmul %403, %2, %cst_99 {dimension_numbers = #tpu.dot_dimension_numbers<[1], [0], [0], [1], [0, 0, 1, 1], [], []>} : vector<2x32xf32>, vector<32x64xf32>, vector<2x64xf32> -> vector<2x64xf32>
    %405 = vector.broadcast %4 : vector<1x64xf32> to vector<2x64xf32>
    %406 = arith.addf %404, %405 : vector<2x64xf32>
    %407 = vector.extract_strided_slice %406 {offsets = [0, 0], sizes = [2, 32], strides = [1, 1]} : vector<2x64xf32> to vector<2x32xf32>
    %408 = vector.extract_strided_slice %406 {offsets = [0, 16], sizes = [2, 16], strides = [1, 1]} : vector<2x64xf32> to vector<2x16xf32>
    %409 = vector.extract_strided_slice %406 {offsets = [0, 32], sizes = [2, 32], strides = [1, 1]} : vector<2x64xf32> to vector<2x32xf32>
    %cst_100 = arith.constant dense<0xFF800000> : vector<2xf32>
    %410 = vector.multi_reduction <maximumf>, %407, %cst_100 [1] : vector<2x32xf32> to vector<2xf32>
    %411 = vector.shape_cast %410 : vector<2xf32> to vector<2x1xf32>
    %412 = vector.broadcast %411 : vector<2x1xf32> to vector<2x32xf32>
    %413 = arith.subf %407, %412 : vector<2x32xf32>
    %414 = math.exp %413 : vector<2x32xf32>
    %415 = vector.extract_strided_slice %414 {offsets = [0, 0], sizes = [2, 16], strides = [1, 1]} : vector<2x32xf32> to vector<2x16xf32>
    %416 = vector.extract_strided_slice %414 {offsets = [0, 16], sizes = [2, 16], strides = [1, 1]} : vector<2x32xf32> to vector<2x16xf32>
    %cst_101 = arith.constant dense<0.000000e+00> : vector<2xf32>
    %417 = vector.multi_reduction <add>, %415, %cst_101 [1] : vector<2x16xf32> to vector<2xf32>
    %418 = vector.shape_cast %417 : vector<2xf32> to vector<2x1xf32>
    %419 = vector.broadcast %418 : vector<2x1xf32> to vector<2x16xf32>
    %420 = arith.divf %415, %419 : vector<2x16xf32>
    %cst_102 = arith.constant dense<0.000000e+00> : vector<2xf32>
    %421 = vector.multi_reduction <add>, %416, %cst_102 [1] : vector<2x16xf32> to vector<2xf32>
    %422 = vector.shape_cast %421 : vector<2xf32> to vector<2x1xf32>
    %423 = vector.broadcast %422 : vector<2x1xf32> to vector<2x16xf32>
    %424 = arith.divf %416, %423 : vector<2x16xf32>
    %425 = arith.negf %408 : vector<2x16xf32>
    %426 = math.exp %425 : vector<2x16xf32>
    %cst_103 = arith.constant 1.000000e+00 : f32
    %427 = vector.broadcast %cst_103 : f32 to vector<2x16xf32>
    %428 = arith.addf %427, %426 : vector<2x16xf32>
    %429 = arith.divf %427, %428 : vector<2x16xf32>
    %430 = math.tanh %408 : vector<2x16xf32>
    %431 = vector.shape_cast %424 : vector<2x16xf32> to vector<2x16x1xf32>
    %432 = vector.shape_cast %429 : vector<2x16xf32> to vector<2x1x16xf32>
    %433 = vector.broadcast %431 : vector<2x16x1xf32> to vector<2x16x16xf32>
    %434 = vector.broadcast %432 : vector<2x1x16xf32> to vector<2x16x16xf32>
    %435 = arith.mulf %433, %434 : vector<2x16x16xf32>
    %cst_104 = arith.constant 1.000000e+00 : f32
    %436 = vector.broadcast %cst_104 : f32 to vector<2x16x16xf32>
    %437 = arith.subf %436, %435 : vector<2x16x16xf32>
    %438 = arith.mulf %370, %437 : vector<2x16x16xf32>
    %439 = vector.shape_cast %424 : vector<2x16xf32> to vector<2x16x1xf32>
    %440 = vector.shape_cast %430 : vector<2x16xf32> to vector<2x1x16xf32>
    %441 = vector.broadcast %439 : vector<2x16x1xf32> to vector<2x16x16xf32>
    %442 = vector.broadcast %440 : vector<2x1x16xf32> to vector<2x16x16xf32>
    %443 = arith.mulf %441, %442 : vector<2x16x16xf32>
    %444 = arith.addf %438, %443 : vector<2x16x16xf32>
    %445 = vector.shape_cast %420 : vector<2x16xf32> to vector<2x1x16xf32>
    "tpu.trace_start"() <{level = 10 : i32, message = "bqn,bnv->bqv"}> : () -> ()
    %cst_105 = arith.constant dense<0.000000e+00> : vector<2x1x16xf32>
    %446 = tpu.matmul %445, %444, %cst_105 {dimension_numbers = #tpu.dot_dimension_numbers<[2], [1], [1], [2], [0, 0, 0, 1, 1, 2], [0], [0]>} : vector<2x1x16xf32>, vector<2x16x16xf32>, vector<2x1x16xf32> -> vector<2x1x16xf32>
    "tpu.trace_stop"() : () -> ()
    %447 = vector.shape_cast %446 : vector<2x1x16xf32> to vector<2x16xf32>
    %cst_106 = arith.constant dense<0.000000e+00> : vector<2x32xf32>
    %448 = tpu.matmul %447, %3, %cst_106 {dimension_numbers = #tpu.dot_dimension_numbers<[1], [0], [0], [1], [0, 0, 1, 1], [], []>} : vector<2x16xf32>, vector<16x32xf32>, vector<2x32xf32> -> vector<2x32xf32>
    %449 = arith.addf %409, %448 : vector<2x32xf32>
    %450 = tpu.concatenate %403, %401, %420, %424, %449 in 1 : vector<2x32xf32>, vector<2x32xf32>, vector<2x16xf32>, vector<2x16xf32>, vector<2x32xf32> -> vector<2x128xf32>
    %c5_107 = arith.constant 5 : index
    %c0_108 = arith.constant 0 : index
    %c0_109 = arith.constant 0 : index
    %451 = vector.load %arg8[%c5_107, %c0_108, %c0_109] : memref<8x2x128xf32, #tpu.memory_space<vmem>>, vector<1x2x128xf32>
    %452 = vector.shape_cast %451 : vector<1x2x128xf32> to vector<2x128xf32>
    %453 = vector.shape_cast %450 : vector<2x128xf32> to vector<1x2x128xf32>
    tpu.vector_store %arg8[%c5_107, %c0_108, %c0_109], %453 {strides = array<i32>} : memref<8x2x128xf32, #tpu.memory_space<vmem>>, vector<1x2x128xf32>,
    %c6 = arith.constant 6 : index
    %c0_110 = arith.constant 0 : index
    %c0_111 = arith.constant 0 : index
    %454 = vector.load %arg0[%c6, %c0_110, %c0_111] : memref<8x2x16xf32, #tpu.memory_space<vmem>>, vector<1x2x16xf32>
    %455 = vector.shape_cast %454 : vector<1x2x16xf32> to vector<2x16xf32>
    %456 = vector.shape_cast %420 : vector<2x16xf32> to vector<2x1x16xf32>
    "tpu.trace_start"() <{level = 10 : i32, message = "bqn,bnv->bqv"}> : () -> ()
    %cst_112 = arith.constant dense<0.000000e+00> : vector<2x1x16xf32>
    %457 = tpu.matmul %456, %444, %cst_112 {dimension_numbers = #tpu.dot_dimension_numbers<[2], [1], [1], [2], [0, 0, 0, 1, 1, 2], [0], [0]>} : vector<2x1x16xf32>, vector<2x16x16xf32>, vector<2x1x16xf32> -> vector<2x1x16xf32>
    "tpu.trace_stop"() : () -> ()
    %458 = vector.shape_cast %457 : vector<2x1x16xf32> to vector<2x16xf32>
    %459 = tpu.concatenate %455, %458, %403 in 1 : vector<2x16xf32>, vector<2x16xf32>, vector<2x32xf32> -> vector<2x64xf32>
    %cst_113 = arith.constant dense<0.000000e+00> : vector<2x128xf32>
    %460 = tpu.matmul %459, %0, %cst_113 {dimension_numbers = #tpu.dot_dimension_numbers<[1], [0], [0], [1], [0, 0, 1, 1], [], []>} : vector<2x64xf32>, vector<64x128xf32>, vector<2x128xf32> -> vector<2x128xf32>
    %461 = vector.broadcast %1 : vector<1x128xf32> to vector<2x128xf32>
    %462 = arith.addf %460, %461 : vector<2x128xf32>
    %463 = arith.negf %462 : vector<2x128xf32>
    %464 = math.exp %463 : vector<2x128xf32>
    %cst_114 = arith.constant 1.000000e+00 : f32
    %465 = vector.broadcast %cst_114 : f32 to vector<2x128xf32>
    %466 = arith.addf %465, %464 : vector<2x128xf32>
    %467 = arith.divf %465, %466 : vector<2x128xf32>
    %468 = math.tanh %462 : vector<2x128xf32>
    %469 = vector.extract_strided_slice %467 {offsets = [0, 0], sizes = [2, 32], strides = [1, 1]} : vector<2x128xf32> to vector<2x32xf32>
    %470 = vector.extract_strided_slice %467 {offsets = [0, 32], sizes = [2, 32], strides = [1, 1]} : vector<2x128xf32> to vector<2x32xf32>
    %471 = vector.extract_strided_slice %468 {offsets = [0, 64], sizes = [2, 32], strides = [1, 1]} : vector<2x128xf32> to vector<2x32xf32>
    %472 = vector.extract_strided_slice %467 {offsets = [0, 96], sizes = [2, 32], strides = [1, 1]} : vector<2x128xf32> to vector<2x32xf32>
    %473 = arith.mulf %470, %401 : vector<2x32xf32>
    %474 = arith.mulf %469, %471 : vector<2x32xf32>
    %475 = arith.addf %473, %474 : vector<2x32xf32>
    %476 = math.tanh %475 : vector<2x32xf32>
    %477 = arith.mulf %472, %476 : vector<2x32xf32>
    %cst_115 = arith.constant dense<0.000000e+00> : vector<2x64xf32>
    %478 = tpu.matmul %477, %2, %cst_115 {dimension_numbers = #tpu.dot_dimension_numbers<[1], [0], [0], [1], [0, 0, 1, 1], [], []>} : vector<2x32xf32>, vector<32x64xf32>, vector<2x64xf32> -> vector<2x64xf32>
    %479 = vector.broadcast %4 : vector<1x64xf32> to vector<2x64xf32>
    %480 = arith.addf %478, %479 : vector<2x64xf32>
    %481 = vector.extract_strided_slice %480 {offsets = [0, 0], sizes = [2, 32], strides = [1, 1]} : vector<2x64xf32> to vector<2x32xf32>
    %482 = vector.extract_strided_slice %480 {offsets = [0, 16], sizes = [2, 16], strides = [1, 1]} : vector<2x64xf32> to vector<2x16xf32>
    %483 = vector.extract_strided_slice %480 {offsets = [0, 32], sizes = [2, 32], strides = [1, 1]} : vector<2x64xf32> to vector<2x32xf32>
    %cst_116 = arith.constant dense<0xFF800000> : vector<2xf32>
    %484 = vector.multi_reduction <maximumf>, %481, %cst_116 [1] : vector<2x32xf32> to vector<2xf32>
    %485 = vector.shape_cast %484 : vector<2xf32> to vector<2x1xf32>
    %486 = vector.broadcast %485 : vector<2x1xf32> to vector<2x32xf32>
    %487 = arith.subf %481, %486 : vector<2x32xf32>
    %488 = math.exp %487 : vector<2x32xf32>
    %489 = vector.extract_strided_slice %488 {offsets = [0, 0], sizes = [2, 16], strides = [1, 1]} : vector<2x32xf32> to vector<2x16xf32>
    %490 = vector.extract_strided_slice %488 {offsets = [0, 16], sizes = [2, 16], strides = [1, 1]} : vector<2x32xf32> to vector<2x16xf32>
    %cst_117 = arith.constant dense<0.000000e+00> : vector<2xf32>
    %491 = vector.multi_reduction <add>, %489, %cst_117 [1] : vector<2x16xf32> to vector<2xf32>
    %492 = vector.shape_cast %491 : vector<2xf32> to vector<2x1xf32>
    %493 = vector.broadcast %492 : vector<2x1xf32> to vector<2x16xf32>
    %494 = arith.divf %489, %493 : vector<2x16xf32>
    %cst_118 = arith.constant dense<0.000000e+00> : vector<2xf32>
    %495 = vector.multi_reduction <add>, %490, %cst_118 [1] : vector<2x16xf32> to vector<2xf32>
    %496 = vector.shape_cast %495 : vector<2xf32> to vector<2x1xf32>
    %497 = vector.broadcast %496 : vector<2x1xf32> to vector<2x16xf32>
    %498 = arith.divf %490, %497 : vector<2x16xf32>
    %499 = arith.negf %482 : vector<2x16xf32>
    %500 = math.exp %499 : vector<2x16xf32>
    %cst_119 = arith.constant 1.000000e+00 : f32
    %501 = vector.broadcast %cst_119 : f32 to vector<2x16xf32>
    %502 = arith.addf %501, %500 : vector<2x16xf32>
    %503 = arith.divf %501, %502 : vector<2x16xf32>
    %504 = math.tanh %482 : vector<2x16xf32>
    %505 = vector.shape_cast %498 : vector<2x16xf32> to vector<2x16x1xf32>
    %506 = vector.shape_cast %503 : vector<2x16xf32> to vector<2x1x16xf32>
    %507 = vector.broadcast %505 : vector<2x16x1xf32> to vector<2x16x16xf32>
    %508 = vector.broadcast %506 : vector<2x1x16xf32> to vector<2x16x16xf32>
    %509 = arith.mulf %507, %508 : vector<2x16x16xf32>
    %cst_120 = arith.constant 1.000000e+00 : f32
    %510 = vector.broadcast %cst_120 : f32 to vector<2x16x16xf32>
    %511 = arith.subf %510, %509 : vector<2x16x16xf32>
    %512 = arith.mulf %444, %511 : vector<2x16x16xf32>
    %513 = vector.shape_cast %498 : vector<2x16xf32> to vector<2x16x1xf32>
    %514 = vector.shape_cast %504 : vector<2x16xf32> to vector<2x1x16xf32>
    %515 = vector.broadcast %513 : vector<2x16x1xf32> to vector<2x16x16xf32>
    %516 = vector.broadcast %514 : vector<2x1x16xf32> to vector<2x16x16xf32>
    %517 = arith.mulf %515, %516 : vector<2x16x16xf32>
    %518 = arith.addf %512, %517 : vector<2x16x16xf32>
    %519 = vector.shape_cast %494 : vector<2x16xf32> to vector<2x1x16xf32>
    "tpu.trace_start"() <{level = 10 : i32, message = "bqn,bnv->bqv"}> : () -> ()
    %cst_121 = arith.constant dense<0.000000e+00> : vector<2x1x16xf32>
    %520 = tpu.matmul %519, %518, %cst_121 {dimension_numbers = #tpu.dot_dimension_numbers<[2], [1], [1], [2], [0, 0, 0, 1, 1, 2], [0], [0]>} : vector<2x1x16xf32>, vector<2x16x16xf32>, vector<2x1x16xf32> -> vector<2x1x16xf32>
    "tpu.trace_stop"() : () -> ()
    %521 = vector.shape_cast %520 : vector<2x1x16xf32> to vector<2x16xf32>
    %cst_122 = arith.constant dense<0.000000e+00> : vector<2x32xf32>
    %522 = tpu.matmul %521, %3, %cst_122 {dimension_numbers = #tpu.dot_dimension_numbers<[1], [0], [0], [1], [0, 0, 1, 1], [], []>} : vector<2x16xf32>, vector<16x32xf32>, vector<2x32xf32> -> vector<2x32xf32>
    %523 = arith.addf %483, %522 : vector<2x32xf32>
    %524 = tpu.concatenate %477, %475, %494, %498, %523 in 1 : vector<2x32xf32>, vector<2x32xf32>, vector<2x16xf32>, vector<2x16xf32>, vector<2x32xf32> -> vector<2x128xf32>
    %c6_123 = arith.constant 6 : index
    %c0_124 = arith.constant 0 : index
    %c0_125 = arith.constant 0 : index
    %525 = vector.load %arg8[%c6_123, %c0_124, %c0_125] : memref<8x2x128xf32, #tpu.memory_space<vmem>>, vector<1x2x128xf32>
    %526 = vector.shape_cast %525 : vector<1x2x128xf32> to vector<2x128xf32>
    %527 = vector.shape_cast %524 : vector<2x128xf32> to vector<1x2x128xf32>
    tpu.vector_store %arg8[%c6_123, %c0_124, %c0_125], %527 {strides = array<i32>} : memref<8x2x128xf32, #tpu.memory_space<vmem>>, vector<1x2x128xf32>,
    %c7 = arith.constant 7 : index
    %c0_126 = arith.constant 0 : index
    %c0_127 = arith.constant 0 : index
    %528 = vector.load %arg0[%c7, %c0_126, %c0_127] : memref<8x2x16xf32, #tpu.memory_space<vmem>>, vector<1x2x16xf32>
    %529 = vector.shape_cast %528 : vector<1x2x16xf32> to vector<2x16xf32>
    %530 = vector.shape_cast %494 : vector<2x16xf32> to vector<2x1x16xf32>
    "tpu.trace_start"() <{level = 10 : i32, message = "bqn,bnv->bqv"}> : () -> ()
    %cst_128 = arith.constant dense<0.000000e+00> : vector<2x1x16xf32>
    %531 = tpu.matmul %530, %518, %cst_128 {dimension_numbers = #tpu.dot_dimension_numbers<[2], [1], [1], [2], [0, 0, 0, 1, 1, 2], [0], [0]>} : vector<2x1x16xf32>, vector<2x16x16xf32>, vector<2x1x16xf32> -> vector<2x1x16xf32>
    "tpu.trace_stop"() : () -> ()
    %532 = vector.shape_cast %531 : vector<2x1x16xf32> to vector<2x16xf32>
    %533 = tpu.concatenate %529, %532, %477 in 1 : vector<2x16xf32>, vector<2x16xf32>, vector<2x32xf32> -> vector<2x64xf32>
    %cst_129 = arith.constant dense<0.000000e+00> : vector<2x128xf32>
    %534 = tpu.matmul %533, %0, %cst_129 {dimension_numbers = #tpu.dot_dimension_numbers<[1], [0], [0], [1], [0, 0, 1, 1], [], []>} : vector<2x64xf32>, vector<64x128xf32>, vector<2x128xf32> -> vector<2x128xf32>
    %535 = vector.broadcast %1 : vector<1x128xf32> to vector<2x128xf32>
    %536 = arith.addf %534, %535 : vector<2x128xf32>
    %537 = arith.negf %536 : vector<2x128xf32>
    %538 = math.exp %537 : vector<2x128xf32>
    %cst_130 = arith.constant 1.000000e+00 : f32
    %539 = vector.broadcast %cst_130 : f32 to vector<2x128xf32>
    %540 = arith.addf %539, %538 : vector<2x128xf32>
    %541 = arith.divf %539, %540 : vector<2x128xf32>
    %542 = math.tanh %536 : vector<2x128xf32>
    %543 = vector.extract_strided_slice %541 {offsets = [0, 0], sizes = [2, 32], strides = [1, 1]} : vector<2x128xf32> to vector<2x32xf32>
    %544 = vector.extract_strided_slice %541 {offsets = [0, 32], sizes = [2, 32], strides = [1, 1]} : vector<2x128xf32> to vector<2x32xf32>
    %545 = vector.extract_strided_slice %542 {offsets = [0, 64], sizes = [2, 32], strides = [1, 1]} : vector<2x128xf32> to vector<2x32xf32>
    %546 = vector.extract_strided_slice %541 {offsets = [0, 96], sizes = [2, 32], strides = [1, 1]} : vector<2x128xf32> to vector<2x32xf32>
    %547 = arith.mulf %544, %475 : vector<2x32xf32>
    %548 = arith.mulf %543, %545 : vector<2x32xf32>
    %549 = arith.addf %547, %548 : vector<2x32xf32>
    %550 = math.tanh %549 : vector<2x32xf32>
    %551 = arith.mulf %546, %550 : vector<2x32xf32>
    %cst_131 = arith.constant dense<0.000000e+00> : vector<2x64xf32>
    %552 = tpu.matmul %551, %2, %cst_131 {dimension_numbers = #tpu.dot_dimension_numbers<[1], [0], [0], [1], [0, 0, 1, 1], [], []>} : vector<2x32xf32>, vector<32x64xf32>, vector<2x64xf32> -> vector<2x64xf32>
    %553 = vector.broadcast %4 : vector<1x64xf32> to vector<2x64xf32>
    %554 = arith.addf %552, %553 : vector<2x64xf32>
    %555 = vector.extract_strided_slice %554 {offsets = [0, 0], sizes = [2, 32], strides = [1, 1]} : vector<2x64xf32> to vector<2x32xf32>
    %556 = vector.extract_strided_slice %554 {offsets = [0, 16], sizes = [2, 16], strides = [1, 1]} : vector<2x64xf32> to vector<2x16xf32>
    %557 = vector.extract_strided_slice %554 {offsets = [0, 32], sizes = [2, 32], strides = [1, 1]} : vector<2x64xf32> to vector<2x32xf32>
    %cst_132 = arith.constant dense<0xFF800000> : vector<2xf32>
    %558 = vector.multi_reduction <maximumf>, %555, %cst_132 [1] : vector<2x32xf32> to vector<2xf32>
    %559 = vector.shape_cast %558 : vector<2xf32> to vector<2x1xf32>
    %560 = vector.broadcast %559 : vector<2x1xf32> to vector<2x32xf32>
    %561 = arith.subf %555, %560 : vector<2x32xf32>
    %562 = math.exp %561 : vector<2x32xf32>
    %563 = vector.extract_strided_slice %562 {offsets = [0, 0], sizes = [2, 16], strides = [1, 1]} : vector<2x32xf32> to vector<2x16xf32>
    %564 = vector.extract_strided_slice %562 {offsets = [0, 16], sizes = [2, 16], strides = [1, 1]} : vector<2x32xf32> to vector<2x16xf32>
    %cst_133 = arith.constant dense<0.000000e+00> : vector<2xf32>
    %565 = vector.multi_reduction <add>, %563, %cst_133 [1] : vector<2x16xf32> to vector<2xf32>
    %566 = vector.shape_cast %565 : vector<2xf32> to vector<2x1xf32>
    %567 = vector.broadcast %566 : vector<2x1xf32> to vector<2x16xf32>
    %568 = arith.divf %563, %567 : vector<2x16xf32>
    %cst_134 = arith.constant dense<0.000000e+00> : vector<2xf32>
    %569 = vector.multi_reduction <add>, %564, %cst_134 [1] : vector<2x16xf32> to vector<2xf32>
    %570 = vector.shape_cast %569 : vector<2xf32> to vector<2x1xf32>
    %571 = vector.broadcast %570 : vector<2x1xf32> to vector<2x16xf32>
    %572 = arith.divf %564, %571 : vector<2x16xf32>
    %573 = arith.negf %556 : vector<2x16xf32>
    %574 = math.exp %573 : vector<2x16xf32>
    %cst_135 = arith.constant 1.000000e+00 : f32
    %575 = vector.broadcast %cst_135 : f32 to vector<2x16xf32>
    %576 = arith.addf %575, %574 : vector<2x16xf32>
    %577 = arith.divf %575, %576 : vector<2x16xf32>
    %578 = math.tanh %556 : vector<2x16xf32>
    %579 = vector.shape_cast %572 : vector<2x16xf32> to vector<2x16x1xf32>
    %580 = vector.shape_cast %577 : vector<2x16xf32> to vector<2x1x16xf32>
    %581 = vector.broadcast %579 : vector<2x16x1xf32> to vector<2x16x16xf32>
    %582 = vector.broadcast %580 : vector<2x1x16xf32> to vector<2x16x16xf32>
    %583 = arith.mulf %581, %582 : vector<2x16x16xf32>
    %cst_136 = arith.constant 1.000000e+00 : f32
    %584 = vector.broadcast %cst_136 : f32 to vector<2x16x16xf32>
    %585 = arith.subf %584, %583 : vector<2x16x16xf32>
    %586 = arith.mulf %518, %585 : vector<2x16x16xf32>
    %587 = vector.shape_cast %572 : vector<2x16xf32> to vector<2x16x1xf32>
    %588 = vector.shape_cast %578 : vector<2x16xf32> to vector<2x1x16xf32>
    %589 = vector.broadcast %587 : vector<2x16x1xf32> to vector<2x16x16xf32>
    %590 = vector.broadcast %588 : vector<2x1x16xf32> to vector<2x16x16xf32>
    %591 = arith.mulf %589, %590 : vector<2x16x16xf32>
    %592 = arith.addf %586, %591 : vector<2x16x16xf32>
    %593 = vector.shape_cast %568 : vector<2x16xf32> to vector<2x1x16xf32>
    "tpu.trace_start"() <{level = 10 : i32, message = "bqn,bnv->bqv"}> : () -> ()
    %cst_137 = arith.constant dense<0.000000e+00> : vector<2x1x16xf32>
    %594 = tpu.matmul %593, %592, %cst_137 {dimension_numbers = #tpu.dot_dimension_numbers<[2], [1], [1], [2], [0, 0, 0, 1, 1, 2], [0], [0]>} : vector<2x1x16xf32>, vector<2x16x16xf32>, vector<2x1x16xf32> -> vector<2x1x16xf32>
    "tpu.trace_stop"() : () -> ()
    %595 = vector.shape_cast %594 : vector<2x1x16xf32> to vector<2x16xf32>
    %cst_138 = arith.constant dense<0.000000e+00> : vector<2x32xf32>
    %596 = tpu.matmul %595, %3, %cst_138 {dimension_numbers = #tpu.dot_dimension_numbers<[1], [0], [0], [1], [0, 0, 1, 1], [], []>} : vector<2x16xf32>, vector<16x32xf32>, vector<2x32xf32> -> vector<2x32xf32>
    %597 = arith.addf %557, %596 : vector<2x32xf32>
    %598 = tpu.concatenate %551, %549, %568, %572, %597 in 1 : vector<2x32xf32>, vector<2x32xf32>, vector<2x16xf32>, vector<2x16xf32>, vector<2x32xf32> -> vector<2x128xf32>
    %c7_139 = arith.constant 7 : index
    %c0_140 = arith.constant 0 : index
    %c0_141 = arith.constant 0 : index
    %599 = vector.load %arg8[%c7_139, %c0_140, %c0_141] : memref<8x2x128xf32, #tpu.memory_space<vmem>>, vector<1x2x128xf32>
    %600 = vector.shape_cast %599 : vector<1x2x128xf32> to vector<2x128xf32>
    %601 = vector.shape_cast %598 : vector<2x128xf32> to vector<1x2x128xf32>
    tpu.vector_store %arg8[%c7_139, %c0_140, %c0_141], %601 {strides = array<i32>} : memref<8x2x128xf32, #tpu.memory_space<vmem>>, vector<1x2x128xf32>,
    %c0_142 = arith.constant 0 : index
    %c0_143 = arith.constant 0 : index
    %c0_144 = arith.constant 0 : index
    %602 = vector.load %arg9[%c0_142, %c0_143, %c0_144] : memref<2x16x16xf32, #tpu.memory_space<vmem>>, vector<2x16x16xf32>
    tpu.vector_store %arg9[%c0_142, %c0_143, %c0_144], %592 {strides = array<i32>} : memref<2x16x16xf32, #tpu.memory_space<vmem>>, vector<2x16x16xf32>,
    return
  }
}

</mosaic_0001>

<bundles_post_ra>
// kernel: ntm_forward_seq.1
= control target key start
LH: loop header
LB: loop body
LE: loop exit
PB: predicated region body
PF: predicated region fallthrough
CT: control target
= control target key end

     0   :  { %15 = vsyncpa [#allocation3], 0  ;;  %s4470_s0 = inlined_call_operand.vmem [shape: f32[8,2,16], index: 0, kind: input, shape index: {}]   ;;  %s4471_s1 = inlined_call_operand.vmem [shape: f32[2,128], index: 1, kind: input, shape index: {}]   ;;  %s4472_s2 = inlined_call_operand.vmem [shape: f32[2,16,16], index: 2, kind: input, shape index: {}]   ;;  %s4473_s3 = inlined_call_operand.hbm [shape: f32[64,128], index: 3, kind: input, shape index: {}]   ;;  %s4474_s4 = inlined_call_operand.vmem [shape: f32[1,128], index: 4, kind: input, shape index: {}]   ;;  %s4475_s5 = inlined_call_operand.hbm [shape: f32[32,64], index: 5, kind: input, shape index: {}]   ;;  %s4476_s6 = inlined_call_operand.vmem [shape: f32[16,32], index: 6, kind: input, shape index: {}]   ;;  %s4477_s7 = inlined_call_operand.vmem [shape: f32[1,64], index: 7, kind: input, shape index: {}]   ;;  %s4478_s8 = inlined_call_operand.vmem [shape: f32[8,2,128], index: 8, kind: output, shape index: {0}]   ;;  %s4479_s9 = inlined_call_operand.hbm [shape: f32[2,16,16], index: 9, kind: output, shape index: {1}]  }
   0x1   :  { %16 = vsyncpa [#allocation6], 0 }
   0x2   :  { %17 = vsyncpa [#allocation4], 0  ;;  %s28_s11 = sshll.u32 %s4473_s3, 4  ;;  %s3321_s12 = smov [#allocation2]   ;;  %s29_s11 = int_to_ptr.hbm [resolvable:$true] %s28_s11 }
   0x3   :  { %s30_s13 = sshll.u32 %s3321_s12, 4  ;;  %s43_s16 = sshll.u32 %s4475_s5, 4  ;;  %s31_s13 = int_to_ptr.vmem [resolvable:$true] %s30_s13  ;;  %s44_s16 = int_to_ptr.hbm [resolvable:$true] %s43_s16 }
   0x4   :  { %s3322_s17 = smov 128   ;;  %s3323_s18 = smov 8  }
   0x5   :  { %36 = dma.hbm_to_vmem [thread:$0]  %s29_s11, 1024, %s31_s13, [#allocation3], %s3322_s17, %s3322_s17, %s3323_s18  }
   0x6   :  { %s3324_s19 = smov [#allocation5]  }
   0x7   :  { %s45_s20 = sshll.u32 %s3324_s19, 4  ;;  %s46_s20 = int_to_ptr.vmem [resolvable:$true] %s45_s20 }
   0x8   :  { %51 = dma.hbm_to_vmem [thread:$0]  %s44_s16, 512, %s46_s20, [#allocation6], %s3322_s17, %s3322_s17, %s3323_s18  }
   0x9   :  { %3315 = dma.done.wait [#allocation3], 1024  }
   0xa   :  { %3316 = vsyncadd [#allocation3], 4294966272 }
   0xb   :  { %3317 = dma.done.wait [#allocation6], 512  }
   0xc   :  { %3318 = vsyncadd [#allocation6], 4294966784  ;;  %v3395_v0 = vld [vmem:[%s4471_s1] sm:$0x3]  ;;  %v3400_v1 = vld [vmem:[%s4472_s2 + $0x18] sm:$0xff]  ;;  %s3325_s25 = smov 64  }
   0xd   :  { %v3405_v2 = vld [vmem:[%s4472_s2 + $0x10] sm:$0xff]  ;;  %v87_v3 = vrot.slane %v3395_v0, 1  ;;  %133 = vmatpush.msra.mxu1 %v3400_v1  ;;  %v88_v5 = vperm.slane %v3395_v0, 0  ;;  %v3416_v6 = vld [vmem:[%s4472_s2 + $0x8] sm:$0xff]  ;;  %v3421_v7 = vld [vmem:[%s4472_s2] sm:$0xff]  ;;  %vm91_vm0 = vcmask 130048  }
   0xe   :  { %108 = vmatpush.msra.mxu0 %v3416_v6  ;;  %v3427_v10 = vld [vmem:[#allocation2 + $0x38] sm:$0xff]  ;;  %v3429_v11 = vld [vmem:[#allocation2 + $0x30] sm:$0xff]  ;;  %v3432_v12 = vld [vmem:[#allocation2 + $0x28] sm:$0xff]  ;;  %vm142_vm1 = vcmask 1041409   ;;  %s3326_s2 = smov 16   ;;  %s3327_s29 = smov 32  }
   0xf   :  { %v114_v4 = vperm.slane %v87_v3, 0  ;;  %134 = vmatpush.msra.mxu1 %v3405_v2  ;;  %168 = vmatpush.msra.mxu2 %v3427_v10  ;;  %v3440_v17 = vld [vmem:[#allocation2 + $0x20] sm:$0xff]  ;;  %v3443_v18 = vld [vmem:[#allocation2 + $0x18] sm:$0xff]  ;;  %v3445_v19 = vld [vmem:[#allocation2 + $0x10] sm:$0xff]  ;;  %vm151_vm2 = vcmask 261120   ;;  %vm156_vm3 = vcmask 523264  }
  0x10   :  { %109 = vmatpush.msra.mxu0 %v3421_v7  ;;  %v3448_v20 = vld [vmem:[#allocation2 + $0x8] sm:$0xff]  ;;  %v3452_v21 = vld [vmem:[#allocation2] sm:$0xff]  ;;  %v3474_v50 = vld [vmem:[#allocation5 + $0x18] sm:$0xff]  ;;  %vm245_vm8 = vcmask 254976   ;;  %s3328_s15 = smov 112   ;;  %vm252_vm9 = vcmask 123904  }
  0x11   :  { %115 = vrot.lane.b32.xlu0 %v114_v4, %s3325_s25  ;;  %169 = vmatpush.msra.mxu2 %v3429_v11  ;;  %v85_v23 = vld [vmem:[%s4470_s0] sm:$0x3]  ;;  %v3476_v51 = vld [vmem:[#allocation5 + $0x10] sm:$0xff]  ;;  %v3479_v52 = vld [vmem:[#allocation5 + $0x8] sm:$0xff]  ;;  %s3329_s30 = smov [#allocation7]   ;;  %s2933_s12 = sshll.u32 %s4479_s9, 4  ;;  %s2934_s12 = int_to_ptr.hbm [resolvable:$true] %s2933_s12 }
  0x12   :  { %v3464_v27 = vld [vmem:[%s4474_s4] ss:$0 sm:$0xff]  ;;  %237 = vmatpush.msra.mxu3 %v3474_v50 }
  0x13   :  { %170 = vmatpush.msra.mxu2 %v3432_v12  ;;  %v3482_v53 = vld [vmem:[#allocation5] sm:$0xff] }
  0x14   :  { %238 = vmatpush.msra.mxu3 %v3476_v51  ;;  %v3497_v57 = vld [vmem:[%s4477_s7] ss:$0 sm:$0xff] }
  0x15   :  { %171 = vmatpush.msra.mxu2 %v3440_v17 }
  0x16   :  { %239 = vmatpush.msra.mxu3 %v3479_v52 }
  0x17   :  { %172 = vmatpush.msra.mxu2 %v3443_v18 }
  0x18   :  { %240 = vmatpush.msra.mxu3 %v3482_v53 }
  0x19   :  { %89 = vrot.lane.b32.xlu0 %v88_v5, %s3325_s25  ;;  %173 = vmatpush.msra.mxu2 %v3445_v19 }
  0x1b   :  { %174 = vmatpush.msra.mxu2 %v3448_v20 }
  0x1d   :  { %175 = vmatpush.msra.mxu2 %v3452_v21 }
  0x83   :  { %v116_v8 = vpop.permute.xlu0 %115 }
  0x84   :  { %2950 = vmatmul.msk.f32.vlgmr.msra.gmra.mxu1 %vm91_vm0, %v116_v8  ;;  %v314_v8 = vlaneseq }
  0x8b   :  { %v90_v9 = vpop.permute.xlu0 %89 }
  0x8c   :  { %2949 = vmatmul.msk.f32.vlgmr.msra.gmra.mxu0 %vm91_vm0, %v90_v9  ;;  %v315_v9 = vshrl.u32 %v314_v8, 7 }
 0x101   :  { %v136_v13 = vpop.f32.mrf.mxu1 }
 0x102   :  { %v141_v14 = vrot.slane %v136_v13, 7  ;;  %v3512_v13 = vadd.s32 24, %v315_v9 }
 0x104   :  { %3030 = vset.pattern.permute.xlu0 %v3512_v13 }
 0x109   :  { %v111_v15 = vpop.f32.mrf.mxu0 }
 0x10a   :  { %v143_v16 = vsel %vm142_vm1, %v141_v14, %v111_v15  ;;  %v3514_v14 = vadd.s32 16, %v315_v9 }
 0x10b   :  { %144 = vrot.lane.b32.xlu1 %v143_v16, %s3326_s2 }
 0x10c   :  { %3032 = vset.pattern.permute.xlu2 %v3514_v14  ;;  %3035 = vset.pattern.permute.xlu1 %v3514_v14 }
 0x113   :  { %147 = vrot.lane.b32.xlu1 %v3395_v0, %s3327_s29 }
 0x17d   :  { %v145_v22 = vpop.permute.xlu1 %144 }
 0x17e   :  { %v150_v24 = vsel %vm91_vm0, %v85_v23, %v145_v22 }
 0x185   :  { %v148_v25 = vpop.permute.xlu1 %147 }
 0x186   :  { %v152_v26 = vsel %vm151_vm2, %v150_v24, %v148_v25 }
 0x187   :  { %2951 = vmatmul.msk.f32.vlgmr.msra.gmra.mxu2 %vm156_vm3, %v152_v26 }
 0x20a   :  { %v177_v28 = vpop.f32.mrf.mxu2 }
 0x20b   :  { %v178_v29 = vadd.f32 %v3464_v27, %v177_v28 }
 0x20d   :  { %3051 = vtanh.f32 %v178_v29  ;;  %v2952_v31 = vmul.f32 -1.442695, %v178_v29 }
 0x20f   :  { %3053 = vpow2.f32 %v2952_v31 }
 0x213   :  { %v3052_v30 = vpop.eup %3051 }
 0x214   :  { %202 = vrot.lane.b32.xlu2 %v3052_v30, %s3325_s25 }
 0x215   :  { %v3054_v32 = vpop.eup %3053 }
 0x216   :  { %v183_v33 = vadd.f32 1.0, %v3054_v32 }
 0x218   :  { %3055 = vrcp.f32 %v183_v33  ;;  %v195_v39 = vand.u32 2147483648, %v183_v33  ;;  %vm189_vm5 = vweird.f32 %v183_v33  ;;  %v193_v40 = vand.u32 2147483647, %v183_v33 }
 0x21a   :  { %v196_v42 = vor.u32 1.1754944e-38, %v195_v39  ;;  %vm194_vm7 = vcmp.eq.f32.partialorder %v193_v40, 8.507059e+37 }
 0x21e   :  { %v3056_v34 = vpop.eup %3055 }
 0x21f   :  { %v185_v35 = vmul.f32 %v3056_v34, %v183_v33  ;;  %vm190_vm4 = vweird.f32 %v3056_v34 }
 0x220   :  { %vm191_vm6 = vmor %vm189_vm5, %vm190_vm4 }
 0x221   :  { %v186_v36 = vsub.f32 1.0, %v185_v35 }
 0x223   :  { %v187_v37 = vmul.f32 %v3056_v34, %v186_v36 }
 0x225   :  { %v188_v38 = vadd.f32 %v3056_v34, %v187_v37 }
 0x227   :  { %v192_v41 = vsel %vm191_vm6, %v3056_v34, %v188_v38 }
 0x228   :  { %v197_v44 = vsel %vm194_vm7, %v196_v42, %v192_v41 }
 0x229   :  { %v200_v46 = vmul.f32 %v197_v44, %v3395_v0 }
 0x26e   :  { %v203_v43 = vpop.permute.xlu2 %202 }
 0x26f   :  { %v205_v45 = vmul.f32 %v203_v43, %v197_v44 }
 0x271   :  { %207 = vrot.lane.b32.xlu2 %v205_v45, %s3327_s29 }
 0x2cb   :  { %v208_v47 = vpop.permute.xlu2 %207 }
 0x2cc   :  { %v3470_v48 = vadd.f32 %v208_v47, %v200_v46 }
 0x2ce   :  { %4496 = vst [vmem:[#allocation11_spill] sm:$0xff] %v3470_v48  ;;  %3057 = vtanh.f32 %v3470_v48 }
 0x2d4   :  { %v3058_v49 = vpop.eup %3057 }
 0x2d5   :  { %213 = vrot.lane.b32.xlu0 %v3058_v49, %s3325_s25 }
 0x347   :  { %v214_v54 = vpop.permute.xlu0 %213 }
 0x348   :  { %v3486_v55 = vmul.f32 %v214_v54, %v197_v44 }
 0x34a   :  { %221 = vrot.lane.b32.xlu1 %v3486_v55, %s3327_s29 }
 0x3bc   :  { %v3490_v56 = vpop.permute.xlu1 %221 }
 0x3bd   :  { %4497 = vst [vmem:[#allocation12_spill] sm:$0xff] %v3490_v56  ;;  %2953 = vmatmul.msk.f32.vlgmr.msra.gmra.mxu3 %vm151_vm2, %v3490_v56 }
 0x440   :  { %v242_v58 = vpop.f32.mrf.mxu3 }
 0x441   :  { %v3500_v59 = vadd.f32 %v3497_v57, %v242_v58 }
 0x443   :  { %v246_v60 = vsel %vm245_vm8, %v3500_v59, -inf  ;;  %v2954_v35 = vmul.f32 -1.442695, %v3500_v59 }
 0x444   :  { %247 = vmax.xlane.f32.xlu2 %v246_v60 }
 0x4b7   :  { %v248_v61 = vpop.xlane.xlu2 %247 }
 0x4b8   :  { %v249_v62 = vsub.f32 %v3500_v59, %v248_v61 }
 0x4ba   :  { %v250_v63 = vmul.f32 1.442695, %v249_v62 }
 0x4bc   :  { %3059 = vpow2.f32 %v250_v63 }
 0x4c2   :  { %v3505_v0 = vpop.eup %3059 }
 0x4c3   :  { %272 = vrot.lane.b32.xlu0 %v3505_v0, %s3328_s15  ;;  %v253_v5 = vsel %vm252_vm9, %v3505_v0, 0.0 }
 0x535   :  { %v273_v3 = vpop.permute.xlu0 %272 }
 0x536   :  { %v275_v4 = vsel %vm252_vm9, %v273_v3, 0.0 }
 0x537   :  { %276 = vadd.xlane.f32.xlu1 %v275_v4 }
 0x53f   :  { %254 = vadd.xlane.f32.xlu1 %v253_v5 }
 0x5aa   :  { %v277_v15 = vpop.xlane.xlu1 %276 }
 0x5ab   :  { %3061 = vrcp.f32 %v277_v15  ;;  %v289_v24 = vand.u32 2147483648, %v277_v15  ;;  %v287_v26 = vand.u32 2147483647, %v277_v15  ;;  %vm283_vm11 = vweird.f32 %v277_v15 }
 0x5ac   :  { %3063 = vpow2.f32 %v2954_v35 }
 0x5ad   :  { %v290_v29 = vor.u32 1.1754944e-38, %v289_v24  ;;  %vm288_vm13 = vcmp.eq.f32.partialorder %v287_v26, 8.507059e+37 }
 0x5b1   :  { %v3062_v16 = vpop.eup %3061 }
 0x5b2   :  { %v279_v22 = vmul.f32 %v3062_v16, %v277_v15  ;;  %vm284_vm10 = vweird.f32 %v3062_v16  ;;  %v3064_v36 = vpop.eup %3063 }
 0x5b3   :  { %vm285_vm12 = vmor %vm283_vm11, %vm284_vm10  ;;  %v296_v37 = vadd.f32 1.0, %v3064_v36 }
 0x5b4   :  { %v280_v23 = vsub.f32 1.0, %v279_v22 }
 0x5b5   :  { %3065 = vrcp.f32 %v296_v37  ;;  %v308_v43 = vand.u32 2147483648, %v296_v37  ;;  %vm302_vm15 = vweird.f32 %v296_v37  ;;  %v306_v44 = vand.u32 2147483647, %v296_v37 }
 0x5b6   :  { %v281_v25 = vmul.f32 %v3062_v16, %v280_v23  ;;  %3067 = vtanh.f32 %v3500_v59 }
 0x5b7   :  { %v309_v46 = vor.u32 1.1754944e-38, %v308_v43  ;;  %vm307_vm5 = vcmp.eq.f32.partialorder %v306_v44, 8.507059e+37 }
 0x5b8   :  { %v282_v28 = vadd.f32 %v3062_v16, %v281_v25 }
 0x5ba   :  { %v286_v30 = vsel %vm285_vm12, %v3062_v16, %v282_v28 }
 0x5bb   :  { %v291_v31 = vsel %vm288_vm13, %v290_v29, %v286_v30  ;;  %v3066_v38 = vpop.eup %3065 }
 0x5bc   :  { %v3520_v32 = vmul.f32 %v3505_v0, %v291_v31  ;;  %v298_v39 = vmul.f32 %v3066_v38, %v296_v37  ;;  %vm303_vm14 = vweird.f32 %v3066_v38  ;;  %v3068_v47 = vpop.eup %3067 }
 0x5bd   :  { %vm304_vm4 = vmor %vm302_vm15, %vm303_vm14  ;;  %v374_v58 = vrot.slane %v3068_v47, 1  ;;  %v375_v8 = vperm.slane %v3068_v47, 0 }
 0x5be   :  { %4498 = vst [vmem:[#allocation13_spill] sm:$0xff] %v3520_v32  ;;  %v326_v33 = vperm.slane %v3520_v32, 1  ;;  %v313_v34 = vperm.slane %v3520_v32, 0  ;;  %v299_v40 = vsub.f32 1.0, %v298_v39 }
 0x5bf   :  { %v376_v61 = vperm.slane %v374_v58, 0 }
 0x5c0   :  { %337 = vperm.xlu0 %3030, %v326_v33   ;;  %318 = vperm.xlu2 %3032, %v313_v34   ;;  %v300_v41 = vmul.f32 %v3066_v38, %v299_v40 }
 0x5c2   :  { %v301_v42 = vadd.f32 %v3066_v38, %v300_v41 }
 0x5c4   :  { %v305_v45 = vsel %vm304_vm4, %v3066_v38, %v301_v42 }
 0x5c5   :  { %v310_v49 = vsel %vm307_vm5, %v309_v46, %v305_v45 }
 0x5c6   :  { %v340_v54 = vrot.slane %v310_v49, 1  ;;  %v341_v5 = vperm.slane %v310_v49, 0 }
 0x5c8   :  { %324 = vperm.xlu0 %3030, %v313_v34   ;;  %3040 = vset.pattern.permute.xlu2 %v3512_v13  ;;  %v342_v60 = vperm.slane %v340_v54, 0 }
 0x5d0   :  { %3031 = vset.pattern.permute.xlu0 %v3514_v14 }
 0x5d8   :  { %331 = vperm.xlu0 %3031, %v326_v33   ;;  %v255_v33 = vpop.xlane.xlu1 %254 }
 0x5d9   :  { %3069 = vrcp.f32 %v255_v33  ;;  %v267_v46 = vand.u32 2147483648, %v255_v33  ;;  %vm261_vm7 = vweird.f32 %v255_v33  ;;  %v265_v47 = vand.u32 2147483647, %v255_v33 }
 0x5db   :  { %v268_v54 = vor.u32 1.1754944e-38, %v267_v46  ;;  %vm266_vm11 = vcmp.eq.f32.partialorder %v265_v47, 8.507059e+37 }
 0x5df   :  { %v3070_v41 = vpop.eup %3069 }
 0x5e0   :  { %3033 = vset.pattern.permute.xlu0 %v3512_v13  ;;  %vm262_vm6 = vweird.f32 %v3070_v41 }
 0x5e1   :  { %vm263_vm10 = vmor %vm261_vm7, %vm262_vm6 }
 0x61a   :  { %v319_v23 = vpop.permute.xlu2 %318 }
 0x61b   :  { %v379_v24 = vmul.f32 %v375_v8, %v319_v23  ;;  %v345_v29 = vmul.f32 %v341_v5, %v319_v23 }
 0x61d   :  { %v349_v30 = vsub.f32 1.0, %v345_v29 }
 0x632   :  { %v338_v62 = vpop.permute.xlu0 %337 }
 0x633   :  { %v348_v63 = vmul.f32 %v342_v60, %v338_v62  ;;  %v382_v3 = vmul.f32 %v376_v61, %v338_v62 }
 0x635   :  { %393 = vrot.lane.b32.xlu2 %v382_v3, %s3328_s15  ;;  %v352_v4 = vsub.f32 1.0, %v348_v63 }
 0x637   :  { %363 = vrot.lane.b32.xlu0 %v352_v4, %s3328_s15 }
 0x63a   :  { %v325_v9 = vpop.permute.xlu0 %324 }
 0x63b   :  { %v346_v15 = vmul.f32 %v341_v5, %v325_v9  ;;  %v380_v16 = vmul.f32 %v375_v8, %v325_v9 }
 0x63d   :  { %389 = vrot.lane.b32.xlu2 %v380_v16, %s3328_s15  ;;  %v350_v22 = vsub.f32 1.0, %v346_v15 }
 0x63f   :  { %359 = vrot.lane.b32.xlu1 %v350_v22, %s3328_s15  ;;  %v2958_v22 = vld [vmem:[%s4470_s0 + $0x2] sm:$0x3] }
 0x645   :  { %387 = vrot.lane.b32.xlu2 %v379_v24, %s3328_s15 }
 0x64a   :  { %v332_v25 = vpop.permute.xlu0 %331 }
 0x64b   :  { %v347_v26 = vmul.f32 %v342_v60, %v332_v25  ;;  %v381_v31 = vmul.f32 %v376_v61, %v332_v25 }
 0x64d   :  { %v351_v28 = vsub.f32 1.0, %v347_v26 }
 0x64f   :  { %361 = vrot.lane.b32.xlu0 %v351_v28, %s3328_s15 }
 0x657   :  { %357 = vrot.lane.b32.xlu0 %v349_v30, %s3328_s15 }
 0x65f   :  { %391 = vrot.lane.b32.xlu0 %v381_v31, %s3328_s15 }
 0x667   :  { %504 = vrot.lane.b32.xlu0 %v3486_v55, %s3325_s25  ;;  %v257_v55 = vmul.f32 %v3070_v41, %v255_v33 }
 0x669   :  { %v258_v43 = vsub.f32 1.0, %v257_v55 }
 0x66b   :  { %v259_v44 = vmul.f32 %v3070_v41, %v258_v43 }
 0x68f   :  { %v394_v34 = vpop.permute.xlu2 %393 }
 0x697   :  { %v390_v40 = vpop.permute.xlu2 %389 }
 0x69f   :  { %v388_v61 = vpop.permute.xlu2 %387 }
 0x6a9   :  { %v364_v35 = vpop.permute.xlu0 %363 }
 0x6aa   :  { %v372_v36 = vmul.f32 %v364_v35, %v3400_v1  ;;  %v260_v1 = vadd.f32 %v3070_v41, %v259_v44 }
 0x6ac   :  { %v3540_v37 = vadd.f32 %v394_v34, %v372_v36  ;;  %v264_v49 = vsel %vm263_vm10, %v3070_v41, %v260_v1 }
 0x6ad   :  { %v269_v60 = vsel %vm266_vm11, %v268_v54, %v264_v49 }
 0x6ae   :  { %443 = vmatpush.msrb.mxu1 %v3540_v37  ;;  %v3551_v63 = vmul.f32 %v3505_v0, %v269_v60  ;;  %v3583_v0 = vld [vmem:[%s4476_s6] sm:$0xff] }
 0x6b1   :  { %v360_v38 = vpop.permute.xlu1 %359 }
 0x6b2   :  { %v370_v39 = vmul.f32 %v360_v38, %v3416_v6 }
 0x6b4   :  { %v3544_v42 = vadd.f32 %v390_v40, %v370_v39 }
 0x6b6   :  { %421 = vmatpush.msrb.mxu0 %v3544_v42 }
 0x6c1   :  { %v362_v45 = vpop.permute.xlu0 %361 }
 0x6c2   :  { %v371_v3 = vmul.f32 %v362_v45, %v3405_v2  ;;  %v3577_v2 = vld [vmem:[%s4476_s6 + $0x8] sm:$0xff] }
 0x6c3   :  { %469 = vmatpush.msrb.mxu3 %v3577_v2 }
 0x6c5   :  { %470 = vmatpush.msrb.mxu3 %v3583_v0 }
 0x6c9   :  { %v358_v58 = vpop.permute.xlu0 %357 }
 0x6ca   :  { %v369_v6 = vmul.f32 %v358_v58, %v3421_v7  ;;  %v404_v7 = vrot.slane %v3551_v63, 1 }
 0x6cc   :  { %v3548_v62 = vadd.f32 %v388_v61, %v369_v6 }
 0x6ce   :  { %422 = vmatpush.msrb.mxu0 %v3548_v62 }
 0x6cf   :  { %2955 = vmatmul.msk.f32.vlgmr.msrb.gmra.mxu0 %vm91_vm0, %v3551_v63 }
 0x6d0   :  { %520 = vmatpush.msra.mxu0 %v3427_v10 }
 0x6d1   :  { %v392_v4 = vpop.permute.xlu0 %391 }
 0x6d2   :  { %v3558_v5 = vadd.f32 %v392_v4, %v371_v3  ;;  %521 = vmatpush.msra.mxu0 %v3429_v11 }
 0x6d4   :  { %444 = vmatpush.msrb.mxu1 %v3558_v5  ;;  %522 = vmatpush.msra.mxu0 %v3432_v12 }
 0x6d5   :  { %2956 = vmatmul.msk.f32.vlgmr.msrb.gmra.mxu1 %vm91_vm0, %v404_v7 }
 0x6d6   :  { %523 = vmatpush.msra.mxu0 %v3440_v17  ;;  %586 = vmatpush.msra.mxu1 %v3474_v50 }
 0x6d8   :  { %524 = vmatpush.msra.mxu0 %v3443_v18  ;;  %587 = vmatpush.msra.mxu1 %v3476_v51 }
 0x6d9   :  { %v505_v24 = vpop.permute.xlu0 %504 }
 0x6da   :  { %525 = vmatpush.msra.mxu0 %v3445_v19  ;;  %588 = vmatpush.msra.mxu1 %v3479_v52 }
 0x6dc   :  { %526 = vmatpush.msra.mxu0 %v3448_v20  ;;  %589 = vmatpush.msra.mxu1 %v3482_v53 }
 0x6de   :  { %527 = vmatpush.msra.mxu0 %v3452_v21  ;;  %816 = vmatpush.msrb.mxu1 %v3577_v2 }
 0x6e0   :  { %817 = vmatpush.msrb.mxu1 %v3583_v0 }
 0x74c   :  { %v424_v15 = vpop.f32.mrf.mxu0 }
 0x752   :  { %v446_v8 = vpop.f32.mrf.mxu1 }
 0x753   :  { %v451_v9 = vrot.slane %v446_v8, 7 }
 0x755   :  { %v452_v16 = vsel %vm142_vm1, %v451_v9, %v424_v15 }
 0x756   :  { %501 = vrot.lane.b32.xlu1 %v452_v16, %s3326_s2  ;;  %2957 = vmatmul.msk.f32.vlgmr.msrb.gmra.mxu3 %vm91_vm0, %v452_v16 }
 0x7c8   :  { %v502_v23 = vpop.permute.xlu1 %501 }
 0x7c9   :  { %v507_v25 = vsel %vm91_vm0, %v2958_v22, %v502_v23 }
 0x7ca   :  { %v508_v26 = vsel %vm151_vm2, %v507_v25, %v505_v24 }
 0x7cb   :  { %2959 = vmatmul.msk.f32.vlgmr.msra.gmra.mxu0 %vm156_vm3, %v508_v26 }
 0x848   :  { %v529_v28 = vpop.f32.mrf.mxu0 }
 0x849   :  { %v530_v29 = vadd.f32 %v3464_v27, %v529_v28 }
 0x84b   :  { %3071 = vtanh.f32 %v530_v29  ;;  %v2960_v31 = vmul.f32 -1.442695, %v530_v29 }
 0x84d   :  { %3073 = vpow2.f32 %v2960_v31 }
 0x851   :  { %v3072_v30 = vpop.eup %3071 }
 0x852   :  { %554 = vrot.lane.b32.xlu2 %v3072_v30, %s3325_s25 }
 0x853   :  { %v3074_v33 = vpop.eup %3073 }
 0x854   :  { %v535_v34 = vadd.f32 1.0, %v3074_v33 }
 0x856   :  { %3075 = vrcp.f32 %v535_v34  ;;  %v547_v41 = vand.u32 2147483648, %v535_v34  ;;  %vm541_vm13 = vweird.f32 %v535_v34  ;;  %v545_v55 = vand.u32 2147483647, %v535_v34 }
 0x858   :  { %v548_v44 = vor.u32 1.1754944e-38, %v547_v41  ;;  %vm546_vm15 = vcmp.eq.f32.partialorder %v545_v55, 8.507059e+37 }
 0x85c   :  { %v3076_v35 = vpop.eup %3075 }
 0x85d   :  { %v537_v36 = vmul.f32 %v3076_v35, %v535_v34  ;;  %vm542_vm12 = vweird.f32 %v3076_v35 }
 0x85e   :  { %vm543_vm14 = vmor %vm541_vm13, %vm542_vm12 }
 0x85f   :  { %v538_v38 = vsub.f32 1.0, %v537_v36 }
 0x861   :  { %v539_v39 = vmul.f32 %v3076_v35, %v538_v38 }
 0x863   :  { %v540_v40 = vadd.f32 %v3076_v35, %v539_v39 }
 0x865   :  { %v544_v43 = vsel %vm543_vm14, %v3076_v35, %v540_v40 }
 0x866   :  { %v549_v1 = vsel %vm546_vm15, %v548_v44, %v544_v43 }
 0x867   :  { %v552_v47 = vmul.f32 %v549_v1, %v3470_v48 }
 0x8ac   :  { %v555_v45 = vpop.permute.xlu2 %554 }
 0x8ad   :  { %v557_v46 = vmul.f32 %v555_v45, %v549_v1 }
 0x8af   :  { %559 = vrot.lane.b32.xlu1 %v557_v46, %s3327_s29 }
 0x921   :  { %v560_v49 = vpop.permute.xlu1 %559 }
 0x922   :  { %v3601_v54 = vadd.f32 %v560_v49, %v552_v47 }
 0x924   :  { %3077 = vtanh.f32 %v3601_v54 }
 0x92a   :  { %v3078_v58 = vpop.eup %3077 }
 0x92b   :  { %565 = vrot.lane.b32.xlu0 %v3078_v58, %s3325_s25 }
 0x99d   :  { %v566_v6 = vpop.permute.xlu0 %565 }
 0x99e   :  { %v3605_v60 = vmul.f32 %v566_v6, %v549_v1 }
 0x9a0   :  { %570 = vrot.lane.b32.xlu2 %v3605_v60, %s3327_s29 }
 0x9fa   :  { %v3609_v61 = vpop.permute.xlu2 %570 }
 0x9fb   :  { %2961 = vmatmul.msk.f32.vlgmr.msra.gmra.mxu1 %vm151_vm2, %v3609_v61 }
 0xa78   :  { %v591_v3 = vpop.f32.mrf.mxu1 }
 0xa79   :  { %v3614_v4 = vadd.f32 %v3497_v57, %v591_v3 }
 0xa7b   :  { %4499 = vst [vmem:[#allocation14_spill] sm:$0xff] %v3614_v4  ;;  %v594_v7 = vsel %vm245_vm8, %v3614_v4, -inf  ;;  %v2962_v55 = vmul.f32 -1.442695, %v3614_v4 }
 0xa7c   :  { %595 = vmax.xlane.f32.xlu1 %v594_v7 }
 0xaef   :  { %v596_v8 = vpop.xlane.xlu1 %595 }
 0xaf0   :  { %v597_v9 = vsub.f32 %v3614_v4, %v596_v8 }
 0xaf2   :  { %v598_v15 = vmul.f32 1.442695, %v597_v9 }
 0xaf4   :  { %3079 = vpow2.f32 %v598_v15 }
 0xafa   :  { %v3619_v16 = vpop.eup %3079 }
 0xafb   :  { %619 = vrot.lane.b32.xlu0 %v3619_v16, %s3328_s15  ;;  %v600_v24 = vsel %vm252_vm9, %v3619_v16, 0.0 }
 0xb6d   :  { %v620_v22 = vpop.permute.xlu0 %619 }
 0xb6e   :  { %v622_v23 = vsel %vm252_vm9, %v620_v22, 0.0 }
 0xb6f   :  { %623 = vadd.xlane.f32.xlu2 %v622_v23 }
 0xb77   :  { %601 = vadd.xlane.f32.xlu2 %v600_v24 }
 0xbe2   :  { %v624_v25 = vpop.xlane.xlu2 %623 }
 0xbe3   :  { %3081 = vrcp.f32 %v624_v25  ;;  %v636_v30 = vand.u32 2147483648, %v624_v25  ;;  %v634_v33 = vand.u32 2147483647, %v624_v25  ;;  %vm630_vm5 = vweird.f32 %v624_v25 }
 0xbe4   :  { %3083 = vpow2.f32 %v2962_v55 }
 0xbe5   :  { %v637_v35 = vor.u32 1.1754944e-38, %v636_v30  ;;  %vm635_vm7 = vcmp.eq.f32.partialorder %v634_v33, 8.507059e+37 }
 0xbe9   :  { %v3082_v26 = vpop.eup %3081 }
 0xbea   :  { %v626_v28 = vmul.f32 %v3082_v26, %v624_v25  ;;  %vm631_vm4 = vweird.f32 %v3082_v26  ;;  %v3084_v43 = vpop.eup %3083 }
 0xbeb   :  { %vm632_vm6 = vmor %vm630_vm5, %vm631_vm4  ;;  %v643_v44 = vadd.f32 1.0, %v3084_v43 }
 0xbec   :  { %v627_v29 = vsub.f32 1.0, %v626_v28 }
 0xbed   :  { %3085 = vrcp.f32 %v643_v44  ;;  %v655_v58 = vand.u32 2147483648, %v643_v44  ;;  %vm649_vm11 = vweird.f32 %v643_v44  ;;  %v653_v6 = vand.u32 2147483647, %v643_v44 }
 0xbee   :  { %v628_v31 = vmul.f32 %v3082_v26, %v627_v29  ;;  %3087 = vtanh.f32 %v3614_v4 }
 0xbef   :  { %v656_v7 = vor.u32 1.1754944e-38, %v655_v58  ;;  %vm654_vm13 = vcmp.eq.f32.partialorder %v653_v6, 8.507059e+37 }
 0xbf0   :  { %v629_v34 = vadd.f32 %v3082_v26, %v628_v31 }
 0xbf2   :  { %v633_v36 = vsel %vm632_vm6, %v3082_v26, %v629_v34 }
 0xbf3   :  { %v638_v38 = vsel %vm635_vm7, %v637_v35, %v633_v36  ;;  %v3086_v45 = vpop.eup %3085 }
 0xbf4   :  { %v3627_v39 = vmul.f32 %v3619_v16, %v638_v38  ;;  %v645_v1 = vmul.f32 %v3086_v45, %v643_v44  ;;  %vm650_vm10 = vweird.f32 %v3086_v45  ;;  %v3088_v8 = vpop.eup %3087 }
 0xbf5   :  { %vm651_vm12 = vmor %vm649_vm11, %vm650_vm10  ;;  %v721_v22 = vrot.slane %v3088_v8, 1  ;;  %v722_v31 = vperm.slane %v3088_v8, 0 }
 0xbf6   :  { %v673_v40 = vperm.slane %v3627_v39, 1  ;;  %v660_v41 = vperm.slane %v3627_v39, 0  ;;  %v646_v46 = vsub.f32 1.0, %v645_v1 }
 0xbf7   :  { %v723_v24 = vperm.slane %v721_v22, 0 }
 0xbf8   :  { %684 = vperm.xlu0 %3033, %v673_v40   ;;  %665 = vperm.xlu1 %3035, %v660_v41   ;;  %v647_v47 = vmul.f32 %v3086_v45, %v646_v46  ;;  %v602_v46 = vpop.xlane.xlu2 %601 }
 0xbf9   :  { %3089 = vrcp.f32 %v602_v46  ;;  %vm608_vm15 = vweird.f32 %v602_v46 }
 0xbfa   :  { %v648_v49 = vadd.f32 %v3086_v45, %v647_v47 }
 0xbfc   :  { %v652_v3 = vsel %vm651_vm12, %v3086_v45, %v648_v49 }
 0xbfd   :  { %v657_v9 = vsel %vm654_vm13, %v656_v7, %v652_v3 }
 0xbfe   :  { %v687_v15 = vrot.slane %v657_v9, 1  ;;  %v688_v30 = vperm.slane %v657_v9, 0 }
 0xc00   :  { %671 = vperm.xlu0 %3033, %v660_v41   ;;  %v689_v23 = vperm.slane %v687_v15, 0  ;;  %v3090_v15 = vpop.eup %3089 }
 0xc01   :  { %vm609_vm14 = vweird.f32 %v3090_v15 }
 0xc02   :  { %vm610_vm4 = vmor %vm608_vm15, %vm609_vm14 }
 0xc08   :  { %3034 = vset.pattern.permute.xlu0 %v3514_v14 }
 0xc10   :  { %678 = vperm.xlu0 %3034, %v673_v40  }
 0xc18   :  { %3036 = vset.pattern.permute.xlu0 %v3512_v13 }
 0xc6a   :  { %v685_v25 = vpop.permute.xlu0 %684  ;;  %v666_v38 = vpop.permute.xlu1 %665 }
 0xc6b   :  { %v695_v26 = vmul.f32 %v689_v23, %v685_v25  ;;  %v729_v28 = vmul.f32 %v723_v24, %v685_v25  ;;  %v726_v40 = vmul.f32 %v722_v31, %v666_v38  ;;  %v692_v44 = vmul.f32 %v688_v30, %v666_v38 }
 0xc6c   :  { %v614_v25 = vand.u32 2147483648, %v602_v46 }
 0xc6d   :  { %740 = vrot.lane.b32.xlu1 %v729_v28, %s3328_s15  ;;  %v699_v29 = vsub.f32 1.0, %v695_v26  ;;  %v696_v45 = vsub.f32 1.0, %v692_v44  ;;  %v612_v26 = vand.u32 2147483647, %v602_v46 }
 0xc6f   :  { %710 = vrot.lane.b32.xlu0 %v699_v29, %s3328_s15  ;;  %vm613_vm5 = vcmp.eq.f32.partialorder %v612_v26, 8.507059e+37 }
 0xc72   :  { %v672_v33 = vpop.permute.xlu0 %671 }
 0xc73   :  { %v693_v34 = vmul.f32 %v688_v30, %v672_v33  ;;  %v727_v35 = vmul.f32 %v722_v31, %v672_v33 }
 0xc75   :  { %736 = vrot.lane.b32.xlu1 %v727_v35, %s3328_s15  ;;  %v697_v36 = vsub.f32 1.0, %v693_v34 }
 0xc77   :  { %706 = vrot.lane.b32.xlu2 %v697_v36, %s3328_s15 }
 0xc7f   :  { %734 = vrot.lane.b32.xlu2 %v726_v40, %s3328_s15 }
 0xc82   :  { %v679_v41 = vpop.permute.xlu0 %678 }
 0xc83   :  { %v694_v55 = vmul.f32 %v689_v23, %v679_v41  ;;  %v728_v1 = vmul.f32 %v723_v24, %v679_v41 }
 0xc85   :  { %v698_v43 = vsub.f32 1.0, %v694_v55 }
 0xc87   :  { %708 = vrot.lane.b32.xlu0 %v698_v43, %s3328_s15 }
 0xc8f   :  { %704 = vrot.lane.b32.xlu0 %v696_v45, %s3328_s15 }
 0xc97   :  { %738 = vrot.lane.b32.xlu0 %v728_v1, %s3328_s15 }
 0xc9f   :  { %850 = vrot.lane.b32.xlu0 %v3605_v60, %s3325_s25  ;;  %v604_v60 = vmul.f32 %v3090_v15, %v602_v46 }
 0xca1   :  { %v605_v22 = vsub.f32 1.0, %v604_v60 }
 0xca3   :  { %v606_v23 = vmul.f32 %v3090_v15, %v605_v22 }
 0xcd1   :  { %v707_v6 = vpop.permute.xlu2 %706 }
 0xcd2   :  { %v717_v7 = vmul.f32 %v707_v6, %v3544_v42  ;;  %v615_v42 = vor.u32 1.1754944e-38, %v614_v25 }
 0xcd9   :  { %v735_v33 = vpop.permute.xlu2 %734 }
 0xcdf   :  { %v741_v47 = vpop.permute.xlu1 %740 }
 0xce1   :  { %v711_v49 = vpop.permute.xlu0 %710 }
 0xce2   :  { %v719_v58 = vmul.f32 %v711_v49, %v3540_v37  ;;  %v607_v37 = vadd.f32 %v3090_v15, %v606_v23 }
 0xce4   :  { %v3646_v3 = vadd.f32 %v741_v47, %v719_v58  ;;  %v611_v28 = vsel %vm610_vm4, %v3090_v15, %v607_v37 }
 0xce5   :  { %v616_v31 = vsel %vm613_vm5, %v615_v42, %v611_v28 }
 0xce6   :  { %790 = vmatpush.msra.mxu3 %v3646_v3  ;;  %v3657_v35 = vmul.f32 %v3619_v16, %v616_v31 }
 0xce7   :  { %v737_v8 = vpop.permute.xlu1 %736 }
 0xce8   :  { %v3650_v9 = vadd.f32 %v737_v8, %v717_v7 }
 0xcea   :  { %768 = vmatpush.msrb.mxu2 %v3650_v9 }
 0xcf9   :  { %v709_v24 = vpop.permute.xlu0 %708 }
 0xcfa   :  { %v718_v36 = vmul.f32 %v709_v24, %v3558_v5 }
 0xd01   :  { %v705_v29 = vpop.permute.xlu0 %704 }
 0xd02   :  { %v716_v30 = vmul.f32 %v705_v29, %v3548_v62  ;;  %v751_v62 = vrot.slane %v3657_v35, 1 }
 0xd04   :  { %v3654_v34 = vadd.f32 %v735_v33, %v716_v30 }
 0xd06   :  { %769 = vmatpush.msrb.mxu2 %v3654_v34 }
 0xd07   :  { %2963 = vmatmul.msk.f32.vlgmr.msrb.gmra.mxu2 %vm91_vm0, %v3657_v35 }
 0xd08   :  { %866 = vmatpush.msra.mxu2 %v3427_v10  ;;  %v3682_v10 = vpop.f32.mrf.mxu3 }
 0xd09   :  { %v739_v38 = vpop.permute.xlu0 %738 }
 0xd0a   :  { %v3664_v40 = vadd.f32 %v739_v38, %v718_v36  ;;  %867 = vmatpush.msra.mxu2 %v3429_v11 }
 0xd0c   :  { %791 = vmatpush.msra.mxu3 %v3664_v40  ;;  %868 = vmatpush.msra.mxu2 %v3432_v12 }
 0xd0d   :  { %2964 = vmatmul.msk.f32.vlgmr.msra.gmra.mxu3 %vm91_vm0, %v751_v62 }
 0xd0e   :  { %869 = vmatpush.msra.mxu2 %v3440_v17  ;;  %932 = vmatpush.msrb.mxu3 %v3474_v50 }
 0xd10   :  { %870 = vmatpush.msra.mxu2 %v3443_v18  ;;  %933 = vmatpush.msrb.mxu3 %v3476_v51 }
 0xd11   :  { %v851_v50 = vpop.permute.xlu0 %850 }
 0xd12   :  { %871 = vmatpush.msra.mxu2 %v3445_v19  ;;  %934 = vmatpush.msrb.mxu3 %v3479_v52  ;;  %v2967_v19 = vld [vmem:[%s4470_s0 + $0x4] sm:$0x3] }
 0xd14   :  { %872 = vmatpush.msra.mxu2 %v3448_v20  ;;  %935 = vmatpush.msrb.mxu3 %v3482_v53 }
 0xd16   :  { %1162 = vmatpush.msra.mxu3 %v3577_v2  ;;  %873 = vmatpush.msra.mxu2 %v3452_v21 }
 0xd18   :  { %1163 = vmatpush.msra.mxu3 %v3583_v0 }
 0xd8a   :  { %v771_v17 = vpop.f32.mrf.mxu2 }
 0xd90   :  { %v793_v11 = vpop.f32.mrf.mxu3 }
 0xd91   :  { %v798_v12 = vrot.slane %v793_v11, 7 }
 0xd93   :  { %v799_v18 = vsel %vm142_vm1, %v798_v12, %v771_v17 }
 0xd94   :  { %847 = vrot.lane.b32.xlu1 %v799_v18, %s3326_s2  ;;  %2965 = vmatmul.msk.f32.vlgmr.msrb.gmra.mxu1 %vm91_vm0, %v799_v18 }
 0xe06   :  { %v848_v20 = vpop.permute.xlu1 %847 }
 0xe07   :  { %v853_v21 = vsel %vm91_vm0, %v2967_v19, %v848_v20 }
 0xe08   :  { %v854_v51 = vsel %vm151_vm2, %v853_v21, %v851_v50 }
 0xe09   :  { %2968 = vmatmul.msk.f32.vlgmr.msra.gmra.mxu2 %vm156_vm3, %v854_v51 }
 0xe8c   :  { %v875_v52 = vpop.f32.mrf.mxu2 }
 0xe8d   :  { %v876_v53 = vadd.f32 %v3464_v27, %v875_v52 }
 0xe8f   :  { %3091 = vtanh.f32 %v876_v53  ;;  %v2969_v16 = vmul.f32 -1.442695, %v876_v53 }
 0xe91   :  { %3093 = vpow2.f32 %v2969_v16 }
 0xe95   :  { %v3092_v5 = vpop.eup %3091 }
 0xe96   :  { %900 = vrot.lane.b32.xlu2 %v3092_v5, %s3325_s25 }
 0xe97   :  { %v3094_v41 = vpop.eup %3093 }
 0xe98   :  { %v881_v55 = vadd.f32 1.0, %v3094_v41 }
 0xe9a   :  { %3095 = vrcp.f32 %v881_v55  ;;  %v893_v47 = vand.u32 2147483648, %v881_v55  ;;  %vm887_vm7 = vweird.f32 %v881_v55  ;;  %v891_v49 = vand.u32 2147483647, %v881_v55 }
 0xe9c   :  { %v894_v58 = vor.u32 1.1754944e-38, %v893_v47  ;;  %vm892_vm11 = vcmp.eq.f32.partialorder %v891_v49, 8.507059e+37 }
 0xea0   :  { %v3096_v43 = vpop.eup %3095 }
 0xea1   :  { %v883_v44 = vmul.f32 %v3096_v43, %v881_v55  ;;  %vm888_vm6 = vweird.f32 %v3096_v43 }
 0xea2   :  { %vm889_vm10 = vmor %vm887_vm7, %vm888_vm6 }
 0xea3   :  { %v884_v45 = vsub.f32 1.0, %v883_v44 }
 0xea5   :  { %v885_v1 = vmul.f32 %v3096_v43, %v884_v45 }
 0xea7   :  { %v886_v46 = vadd.f32 %v3096_v43, %v885_v1 }
 0xea9   :  { %v890_v27 = vsel %vm889_vm10, %v3096_v43, %v886_v46 }
 0xeaa   :  { %v895_v7 = vsel %vm892_vm11, %v894_v58, %v890_v27 }
 0xeab   :  { %v898_v15 = vmul.f32 %v895_v7, %v3601_v54 }
 0xef0   :  { %v901_v6 = vpop.permute.xlu2 %900 }
 0xef1   :  { %v903_v8 = vmul.f32 %v901_v6, %v895_v7 }
 0xef3   :  { %905 = vrot.lane.b32.xlu1 %v903_v8, %s3327_s29 }
 0xf65   :  { %v906_v60 = vpop.permute.xlu1 %905 }
 0xf66   :  { %v3697_v22 = vadd.f32 %v906_v60, %v898_v15 }
 0xf68   :  { %4500 = vst [vmem:[#allocation15_spill] sm:$0xff] %v3697_v22  ;;  %3097 = vtanh.f32 %v3697_v22 }
 0xf6e   :  { %v3098_v23 = vpop.eup %3097 }
 0xf6f   :  { %911 = vrot.lane.b32.xlu0 %v3098_v23, %s3325_s25 }
 0xfe1   :  { %v912_v24 = vpop.permute.xlu0 %911 }
 0xfe2   :  { %v3701_v37 = vmul.f32 %v912_v24, %v895_v7 }
 0xfe4   :  { %916 = vrot.lane.b32.xlu2 %v3701_v37, %s3327_s29 }
0x103e   :  { %v3705_v25 = vpop.permute.xlu2 %916 }
0x103f   :  { %4501 = vst [vmem:[#allocation16_spill] sm:$0xff] %v3705_v25  ;;  %2970 = vmatmul.msk.f32.vlgmr.msrb.gmra.mxu3 %vm151_vm2, %v3705_v25 }
0x10c2   :  { %v937_v26 = vpop.f32.mrf.mxu3 }
0x10c3   :  { %v3710_v28 = vadd.f32 %v3497_v57, %v937_v26 }
0x10c5   :  { %v940_v42 = vsel %vm245_vm8, %v3710_v28, -inf  ;;  %v2971_v41 = vmul.f32 -1.442695, %v3710_v28 }
0x10c6   :  { %941 = vmax.xlane.f32.xlu1 %v940_v42 }
0x1139   :  { %v942_v29 = vpop.xlane.xlu1 %941 }
0x113a   :  { %v943_v30 = vsub.f32 %v3710_v28, %v942_v29 }
0x113c   :  { %v944_v31 = vmul.f32 1.442695, %v943_v30 }
0x113e   :  { %3099 = vpow2.f32 %v944_v31 }
0x1144   :  { %v3715_v33 = vpop.eup %3099 }
0x1145   :  { %965 = vrot.lane.b32.xlu0 %v3715_v33, %s3328_s15  ;;  %v946_v57 = vsel %vm252_vm9, %v3715_v33, 0.0 }
0x11b7   :  { %v966_v36 = vpop.permute.xlu0 %965 }
0x11b8   :  { %v968_v38 = vsel %vm252_vm9, %v966_v36, 0.0 }
0x11b9   :  { %969 = vadd.xlane.f32.xlu2 %v968_v38 }
0x11c1   :  { %947 = vadd.xlane.f32.xlu2 %v946_v57 }
0x122c   :  { %v970_v62 = vpop.xlane.xlu2 %969 }
0x122d   :  { %3101 = vrcp.f32 %v970_v62  ;;  %v982_v18 = vand.u32 2147483648, %v970_v62  ;;  %v980_v20 = vand.u32 2147483647, %v970_v62  ;;  %vm976_vm13 = vweird.f32 %v970_v62 }
0x122e   :  { %3103 = vpow2.f32 %v2971_v41 }
0x122f   :  { %v983_v21 = vor.u32 1.1754944e-38, %v982_v18  ;;  %vm981_vm15 = vcmp.eq.f32.partialorder %v980_v20, 8.507059e+37 }
0x1233   :  { %v3102_v11 = vpop.eup %3101 }
0x1234   :  { %v972_v12 = vmul.f32 %v3102_v11, %v970_v62  ;;  %vm977_vm12 = vweird.f32 %v3102_v11  ;;  %v3104_v55 = vpop.eup %3103 }
0x1235   :  { %vm978_vm14 = vmor %vm976_vm13, %vm977_vm12  ;;  %v989_v43 = vadd.f32 1.0, %v3104_v55 }
0x1236   :  { %v973_v17 = vsub.f32 1.0, %v972_v12 }
0x1237   :  { %3105 = vrcp.f32 %v989_v43  ;;  %v1001_v49 = vand.u32 2147483648, %v989_v43  ;;  %vm995_vm5 = vweird.f32 %v989_v43  ;;  %v999_v27 = vand.u32 2147483647, %v989_v43 }
0x1238   :  { %v974_v19 = vmul.f32 %v3102_v11, %v973_v17  ;;  %3107 = vtanh.f32 %v3710_v28 }
0x1239   :  { %v1002_v7 = vor.u32 1.1754944e-38, %v1001_v49  ;;  %vm1000_vm7 = vcmp.eq.f32.partialorder %v999_v27, 8.507059e+37 }
0x123a   :  { %v975_v50 = vadd.f32 %v3102_v11, %v974_v19 }
0x123c   :  { %v979_v51 = vsel %vm978_vm14, %v3102_v11, %v975_v50 }
0x123d   :  { %v984_v52 = vsel %vm981_vm15, %v983_v21, %v979_v51  ;;  %v3106_v44 = vpop.eup %3105 }
0x123e   :  { %v3723_v53 = vmul.f32 %v3715_v33, %v984_v52  ;;  %v991_v45 = vmul.f32 %v3106_v44, %v989_v43  ;;  %vm996_vm4 = vweird.f32 %v3106_v44  ;;  %v3108_v58 = vpop.eup %3107  ;;  %v948_v52 = vpop.xlane.xlu2 %947 }
0x123f   :  { %vm997_vm6 = vmor %vm995_vm5, %vm996_vm4  ;;  %v1067_v8 = vrot.slane %v3108_v58, 1  ;;  %v1068_v17 = vperm.slane %v3108_v58, 0  ;;  %3109 = vrcp.f32 %v948_v52  ;;  %vm954_vm11 = vweird.f32 %v948_v52 }
0x1240   :  { %v1019_v5 = vperm.slane %v3723_v53, 1  ;;  %v1006_v16 = vperm.slane %v3723_v53, 0  ;;  %v992_v1 = vsub.f32 1.0, %v991_v45 }
0x1241   :  { %v1069_v23 = vperm.slane %v1067_v8, 0 }
0x1242   :  { %1030 = vperm.xlu0 %3036, %v1019_v5   ;;  %1011 = vperm.xlu1 %3035, %v1006_v16   ;;  %v993_v46 = vmul.f32 %v3106_v44, %v992_v1 }
0x1244   :  { %v994_v47 = vadd.f32 %v3106_v44, %v993_v46 }
0x1246   :  { %v998_v6 = vsel %vm997_vm6, %v3106_v44, %v994_v47  ;;  %v960_v47 = vand.u32 2147483648, %v948_v52 }
0x1247   :  { %v1003_v15 = vsel %vm1000_vm7, %v1002_v7, %v998_v6 }
0x1248   :  { %v1033_v60 = vrot.slane %v1003_v15, 1  ;;  %v1034_v24 = vperm.slane %v1003_v15, 0  ;;  %v961_v58 = vor.u32 1.1754944e-38, %v960_v47 }
0x124a   :  { %1017 = vperm.xlu0 %3036, %v1006_v16   ;;  %3038 = vset.pattern.permute.xlu1 %v3512_v13  ;;  %v1035_v31 = vperm.slane %v1033_v60, 0  ;;  %v3110_v16 = vpop.eup %3109 }
0x124b   :  { %v950_v41 = vmul.f32 %v3110_v16, %v948_v52  ;;  %vm955_vm10 = vweird.f32 %v3110_v16 }
0x124c   :  { %vm956_vm12 = vmor %vm954_vm11, %vm955_vm10 }
0x124d   :  { %v951_v55 = vsub.f32 1.0, %v950_v41 }
0x124f   :  { %v952_v1 = vmul.f32 %v3110_v16, %v951_v55 }
0x1251   :  { %v953_v46 = vadd.f32 %v3110_v16, %v952_v1 }
0x1252   :  { %3037 = vset.pattern.permute.xlu0 %v3514_v14 }
0x1253   :  { %v957_v49 = vsel %vm956_vm12, %v3110_v16, %v953_v46 }
0x125a   :  { %1024 = vperm.xlu0 %3037, %v1019_v5  }
0x1262   :  { %3044 = vset.pattern.permute.xlu0 %v3512_v13 }
0x12b4   :  { %v1031_v26 = vpop.permute.xlu0 %1030  ;;  %v1012_v42 = vpop.permute.xlu1 %1011 }
0x12b5   :  { %v1075_v29 = vmul.f32 %v1069_v23, %v1031_v26  ;;  %v1038_v30 = vmul.f32 %v1034_v24, %v1012_v42  ;;  %v1041_v38 = vmul.f32 %v1035_v31, %v1031_v26  ;;  %v1072_v18 = vmul.f32 %v1068_v17, %v1012_v42 }
0x12b7   :  { %1086 = vrot.lane.b32.xlu0 %v1075_v29, %s3328_s15  ;;  %v1042_v36 = vsub.f32 1.0, %v1038_v30  ;;  %v1045_v11 = vsub.f32 1.0, %v1041_v38  ;;  %v3757_v29 = vld [vmem:[#allocation5 + $0x18] sm:$0xff]  ;;  %v3768_v38 = vld [vmem:[#allocation5 + $0x8] sm:$0xff] }
0x12b9   :  { %1050 = vrot.lane.b32.xlu1 %v1042_v36, %s3328_s15 }
0x12bc   :  { %v1018_v57 = vpop.permute.xlu0 %1017 }
0x12bd   :  { %v1039_v62 = vmul.f32 %v1034_v24, %v1018_v57  ;;  %v1073_v51 = vmul.f32 %v1068_v17, %v1018_v57  ;;  %v3782_v57 = vld [vmem:[#allocation2 + $0x30] sm:$0xff]  ;;  %v3800_v17 = vld [vmem:[#allocation2] sm:$0xff] }
0x12bf   :  { %1056 = vrot.lane.b32.xlu0 %v1045_v11, %s3328_s15  ;;  %v1043_v12 = vsub.f32 1.0, %v1039_v62  ;;  %v3785_v62 = vld [vmem:[#allocation2 + $0x28] sm:$0xff]  ;;  %v3788_v11 = vld [vmem:[#allocation2 + $0x20] sm:$0xff] }
0x12c1   :  { %1052 = vrot.lane.b32.xlu2 %v1043_v12, %s3328_s15  ;;  %v3791_v12 = vld [vmem:[#allocation2 + $0x18] sm:$0xff] }
0x12c9   :  { %1080 = vrot.lane.b32.xlu2 %v1072_v18, %s3328_s15  ;;  %v3803_v18 = vpop.f32.mrf.mxu1 }
0x12cc   :  { %v1025_v19 = vpop.permute.xlu0 %1024 }
0x12cd   :  { %v1040_v20 = vmul.f32 %v1035_v31, %v1025_v19  ;;  %v1074_v50 = vmul.f32 %v1069_v23, %v1025_v19 }
0x12cf   :  { %1084 = vrot.lane.b32.xlu1 %v1074_v50, %s3328_s15  ;;  %v1044_v21 = vsub.f32 1.0, %v1040_v20 }
0x12d1   :  { %1054 = vrot.lane.b32.xlu0 %v1044_v21, %s3328_s15 }
0x12d7   :  { %1196 = vrot.lane.b32.xlu1 %v3701_v37, %s3325_s25  ;;  %v958_v37 = vand.u32 2147483647, %v948_v52 }
0x12d9   :  { %1082 = vrot.lane.b32.xlu0 %v1073_v51, %s3328_s15  ;;  %vm959_vm13 = vcmp.eq.f32.partialorder %v958_v37, 8.507059e+37  ;;  %v2976_v51 = vld [vmem:[%s4470_s0 + $0x6] sm:$0x3] }
0x12da   :  { %v962_v6 = vsel %vm959_vm13, %v961_v58, %v957_v49 }
0x12db   :  { %v3747_v7 = vmul.f32 %v3715_v33, %v962_v6 }
0x12dd   :  { %v1097_v24 = vrot.slane %v3747_v7, 1 }
0x1329   :  { %v1087_v5 = vpop.permute.xlu0 %1086 }
0x132b   :  { %v1051_v27 = vpop.permute.xlu1 %1050 }
0x132c   :  { %v1062_v42 = vmul.f32 %v1051_v27, %v3654_v34  ;;  %v3778_v34 = vld [vmem:[#allocation2 + $0x38] sm:$0xff] }
0x1331   :  { %v1057_v43 = vpop.permute.xlu0 %1056 }
0x1332   :  { %v1065_v44 = vmul.f32 %v1057_v43, %v3646_v3  ;;  %v1053_v3 = vpop.permute.xlu2 %1052  ;;  %v3817_v43 = vld [vmem:[%s4474_s4] ss:$0 sm:$0xff] }
0x1333   :  { %v1063_v26 = vmul.f32 %v1053_v3, %v3650_v9  ;;  %v3772_v9 = vld [vmem:[#allocation5] sm:$0xff] }
0x1334   :  { %v3743_v45 = vadd.f32 %v1087_v5, %v1065_v44 }
0x1336   :  { %1136 = vmatpush.msra.mxu1 %v3743_v45 }
0x133a   :  { %v1081_v31 = vpop.permute.xlu2 %1080 }
0x133b   :  { %v3765_v36 = vadd.f32 %v1081_v31, %v1062_v42 }
0x1341   :  { %v1085_v60 = vpop.permute.xlu1 %1084 }
0x1343   :  { %v1055_v8 = vpop.permute.xlu0 %1054 }
0x1344   :  { %v1064_v15 = vmul.f32 %v1055_v8, %v3664_v40  ;;  %v3762_v40 = vld [vmem:[#allocation5 + $0x10] sm:$0xff] }
0x1346   :  { %v3750_v23 = vadd.f32 %v1085_v60, %v1064_v15 }
0x1348   :  { %1137 = vmatpush.msra.mxu1 %v3750_v23 }
0x1349   :  { %2973 = vmatmul.msk.f32.vlgmr.msra.gmra.mxu1 %vm91_vm0, %v1097_v24  ;;  %v1197_v5 = vpop.permute.xlu1 %1196 }
0x134a   :  { %1278 = vmatpush.msrb.mxu1 %v3757_v29 }
0x134b   :  { %v1083_v33 = vpop.permute.xlu0 %1082 }
0x134c   :  { %v3760_v30 = vadd.f32 %v1083_v33, %v1063_v26  ;;  %1279 = vmatpush.msrb.mxu1 %v3762_v40 }
0x134e   :  { %1114 = vmatpush.msrb.mxu0 %v3760_v30  ;;  %1280 = vmatpush.msrb.mxu1 %v3768_v38 }
0x1350   :  { %1115 = vmatpush.msrb.mxu0 %v3765_v36  ;;  %1281 = vmatpush.msrb.mxu1 %v3772_v9 }
0x1351   :  { %2972 = vmatmul.msk.f32.vlgmr.msrb.gmra.mxu0 %vm91_vm0, %v3747_v7 }
0x1352   :  { %1508 = vmatpush.msra.mxu1 %v3577_v2  ;;  %1212 = vmatpush.msra.mxu0 %v3778_v34  ;;  %v3794_v2 = vld [vmem:[#allocation2 + $0x10] sm:$0xff] }
0x1354   :  { %1509 = vmatpush.msra.mxu1 %v3583_v0  ;;  %1213 = vmatpush.msra.mxu0 %v3782_v57  ;;  %v3797_v0 = vld [vmem:[#allocation2 + $0x8] sm:$0xff] }
0x1356   :  { %1214 = vmatpush.msra.mxu0 %v3785_v62 }
0x1358   :  { %1215 = vmatpush.msra.mxu0 %v3788_v11 }
0x135a   :  { %1216 = vmatpush.msra.mxu0 %v3791_v12 }
0x135c   :  { %1217 = vmatpush.msra.mxu0 %v3794_v2 }
0x135e   :  { %1218 = vmatpush.msra.mxu0 %v3797_v0 }
0x1360   :  { %1219 = vmatpush.msra.mxu0 %v3800_v17 }
0x13c6   :  { %v1139_v19 = vpop.f32.mrf.mxu1 }
0x13c7   :  { %v1144_v20 = vrot.slane %v1139_v19, 7 }
0x13ce   :  { %v1117_v50 = vpop.f32.mrf.mxu0 }
0x13cf   :  { %v1145_v21 = vsel %vm142_vm1, %v1144_v20, %v1117_v50 }
0x13d0   :  { %1193 = vrot.lane.b32.xlu0 %v1145_v21, %s3326_s2  ;;  %2974 = vmatmul.msk.f32.vlgmr.msra.gmra.mxu3 %vm91_vm0, %v1145_v21 }
0x1442   :  { %v1194_v52 = vpop.permute.xlu0 %1193 }
0x1443   :  { %v1199_v16 = vsel %vm91_vm0, %v2976_v51, %v1194_v52 }
0x1444   :  { %v1200_v41 = vsel %vm151_vm2, %v1199_v16, %v1197_v5  ;;  %v3838_v16 = vld [vmem:[%s4477_s7] ss:$0 sm:$0xff] }
0x1445   :  { %2977 = vmatmul.msk.f32.vlgmr.msra.gmra.mxu0 %vm156_vm3, %v1200_v41 }
0x14c2   :  { %v1221_v55 = vpop.f32.mrf.mxu0 }
0x14c3   :  { %v1222_v44 = vadd.f32 %v3817_v43, %v1221_v55 }
0x14c5   :  { %3111 = vtanh.f32 %v1222_v44  ;;  %v2978_v46 = vmul.f32 -1.442695, %v1222_v44 }
0x14c7   :  { %3113 = vpow2.f32 %v2978_v46 }
0x14cb   :  { %v3112_v1 = vpop.eup %3111 }
0x14cc   :  { %1246 = vrot.lane.b32.xlu2 %v3112_v1, %s3325_s25 }
0x14cd   :  { %v3114_v47 = vpop.eup %3113 }
0x14ce   :  { %v1227_v37 = vadd.f32 1.0, %v3114_v47 }
0x14d0   :  { %3115 = vrcp.f32 %v1227_v37  ;;  %v1239_v8 = vand.u32 2147483648, %v1227_v37  ;;  %vm1233_vm15 = vweird.f32 %v1227_v37  ;;  %v1237_v15 = vand.u32 2147483647, %v1227_v37 }
0x14d2   :  { %v1240_v24 = vor.u32 1.1754944e-38, %v1239_v8  ;;  %vm1238_vm5 = vcmp.eq.f32.partialorder %v1237_v15, 8.507059e+37 }
0x14d6   :  { %v3116_v49 = vpop.eup %3115 }
0x14d7   :  { %v1229_v27 = vmul.f32 %v3116_v49, %v1227_v37  ;;  %vm1234_vm14 = vweird.f32 %v3116_v49 }
0x14d8   :  { %vm1235_vm4 = vmor %vm1233_vm15, %vm1234_vm14 }
0x14d9   :  { %v1230_v58 = vsub.f32 1.0, %v1229_v27 }
0x14db   :  { %v1231_v6 = vmul.f32 %v3116_v49, %v1230_v58 }
0x14dd   :  { %v1232_v3 = vadd.f32 %v3116_v49, %v1231_v6 }
0x14df   :  { %v1236_v60 = vsel %vm1235_vm4, %v3116_v49, %v1232_v3 }
0x14e0   :  { %v1241_v42 = vsel %vm1238_vm5, %v1240_v24, %v1236_v60 }
0x14e1   :  { %v1244_v31 = vmul.f32 %v1241_v42, %v3697_v22 }
0x1526   :  { %v1247_v26 = vpop.permute.xlu2 %1246 }
0x1527   :  { %v1249_v33 = vmul.f32 %v1247_v26, %v1241_v42 }
0x1529   :  { %1251 = vrot.lane.b32.xlu0 %v1249_v33, %s3327_s29 }
0x159b   :  { %v1252_v19 = vpop.permute.xlu0 %1251 }
0x159c   :  { %v3823_v20 = vadd.f32 %v1252_v19, %v1244_v31 }
0x159e   :  { %4502 = vst [vmem:[#allocation17_spill] sm:$0xff] %v3823_v20  ;;  %3117 = vtanh.f32 %v3823_v20 }
0x15a4   :  { %v3118_v50 = vpop.eup %3117 }
0x15a5   :  { %1257 = vrot.lane.b32.xlu1 %v3118_v50, %s3325_s25 }
0x1617   :  { %v1258_v21 = vpop.permute.xlu1 %1257 }
0x1618   :  { %v3827_v51 = vmul.f32 %v1258_v21, %v1241_v42 }
0x161a   :  { %1262 = vrot.lane.b32.xlu2 %v3827_v51, %s3327_s29 }
0x1674   :  { %v3831_v52 = vpop.permute.xlu2 %1262 }
0x1675   :  { %4503 = vst [vmem:[#allocation18_spill] sm:$0xff] %v3831_v52  ;;  %2979 = vmatmul.msk.f32.vlgmr.msrb.gmra.mxu1 %vm151_vm2, %v3831_v52 }
0x16f2   :  { %v1283_v5 = vpop.f32.mrf.mxu1 }
0x16f3   :  { %v3841_v41 = vadd.f32 %v3838_v16, %v1283_v5 }
0x16f5   :  { %v1286_v55 = vsel %vm245_vm8, %v3841_v41, -inf  ;;  %v2980_v21 = vmul.f32 -1.442695, %v3841_v41 }
0x16f6   :  { %1287 = vmax.xlane.f32.xlu0 %v1286_v55 }
0x1769   :  { %v1288_v44 = vpop.xlane.xlu0 %1287 }
0x176a   :  { %v1289_v1 = vsub.f32 %v3841_v41, %v1288_v44 }
0x176c   :  { %v1290_v46 = vmul.f32 1.442695, %v1289_v1 }
0x176e   :  { %3119 = vpow2.f32 %v1290_v46 }
0x1774   :  { %v3846_v47 = vpop.eup %3119 }
0x1775   :  { %1311 = vrot.lane.b32.xlu1 %v3846_v47, %s3328_s15  ;;  %v1292_v55 = vsel %vm252_vm9, %v3846_v47, 0.0 }
0x17e7   :  { %v1312_v37 = vpop.permute.xlu1 %1311 }
0x17e8   :  { %v1314_v49 = vsel %vm252_vm9, %v1312_v37, 0.0 }
0x17e9   :  { %1315 = vadd.xlane.f32.xlu2 %v1314_v49 }
0x185c   :  { %v1316_v27 = vpop.xlane.xlu2 %1315 }
0x185d   :  { %3121 = vrcp.f32 %v1316_v27  ;;  %v1328_v8 = vand.u32 2147483648, %v1316_v27  ;;  %v1326_v60 = vand.u32 2147483647, %v1316_v27  ;;  %vm1322_vm7 = vweird.f32 %v1316_v27 }
0x185e   :  { %3123 = vpow2.f32 %v2980_v21 }
0x185f   :  { %v1329_v26 = vor.u32 1.1754944e-38, %v1328_v8  ;;  %vm1327_vm11 = vcmp.eq.f32.partialorder %v1326_v60, 8.507059e+37 }
0x1863   :  { %v3122_v58 = vpop.eup %3121 }
0x1864   :  { %v1318_v6 = vmul.f32 %v3122_v58, %v1316_v27  ;;  %vm1323_vm6 = vweird.f32 %v3122_v58  ;;  %v3124_v5 = vpop.eup %3123 }
0x1865   :  { %vm1324_vm10 = vmor %vm1322_vm7, %vm1323_vm6  ;;  %v1335_v44 = vadd.f32 1.0, %v3124_v5 }
0x1866   :  { %v1319_v3 = vsub.f32 1.0, %v1318_v6 }
0x1867   :  { %3125 = vrcp.f32 %v1335_v44  ;;  %vm1341_vm13 = vweird.f32 %v1335_v44  ;;  %v1345_v6 = vand.u32 2147483647, %v1335_v44 }
0x1868   :  { %v1320_v15 = vmul.f32 %v3122_v58, %v1319_v3  ;;  %3127 = vtanh.f32 %v3841_v41 }
0x1869   :  { %vm1346_vm15 = vcmp.eq.f32.partialorder %v1345_v6, 8.507059e+37 }
0x186a   :  { %v1321_v24 = vadd.f32 %v3122_v58, %v1320_v15 }
0x186c   :  { %v1325_v42 = vsel %vm1324_vm10, %v3122_v58, %v1321_v24  ;;  %v1347_v58 = vand.u32 2147483648, %v1335_v44 }
0x186d   :  { %v1330_v33 = vsel %vm1327_vm11, %v1329_v26, %v1325_v42  ;;  %v3126_v1 = vpop.eup %3125 }
0x186e   :  { %v3852_v31 = vmul.f32 %v3846_v47, %v1330_v33  ;;  %v1337_v46 = vmul.f32 %v3126_v1, %v1335_v44  ;;  %vm1342_vm12 = vweird.f32 %v3126_v1  ;;  %v1348_v8 = vor.u32 1.1754944e-38, %v1347_v58  ;;  %v3128_v15 = vpop.eup %3127 }
0x186f   :  { %vm1343_vm14 = vmor %vm1341_vm13, %vm1342_vm12  ;;  %v1413_v26 = vrot.slane %v3128_v15, 1 }
0x1870   :  { %4504 = vst [vmem:[#allocation19_spill] sm:$0xff] %v3852_v31  ;;  %v1365_v19 = vperm.slane %v3852_v31, 1  ;;  %v1352_v50 = vperm.slane %v3852_v31, 0  ;;  %v1338_v37 = vsub.f32 1.0, %v1337_v46 }
0x1871   :  { %v1415_v33 = vperm.slane %v1413_v26, 0 }
0x1872   :  { %1376 = vperm.xlu1 %3038, %v1365_v19   ;;  %v1339_v49 = vmul.f32 %v3126_v1, %v1338_v37  ;;  %v1414_v37 = vperm.slane %v3128_v15, 0 }
0x1874   :  { %v1340_v27 = vadd.f32 %v3126_v1, %v1339_v49 }
0x1876   :  { %v1344_v3 = vsel %vm1343_vm14, %v3126_v1, %v1340_v27 }
0x1877   :  { %v1349_v60 = vsel %vm1346_vm15, %v1348_v8, %v1344_v3 }
0x1878   :  { %v1379_v24 = vrot.slane %v1349_v60, 1 }
0x187a   :  { %1363 = vperm.xlu1 %3038, %v1352_v50   ;;  %v1381_v42 = vperm.slane %v1379_v24, 0 }
0x1882   :  { %3039 = vset.pattern.permute.xlu1 %v3514_v14 }
0x188a   :  { %1370 = vperm.xlu1 %3039, %v1365_v19  }
0x1892   :  { %1357 = vperm.xlu1 %3039, %v1352_v50  }
0x189a   :  { %3042 = vset.pattern.permute.xlu1 %v3512_v13 }
0x18bc   :  { %1293 = vadd.xlane.f32.xlu1 %v1292_v55  ;;  %v1380_v55 = vperm.slane %v1349_v60, 0 }
0x18e4   :  { %v1377_v19 = vpop.permute.xlu1 %1376 }
0x18e5   :  { %v1387_v50 = vmul.f32 %v1381_v42, %v1377_v19  ;;  %v1421_v21 = vmul.f32 %v1415_v33, %v1377_v19 }
0x18e7   :  { %v1391_v5 = vsub.f32 1.0, %v1387_v50  ;;  %1432 = vrot.lane.b32.xlu2 %v1421_v21, %s3328_s15 }
0x18e9   :  { %1402 = vrot.lane.b32.xlu0 %v1391_v5, %s3328_s15 }
0x18ec   :  { %v1364_v44 = vpop.permute.xlu1 %1363 }
0x18ed   :  { %v1385_v46 = vmul.f32 %v1380_v55, %v1364_v44  ;;  %v1419_v49 = vmul.f32 %v1414_v37, %v1364_v44 }
0x18ef   :  { %v1389_v1 = vsub.f32 1.0, %v1385_v46 }
0x18f1   :  { %1398 = vrot.lane.b32.xlu2 %v1389_v1, %s3328_s15 }
0x18f9   :  { %1428 = vrot.lane.b32.xlu2 %v1419_v49, %s3328_s15 }
0x18fc   :  { %v1371_v27 = vpop.permute.xlu1 %1370 }
0x18fd   :  { %v1386_v58 = vmul.f32 %v1381_v42, %v1371_v27  ;;  %v1420_v60 = vmul.f32 %v1415_v33, %v1371_v27 }
0x18ff   :  { %v1390_v6 = vsub.f32 1.0, %v1386_v58 }
0x1901   :  { %1400 = vrot.lane.b32.xlu0 %v1390_v6, %s3328_s15 }
0x1904   :  { %v1358_v3 = vpop.permute.xlu1 %1357 }
0x1905   :  { %v1384_v8 = vmul.f32 %v1380_v55, %v1358_v3  ;;  %v1418_v24 = vmul.f32 %v1414_v37, %v1358_v3 }
0x1907   :  { %v1388_v26 = vsub.f32 1.0, %v1384_v8  ;;  %1426 = vrot.lane.b32.xlu1 %v1418_v24, %s3328_s15 }
0x1909   :  { %1396 = vrot.lane.b32.xlu0 %v1388_v26, %s3328_s15 }
0x1911   :  { %1430 = vrot.lane.b32.xlu0 %v1420_v60, %s3328_s15 }
0x1919   :  { %1542 = vrot.lane.b32.xlu0 %v3827_v51, %s3325_s25 }
0x192f   :  { %v1294_v44 = vpop.xlane.xlu1 %1293 }
0x1930   :  { %3129 = vrcp.f32 %v1294_v44  ;;  %v1306_v27 = vand.u32 2147483648, %v1294_v44  ;;  %vm1300_vm5 = vweird.f32 %v1294_v44  ;;  %v1304_v58 = vand.u32 2147483647, %v1294_v44 }
0x1932   :  { %v1307_v3 = vor.u32 1.1754944e-38, %v1306_v27  ;;  %vm1305_vm7 = vcmp.eq.f32.partialorder %v1304_v58, 8.507059e+37 }
0x1936   :  { %v3130_v33 = vpop.eup %3129 }
0x1937   :  { %v1296_v51 = vmul.f32 %v3130_v33, %v1294_v44  ;;  %vm1301_vm4 = vweird.f32 %v3130_v33 }
0x1938   :  { %vm1302_vm6 = vmor %vm1300_vm5, %vm1301_vm4 }
0x1939   :  { %v1297_v1 = vsub.f32 1.0, %v1296_v51 }
0x193b   :  { %v1298_v37 = vmul.f32 %v3130_v33, %v1297_v1  ;;  %v2985_v1 = vld [vmem:[%s4470_s0 + $0x8] sm:$0x3] }
0x1941   :  { %v1433_v15 = vpop.permute.xlu2 %1432 }
0x194b   :  { %v1399_v19 = vpop.permute.xlu2 %1398 }
0x194c   :  { %v1409_v42 = vmul.f32 %v1399_v19, %v3760_v30  ;;  %v1299_v30 = vadd.f32 %v3130_v33, %v1298_v37 }
0x194e   :  { %v1303_v6 = vsel %vm1302_vm6, %v3130_v33, %v1299_v30 }
0x194f   :  { %v1308_v8 = vsel %vm1305_vm7, %v1307_v3, %v1303_v6 }
0x1953   :  { %v1429_v50 = vpop.permute.xlu2 %1428 }
0x1954   :  { %v3873_v21 = vadd.f32 %v1429_v50, %v1409_v42 }
0x1956   :  { %1460 = vmatpush.msrb.mxu2 %v3873_v21 }
0x195b   :  { %v1403_v5 = vpop.permute.xlu0 %1402 }
0x195c   :  { %v1411_v55 = vmul.f32 %v1403_v5, %v3743_v45  ;;  %v3919_v5 = vpop.f32.mrf.mxu3 }
0x195e   :  { %v3877_v46 = vadd.f32 %v1433_v15, %v1411_v55  ;;  %v3884_v15 = vmul.f32 %v3846_v47, %v1308_v8  ;;  %v3916_v47 = vld [vmem:[%s4476_s6] sm:$0xff] }
0x1960   :  { %1482 = vmatpush.msrb.mxu3 %v3877_v46 }
0x1973   :  { %v1401_v49 = vpop.permute.xlu0 %1400 }
0x1974   :  { %v1410_v19 = vmul.f32 %v1401_v49, %v3750_v23  ;;  %v3909_v23 = vld [vmem:[%s4476_s6 + $0x8] sm:$0xff] }
0x1979   :  { %v1427_v26 = vpop.permute.xlu1 %1426 }
0x197b   :  { %v1397_v45 = vpop.permute.xlu0 %1396 }
0x197c   :  { %v1408_v24 = vmul.f32 %v1397_v45, %v3765_v36  ;;  %v1443_v36 = vrot.slane %v3884_v15, 1 }
0x197e   :  { %v3881_v60 = vadd.f32 %v1427_v26, %v1408_v24 }
0x1980   :  { %1461 = vmatpush.msrb.mxu2 %v3881_v60 }
0x1981   :  { %2981 = vmatmul.msk.f32.vlgmr.msrb.gmra.mxu2 %vm91_vm0, %v3884_v15 }
0x1982   :  { %1558 = vmatpush.msra.mxu2 %v3778_v34 }
0x1983   :  { %v1431_v42 = vpop.permute.xlu0 %1430 }
0x1984   :  { %v3891_v50 = vadd.f32 %v1431_v42, %v1410_v19  ;;  %1559 = vmatpush.msra.mxu2 %v3782_v57 }
0x1986   :  { %1483 = vmatpush.msrb.mxu3 %v3891_v50  ;;  %1560 = vmatpush.msra.mxu2 %v3785_v62 }
0x1987   :  { %2982 = vmatmul.msk.f32.vlgmr.msrb.gmra.mxu3 %vm91_vm0, %v1443_v36 }
0x1988   :  { %1561 = vmatpush.msra.mxu2 %v3788_v11  ;;  %1624 = vmatpush.msra.mxu3 %v3757_v29 }
0x198a   :  { %1562 = vmatpush.msra.mxu2 %v3791_v12  ;;  %1625 = vmatpush.msra.mxu3 %v3762_v40 }
0x198b   :  { %v1543_v49 = vpop.permute.xlu0 %1542 }
0x198c   :  { %1563 = vmatpush.msra.mxu2 %v3794_v2  ;;  %1626 = vmatpush.msra.mxu3 %v3768_v38 }
0x198e   :  { %1564 = vmatpush.msra.mxu2 %v3797_v0  ;;  %1627 = vmatpush.msra.mxu3 %v3772_v9 }
0x1990   :  { %1854 = vmatpush.msrb.mxu3 %v3909_v23  ;;  %1565 = vmatpush.msra.mxu2 %v3800_v17 }
0x1992   :  { %1855 = vmatpush.msrb.mxu3 %v3916_v47 }
0x1a04   :  { %v1463_v33 = vpop.f32.mrf.mxu2 }
0x1a0a   :  { %v1485_v55 = vpop.f32.mrf.mxu3 }
0x1a0b   :  { %v1490_v44 = vrot.slane %v1485_v55, 7 }
0x1a0d   :  { %v1491_v51 = vsel %vm142_vm1, %v1490_v44, %v1463_v33 }
0x1a0e   :  { %1539 = vrot.lane.b32.xlu2 %v1491_v51, %s3326_s2  ;;  %2983 = vmatmul.msk.f32.vlgmr.msra.gmra.mxu1 %vm91_vm0, %v1491_v51 }
0x1a68   :  { %v1540_v37 = vpop.permute.xlu2 %1539 }
0x1a69   :  { %v1545_v30 = vsel %vm91_vm0, %v2985_v1, %v1540_v37 }
0x1a6a   :  { %v1546_v27 = vsel %vm151_vm2, %v1545_v30, %v1543_v49 }
0x1a6b   :  { %2986 = vmatmul.msk.f32.vlgmr.msra.gmra.mxu2 %vm156_vm3, %v1546_v27 }
0x1aee   :  { %v1567_v58 = vpop.f32.mrf.mxu2 }
0x1aef   :  { %v1568_v6 = vadd.f32 %v3817_v43, %v1567_v58 }
0x1af1   :  { %3131 = vtanh.f32 %v1568_v6  ;;  %v2987_v45 = vmul.f32 -1.442695, %v1568_v6 }
0x1af3   :  { %3133 = vpow2.f32 %v2987_v45 }
0x1af7   :  { %v3132_v3 = vpop.eup %3131 }
0x1af8   :  { %1592 = vrot.lane.b32.xlu2 %v3132_v3, %s3325_s25 }
0x1af9   :  { %v3134_v8 = vpop.eup %3133 }
0x1afa   :  { %v1573_v24 = vadd.f32 1.0, %v3134_v8 }
0x1afc   :  { %3135 = vrcp.f32 %v1573_v24  ;;  %v1585_v44 = vand.u32 2147483648, %v1573_v24  ;;  %vm1579_vm11 = vweird.f32 %v1573_v24  ;;  %v1583_v33 = vand.u32 2147483647, %v1573_v24 }
0x1afe   :  { %v1586_v1 = vor.u32 1.1754944e-38, %v1585_v44  ;;  %vm1584_vm13 = vcmp.eq.f32.partialorder %v1583_v33, 8.507059e+37 }
0x1b02   :  { %v3136_v26 = vpop.eup %3135 }
0x1b03   :  { %v1575_v19 = vmul.f32 %v3136_v26, %v1573_v24  ;;  %vm1580_vm10 = vweird.f32 %v3136_v26 }
0x1b04   :  { %vm1581_vm12 = vmor %vm1579_vm11, %vm1580_vm10 }
0x1b05   :  { %v1576_v42 = vsub.f32 1.0, %v1575_v19 }
0x1b07   :  { %v1577_v36 = vmul.f32 %v3136_v26, %v1576_v42 }
0x1b09   :  { %v1578_v55 = vadd.f32 %v3136_v26, %v1577_v36 }
0x1b0b   :  { %v1582_v51 = vsel %vm1581_vm12, %v3136_v26, %v1578_v55 }
0x1b0c   :  { %v1587_v49 = vsel %vm1584_vm13, %v1586_v1, %v1582_v51 }
0x1b0d   :  { %v1590_v27 = vmul.f32 %v1587_v49, %v3823_v20 }
0x1b52   :  { %v1593_v37 = vpop.permute.xlu2 %1592 }
0x1b53   :  { %v1595_v30 = vmul.f32 %v1593_v37, %v1587_v49 }
0x1b55   :  { %1597 = vrot.lane.b32.xlu0 %v1595_v30, %s3327_s29 }
0x1bc7   :  { %v1598_v58 = vpop.permute.xlu0 %1597 }
0x1bc8   :  { %v3934_v6 = vadd.f32 %v1598_v58, %v1590_v27 }
0x1bca   :  { %4505 = vst [vmem:[#allocation20_spill] sm:$0xff] %v3934_v6  ;;  %3137 = vtanh.f32 %v3934_v6 }
0x1bd0   :  { %v3138_v3 = vpop.eup %3137 }
0x1bd1   :  { %1603 = vrot.lane.b32.xlu2 %v3138_v3, %s3325_s25 }
0x1c2b   :  { %v1604_v45 = vpop.permute.xlu2 %1603 }
0x1c2c   :  { %v3938_v8 = vmul.f32 %v1604_v45, %v1587_v49 }
0x1c2e   :  { %1608 = vrot.lane.b32.xlu0 %v3938_v8, %s3327_s29 }
0x1ca0   :  { %v3942_v24 = vpop.permute.xlu0 %1608 }
0x1ca1   :  { %4506 = vst [vmem:[#allocation21_spill] sm:$0xff] %v3942_v24  ;;  %2988 = vmatmul.msk.f32.vlgmr.msra.gmra.mxu3 %vm151_vm2, %v3942_v24 }
0x1d24   :  { %v1629_v26 = vpop.f32.mrf.mxu3 }
0x1d25   :  { %v3947_v19 = vadd.f32 %v3838_v16, %v1629_v26 }
0x1d27   :  { %4507 = vst [vmem:[#allocation22_spill] sm:$0xff] %v3947_v19  ;;  %v1632_v42 = vsel %vm245_vm8, %v3947_v19, -inf }
0x1d28   :  { %1633 = vmax.xlane.f32.xlu1 %v1632_v42 }
0x1d9b   :  { %v1634_v36 = vpop.xlane.xlu1 %1633 }
0x1d9c   :  { %v1635_v55 = vsub.f32 %v3947_v19, %v1634_v36 }
0x1d9e   :  { %v1636_v44 = vmul.f32 1.442695, %v1635_v55 }
0x1da0   :  { %3139 = vpow2.f32 %v1636_v44 }
0x1da6   :  { %v3952_v33 = vpop.eup %3139 }
0x1da7   :  { %1657 = vrot.lane.b32.xlu2 %v3952_v33, %s3328_s15 }
0x1e01   :  { %v1658_v51 = vpop.permute.xlu2 %1657 }
0x1e02   :  { %v1660_v1 = vsel %vm252_vm9, %v1658_v51, 0.0 }
0x1e03   :  { %1661 = vadd.xlane.f32.xlu0 %v1660_v1 }
0x1e76   :  { %v1662_v37 = vpop.xlane.xlu0 %1661 }
0x1e77   :  { %3141 = vrcp.f32 %v1662_v37  ;;  %v1674_v58 = vand.u32 2147483648, %v1662_v37  ;;  %v1672_v45 = vand.u32 2147483647, %v1662_v37  ;;  %vm1668_vm15 = vweird.f32 %v1662_v37 }
0x1e79   :  { %v1675_v42 = vor.u32 1.1754944e-38, %v1674_v58  ;;  %vm1673_vm5 = vcmp.eq.f32.partialorder %v1672_v45, 8.507059e+37  ;;  %v1638_v45 = vsel %vm252_vm9, %v3952_v33, 0.0 }
0x1e7d   :  { %v3142_v49 = vpop.eup %3141 }
0x1e7e   :  { %v1664_v30 = vmul.f32 %v3142_v49, %v1662_v37  ;;  %vm1669_vm14 = vweird.f32 %v3142_v49  ;;  %v2989_v37 = vmul.f32 -1.442695, %v3947_v19 }
0x1e7f   :  { %vm1670_vm4 = vmor %vm1668_vm15, %vm1669_vm14 }
0x1e80   :  { %v1665_v27 = vsub.f32 1.0, %v1664_v30  ;;  %3143 = vpow2.f32 %v2989_v37 }
0x1e82   :  { %v1666_v3 = vmul.f32 %v3142_v49, %v1665_v27 }
0x1e84   :  { %v1667_v26 = vadd.f32 %v3142_v49, %v1666_v3 }
0x1e86   :  { %v1671_v36 = vsel %vm1670_vm4, %v3142_v49, %v1667_v26  ;;  %v3144_v30 = vpop.eup %3143 }
0x1e87   :  { %v1676_v55 = vsel %vm1673_vm5, %v1675_v42, %v1671_v36  ;;  %v1681_v27 = vadd.f32 1.0, %v3144_v30 }
0x1e88   :  { %v3958_v44 = vmul.f32 %v3952_v33, %v1676_v55 }
0x1e89   :  { %3145 = vrcp.f32 %v1681_v27  ;;  %v1693_v36 = vand.u32 2147483648, %v1681_v27  ;;  %vm1687_vm7 = vweird.f32 %v1681_v27  ;;  %v1691_v55 = vand.u32 2147483647, %v1681_v27 }
0x1e8a   :  { %v1711_v51 = vperm.slane %v3958_v44, 1  ;;  %v1698_v1 = vperm.slane %v3958_v44, 0  ;;  %3147 = vtanh.f32 %v3947_v19 }
0x1e8b   :  { %v1694_v37 = vor.u32 1.1754944e-38, %v1693_v36  ;;  %vm1692_vm11 = vcmp.eq.f32.partialorder %v1691_v55, 8.507059e+37 }
0x1e8c   :  { %1722 = vperm.xlu2 %3040, %v1711_v51  }
0x1e8f   :  { %v3146_v49 = vpop.eup %3145 }
0x1e90   :  { %v1683_v58 = vmul.f32 %v3146_v49, %v1681_v27  ;;  %vm1688_vm6 = vweird.f32 %v3146_v49 }
0x1e91   :  { %vm1689_vm10 = vmor %vm1687_vm7, %vm1688_vm6 }
0x1e92   :  { %v1684_v3 = vsub.f32 1.0, %v1683_v58 }
0x1e94   :  { %1709 = vperm.xlu2 %3040, %v1698_v1   ;;  %v1685_v26 = vmul.f32 %v3146_v49, %v1684_v3 }
0x1e96   :  { %v1686_v42 = vadd.f32 %v3146_v49, %v1685_v26 }
0x1e9c   :  { %3041 = vset.pattern.permute.xlu2 %v3514_v14 }
0x1ea4   :  { %1716 = vperm.xlu2 %3041, %v1711_v51   ;;  %v3148_v51 = vpop.eup %3147 }
0x1ea5   :  { %v1759_v30 = vrot.slane %v3148_v51, 1 }
0x1ea7   :  { %v1761_v20 = vperm.slane %v1759_v30, 0 }
0x1eac   :  { %1703 = vperm.xlu2 %3041, %v1698_v1   ;;  %v1690_v1 = vsel %vm1689_vm10, %v3146_v49, %v1686_v42  ;;  %v1760_v49 = vperm.slane %v3148_v51, 0 }
0x1ead   :  { %v1695_v52 = vsel %vm1692_vm11, %v1694_v37, %v1690_v1 }
0x1eae   :  { %v1725_v58 = vrot.slane %v1695_v52, 1  ;;  %v1726_v26 = vperm.slane %v1695_v52, 0 }
0x1ed5   :  { %1639 = vadd.xlane.f32.xlu2 %v1638_v45  ;;  %v1727_v45 = vperm.slane %v1725_v58, 0 }
0x1ee6   :  { %v1723_v56 = vpop.permute.xlu2 %1722 }
0x1ee7   :  { %v1767_v48 = vmul.f32 %v1761_v20, %v1723_v56  ;;  %v1733_v3 = vmul.f32 %v1727_v45, %v1723_v56 }
0x1ee9   :  { %1778 = vrot.lane.b32.xlu1 %v1767_v48, %s3328_s15  ;;  %v1737_v4 = vsub.f32 1.0, %v1733_v3 }
0x1eee   :  { %v1710_v19 = vpop.permute.xlu2 %1709 }
0x1eef   :  { %v1731_v31 = vmul.f32 %v1726_v26, %v1710_v19  ;;  %v1765_v42 = vmul.f32 %v1760_v49, %v1710_v19 }
0x1ef1   :  { %v1735_v27 = vsub.f32 1.0, %v1731_v31  ;;  %1748 = vrot.lane.b32.xlu1 %v1737_v4, %s3328_s15 }
0x1ef3   :  { %1744 = vrot.lane.b32.xlu0 %v1735_v27, %s3328_s15 }
0x1ef9   :  { %1774 = vrot.lane.b32.xlu1 %v1765_v42, %s3328_s15 }
0x1efe   :  { %v1717_v36 = vpop.permute.xlu2 %1716 }
0x1eff   :  { %v1732_v55 = vmul.f32 %v1727_v45, %v1717_v36  ;;  %v1766_v4 = vmul.f32 %v1761_v20, %v1717_v36 }
0x1f01   :  { %v1736_v1 = vsub.f32 1.0, %v1732_v55 }
0x1f03   :  { %1746 = vrot.lane.b32.xlu0 %v1736_v1, %s3328_s15 }
0x1f06   :  { %v1704_v48 = vpop.permute.xlu2 %1703 }
0x1f07   :  { %v1730_v56 = vmul.f32 %v1726_v26, %v1704_v48  ;;  %v1764_v52 = vmul.f32 %v1760_v49, %v1704_v48 }
0x1f09   :  { %v1734_v37 = vsub.f32 1.0, %v1730_v56  ;;  %1772 = vrot.lane.b32.xlu2 %v1764_v52, %s3328_s15 }
0x1f0b   :  { %1742 = vrot.lane.b32.xlu0 %v1734_v37, %s3328_s15 }
0x1f13   :  { %1776 = vrot.lane.b32.xlu0 %v1766_v4, %s3328_s15 }
0x1f1b   :  { %1888 = vrot.lane.b32.xlu0 %v3938_v8, %s3325_s25 }
0x1f48   :  { %v1640_v19 = vpop.xlane.xlu2 %1639 }
0x1f49   :  { %3149 = vrcp.f32 %v1640_v19  ;;  %vm1646_vm13 = vweird.f32 %v1640_v19  ;;  %v1650_v1 = vand.u32 2147483647, %v1640_v19 }
0x1f4b   :  { %vm1651_vm15 = vcmp.eq.f32.partialorder %v1650_v1, 8.507059e+37 }
0x1f4f   :  { %v3150_v3 = vpop.eup %3149 }
0x1f50   :  { %v1642_v20 = vmul.f32 %v3150_v3, %v1640_v19  ;;  %vm1647_vm12 = vweird.f32 %v3150_v3 }
0x1f51   :  { %vm1648_vm14 = vmor %vm1646_vm13, %vm1647_vm12 }
0x1f52   :  { %v1643_v8 = vsub.f32 1.0, %v1642_v20 }
0x1f54   :  { %v1644_v42 = vmul.f32 %v3150_v3, %v1643_v8 }
0x1f56   :  { %v1645_v55 = vadd.f32 %v3150_v3, %v1644_v42 }
0x1f58   :  { %v1649_v48 = vsel %vm1648_vm14, %v3150_v3, %v1645_v55 }
0x1f5b   :  { %v1779_v31 = vpop.permute.xlu1 %1778 }
0x1f63   :  { %v1749_v51 = vpop.permute.xlu1 %1748  ;;  %v1773_v4 = vpop.permute.xlu2 %1772 }
0x1f64   :  { %v1757_v30 = vmul.f32 %v1749_v51, %v3877_v46  ;;  %v1652_v46 = vand.u32 2147483648, %v1640_v19 }
0x1f65   :  { %v1745_v45 = vpop.permute.xlu0 %1744 }
0x1f66   :  { %v3978_v58 = vadd.f32 %v1779_v31, %v1757_v30  ;;  %v1755_v26 = vmul.f32 %v1745_v45, %v3873_v21  ;;  %v1653_v56 = vor.u32 1.1754944e-38, %v1652_v46 }
0x1f68   :  { %1828 = vmatpush.msrb.mxu1 %v3978_v58  ;;  %v1654_v21 = vsel %vm1651_vm15, %v1653_v56, %v1649_v48 }
0x1f69   :  { %v3989_v51 = vmul.f32 %v3952_v33, %v1654_v21 }
0x1f6b   :  { %v1775_v27 = vpop.permute.xlu1 %1774 }
0x1f6c   :  { %v3982_v49 = vadd.f32 %v1775_v27, %v1755_v26 }
0x1f6e   :  { %1806 = vmatpush.msrb.mxu0 %v3982_v49 }
0x1f75   :  { %v1747_v36 = vpop.permute.xlu0 %1746 }
0x1f76   :  { %v1756_v19 = vmul.f32 %v1747_v36, %v3891_v50 }
0x1f7d   :  { %v1743_v52 = vpop.permute.xlu0 %1742 }
0x1f7e   :  { %v1754_v37 = vmul.f32 %v1743_v52, %v3881_v60  ;;  %v1789_v60 = vrot.slane %v3989_v51, 1 }
0x1f80   :  { %v3986_v31 = vadd.f32 %v1773_v4, %v1754_v37 }
0x1f82   :  { %1807 = vmatpush.msrb.mxu0 %v3986_v31 }
0x1f83   :  { %2990 = vmatmul.msk.f32.vlgmr.msrb.gmra.mxu0 %vm91_vm0, %v3989_v51 }
0x1f84   :  { %1904 = vmatpush.msra.mxu0 %v3778_v34  ;;  %v4014_v34 = vpop.f32.mrf.mxu1 }
0x1f85   :  { %v1777_v30 = vpop.permute.xlu0 %1776 }
0x1f86   :  { %v3996_v45 = vadd.f32 %v1777_v30, %v1756_v19  ;;  %1905 = vmatpush.msra.mxu0 %v3782_v57 }
0x1f88   :  { %1829 = vmatpush.msrb.mxu1 %v3996_v45  ;;  %1906 = vmatpush.msra.mxu0 %v3785_v62 }
0x1f89   :  { %2991 = vmatmul.msk.f32.vlgmr.msrb.gmra.mxu1 %vm91_vm0, %v1789_v60 }
0x1f8a   :  { %1907 = vmatpush.msra.mxu0 %v3788_v11  ;;  %1970 = vmatpush.msra.mxu1 %v3757_v29 }
0x1f8c   :  { %1908 = vmatpush.msra.mxu0 %v3791_v12  ;;  %1971 = vmatpush.msra.mxu1 %v3762_v40 }
0x1f8d   :  { %v1889_v11 = vpop.permute.xlu0 %1888 }
0x1f8e   :  { %1909 = vmatpush.msra.mxu0 %v3794_v2  ;;  %1972 = vmatpush.msra.mxu1 %v3768_v38  ;;  %v2994_v38 = vld [vmem:[%s4470_s0 + $0xa] sm:$0x3] }
0x1f90   :  { %1910 = vmatpush.msra.mxu0 %v3797_v0  ;;  %1973 = vmatpush.msra.mxu1 %v3772_v9 }
0x1f92   :  { %2200 = vmatpush.msrb.mxu1 %v3909_v23  ;;  %1911 = vmatpush.msra.mxu0 %v3800_v17 }
0x1f94   :  { %2201 = vmatpush.msrb.mxu1 %v3916_v47 }
0x2000   :  { %v1809_v62 = vpop.f32.mrf.mxu0 }
0x2006   :  { %v1831_v29 = vpop.f32.mrf.mxu1 }
0x2007   :  { %v1836_v57 = vrot.slane %v1831_v29, 7 }
0x2009   :  { %v1837_v40 = vsel %vm142_vm1, %v1836_v57, %v1809_v62 }
0x200a   :  { %1885 = vrot.lane.b32.xlu1 %v1837_v40, %s3326_s2  ;;  %2992 = vmatmul.msk.f32.vlgmr.msrb.gmra.mxu3 %vm91_vm0, %v1837_v40 }
0x207c   :  { %v1886_v9 = vpop.permute.xlu1 %1885 }
0x207d   :  { %v1891_v12 = vsel %vm91_vm0, %v2994_v38, %v1886_v9 }
0x207e   :  { %v1892_v2 = vsel %vm151_vm2, %v1891_v12, %v1889_v11 }
0x207f   :  { %2995 = vmatmul.msk.f32.vlgmr.msra.gmra.mxu0 %vm156_vm3, %v1892_v2 }
0x20fc   :  { %v1913_v0 = vpop.f32.mrf.mxu0 }
0x20fd   :  { %v1914_v17 = vadd.f32 %v3817_v43, %v1913_v0 }
0x20ff   :  { %3151 = vtanh.f32 %v1914_v17  ;;  %v2996_v33 = vmul.f32 -1.442695, %v1914_v17 }
0x2101   :  { %3153 = vpow2.f32 %v2996_v33 }
0x2105   :  { %v3152_v50 = vpop.eup %3151 }
0x2106   :  { %1938 = vrot.lane.b32.xlu1 %v3152_v50, %s3325_s25 }
0x2107   :  { %v3154_v3 = vpop.eup %3153 }
0x2108   :  { %v1919_v26 = vadd.f32 1.0, %v3154_v3 }
0x210a   :  { %3155 = vrcp.f32 %v1919_v26  ;;  %v1931_v55 = vand.u32 2147483648, %v1919_v26  ;;  %vm1925_vm5 = vweird.f32 %v1919_v26  ;;  %v1929_v46 = vand.u32 2147483647, %v1919_v26 }
0x210c   :  { %v1932_v1 = vor.u32 1.1754944e-38, %v1931_v55  ;;  %vm1930_vm7 = vcmp.eq.f32.partialorder %v1929_v46, 8.507059e+37 }
0x2110   :  { %v3156_v20 = vpop.eup %3155 }
0x2111   :  { %v1921_v27 = vmul.f32 %v3156_v20, %v1919_v26  ;;  %vm1926_vm4 = vweird.f32 %v3156_v20 }
0x2112   :  { %vm1927_vm6 = vmor %vm1925_vm5, %vm1926_vm4 }
0x2113   :  { %v1922_v8 = vsub.f32 1.0, %v1921_v27 }
0x2115   :  { %v1923_v42 = vmul.f32 %v3156_v20, %v1922_v8 }
0x2117   :  { %v1924_v36 = vadd.f32 %v3156_v20, %v1923_v42 }
0x2119   :  { %v1928_v43 = vsel %vm1927_vm6, %v3156_v20, %v1924_v36 }
0x211a   :  { %v1933_v56 = vsel %vm1930_vm7, %v1932_v1, %v1928_v43 }
0x211b   :  { %v1936_v21 = vmul.f32 %v1933_v56, %v3934_v6 }
0x2178   :  { %v1939_v48 = vpop.permute.xlu1 %1938 }
0x2179   :  { %v1941_v52 = vmul.f32 %v1939_v48, %v1933_v56 }
0x217b   :  { %1943 = vrot.lane.b32.xlu0 %v1941_v52, %s3327_s29 }
0x21ed   :  { %v1944_v37 = vpop.permute.xlu0 %1943 }
0x21ee   :  { %v4029_v4 = vadd.f32 %v1944_v37, %v1936_v21 }
0x21f0   :  { %4508 = vst [vmem:[#allocation23_spill] sm:$0xff] %v4029_v4  ;;  %3157 = vtanh.f32 %v4029_v4 }
0x21f6   :  { %v3158_v19 = vpop.eup %3157 }
0x21f7   :  { %1949 = vrot.lane.b32.xlu1 %v3158_v19, %s3325_s25 }
0x2269   :  { %v1950_v30 = vpop.permute.xlu1 %1949 }
0x226a   :  { %v4033_v60 = vmul.f32 %v1950_v30, %v1933_v56 }
0x226c   :  { %1954 = vrot.lane.b32.xlu0 %v4033_v60, %s3327_s29 }
0x22de   :  { %v4037_v29 = vpop.permute.xlu0 %1954 }
0x22df   :  { %4509 = vst [vmem:[#allocation24_spill] sm:$0xff] %v4037_v29  ;;  %2997 = vmatmul.msk.f32.vlgmr.msra.gmra.mxu1 %vm151_vm2, %v4037_v29 }
0x235c   :  { %v1975_v57 = vpop.f32.mrf.mxu1 }
0x235d   :  { %v4042_v62 = vadd.f32 %v3838_v16, %v1975_v57 }
0x235f   :  { %v1978_v40 = vsel %vm245_vm8, %v4042_v62, -inf  ;;  %v2998_v48 = vmul.f32 -1.442695, %v4042_v62 }
0x2360   :  { %1979 = vmax.xlane.f32.xlu2 %v1978_v40 }
0x23d3   :  { %v1980_v38 = vpop.xlane.xlu2 %1979 }
0x23d4   :  { %v1981_v9 = vsub.f32 %v4042_v62, %v1980_v38 }
0x23d6   :  { %v1982_v11 = vmul.f32 1.442695, %v1981_v9 }
0x23d8   :  { %3159 = vpow2.f32 %v1982_v11 }
0x23de   :  { %v4047_v12 = vpop.eup %3159 }
0x23df   :  { %2003 = vrot.lane.b32.xlu1 %v4047_v12, %s3328_s15  ;;  %v1984_v2 = vsel %vm252_vm9, %v4047_v12, 0.0 }
0x23e0   :  { %1985 = vadd.xlane.f32.xlu2 %v1984_v2 }
0x2451   :  { %v2004_v16 = vpop.permute.xlu1 %2003 }
0x2452   :  { %v2006_v0 = vsel %vm252_vm9, %v2004_v16, 0.0 }
0x2453   :  { %2007 = vadd.xlane.f32.xlu0 %v2006_v0 }
0x24c6   :  { %v2008_v17 = vpop.xlane.xlu0 %2007 }
0x24c7   :  { %3161 = vrcp.f32 %v2008_v17  ;;  %v2020_v26 = vand.u32 2147483648, %v2008_v17  ;;  %v2018_v27 = vand.u32 2147483647, %v2008_v17  ;;  %vm2014_vm11 = vweird.f32 %v2008_v17 }
0x24c8   :  { %3163 = vpow2.f32 %v2998_v48 }
0x24c9   :  { %v2021_v42 = vor.u32 1.1754944e-38, %v2020_v26  ;;  %vm2019_vm13 = vcmp.eq.f32.partialorder %v2018_v27, 8.507059e+37 }
0x24cd   :  { %v3162_v50 = vpop.eup %3161 }
0x24ce   :  { %v2010_v33 = vmul.f32 %v3162_v50, %v2008_v17  ;;  %vm2015_vm10 = vweird.f32 %v3162_v50  ;;  %v3164_v56 = vpop.eup %3163 }
0x24cf   :  { %vm2016_vm12 = vmor %vm2014_vm11, %vm2015_vm10  ;;  %v2027_v52 = vadd.f32 1.0, %v3164_v56 }
0x24d0   :  { %v2011_v3 = vsub.f32 1.0, %v2010_v33 }
0x24d1   :  { %3165 = vrcp.f32 %v2027_v52  ;;  %v2039_v40 = vand.u32 2147483648, %v2027_v52  ;;  %vm2033_vm15 = vweird.f32 %v2027_v52  ;;  %v2037_v38 = vand.u32 2147483647, %v2027_v52 }
0x24d2   :  { %v2012_v20 = vmul.f32 %v3162_v50, %v2011_v3  ;;  %3167 = vtanh.f32 %v4042_v62 }
0x24d3   :  { %v2040_v2 = vor.u32 1.1754944e-38, %v2039_v40  ;;  %vm2038_vm5 = vcmp.eq.f32.partialorder %v2037_v38, 8.507059e+37  ;;  %v1986_v40 = vpop.xlane.xlu2 %1985 }
0x24d4   :  { %v2013_v8 = vadd.f32 %v3162_v50, %v2012_v20  ;;  %3169 = vrcp.f32 %v1986_v40  ;;  %vm1992_vm7 = vweird.f32 %v1986_v40 }
0x24d6   :  { %v2017_v36 = vsel %vm2016_vm12, %v3162_v50, %v2013_v8 }
0x24d7   :  { %v2022_v55 = vsel %vm2019_vm13, %v2021_v42, %v2017_v36  ;;  %v3166_v21 = vpop.eup %3165 }
0x24d8   :  { %v4055_v46 = vmul.f32 %v4047_v12, %v2022_v55  ;;  %v2029_v37 = vmul.f32 %v3166_v21, %v2027_v52  ;;  %vm2034_vm14 = vweird.f32 %v3166_v21  ;;  %v3168_v9 = vpop.eup %3167 }
0x24d9   :  { %vm2035_vm4 = vmor %vm2033_vm15, %vm2034_vm14  ;;  %v2105_v16 = vrot.slane %v3168_v9, 1 }
0x24da   :  { %v2057_v43 = vperm.slane %v4055_v46, 1  ;;  %v2044_v1 = vperm.slane %v4055_v46, 0  ;;  %v2030_v19 = vsub.f32 1.0, %v2029_v37  ;;  %v3170_v38 = vpop.eup %3169 }
0x24db   :  { %v2107_v50 = vperm.slane %v2105_v16, 0  ;;  %vm1993_vm6 = vweird.f32 %v3170_v38 }
0x24dc   :  { %2068 = vperm.xlu1 %3042, %v2057_v43   ;;  %v2031_v30 = vmul.f32 %v3166_v21, %v2030_v19  ;;  %vm1994_vm10 = vmor %vm1992_vm7, %vm1993_vm6 }
0x24de   :  { %v2032_v57 = vadd.f32 %v3166_v21, %v2031_v30 }
0x24e0   :  { %v2036_v11 = vsel %vm2035_vm4, %v3166_v21, %v2032_v57  ;;  %v2106_v21 = vperm.slane %v3168_v9, 0 }
0x24e1   :  { %v2041_v0 = vsel %vm2038_vm5, %v2040_v2, %v2036_v11  ;;  %v1988_v11 = vmul.f32 %v3170_v38, %v1986_v40 }
0x24e2   :  { %v2071_v17 = vrot.slane %v2041_v0, 1  ;;  %v2072_v27 = vperm.slane %v2041_v0, 0 }
0x24e3   :  { %v1989_v16 = vsub.f32 1.0, %v1988_v11  ;;  %v4124_v11 = vld [vmem:[#allocation2 + $0x10] sm:$0xff] }
0x24e4   :  { %2055 = vperm.xlu1 %3042, %v2044_v1   ;;  %v2073_v26 = vperm.slane %v2071_v17, 0 }
0x24e5   :  { %v1990_v9 = vmul.f32 %v3170_v38, %v1989_v16  ;;  %v4130_v16 = vld [vmem:[#allocation2] sm:$0xff] }
0x24ec   :  { %3043 = vset.pattern.permute.xlu1 %v3514_v14 }
0x24f4   :  { %2062 = vperm.xlu1 %3043, %v2057_v43  }
0x24fc   :  { %2049 = vperm.xlu1 %3043, %v2044_v1  }
0x254e   :  { %v2069_v33 = vpop.permute.xlu1 %2068 }
0x254f   :  { %v2113_v3 = vmul.f32 %v2107_v50, %v2069_v33  ;;  %v2079_v20 = vmul.f32 %v2073_v26, %v2069_v33  ;;  %v1998_v33 = vand.u32 2147483648, %v1986_v40 }
0x2551   :  { %2124 = vrot.lane.b32.xlu1 %v2113_v3, %s3328_s15  ;;  %v2083_v42 = vsub.f32 1.0, %v2079_v20  ;;  %v1996_v3 = vand.u32 2147483647, %v1986_v40 }
0x2553   :  { %vm1997_vm11 = vcmp.eq.f32.partialorder %v1996_v3, 8.507059e+37  ;;  %v3003_v3 = vld [vmem:[%s4470_s0 + $0xc] sm:$0x3] }
0x2556   :  { %v2056_v8 = vpop.permute.xlu1 %2055 }
0x2557   :  { %v2077_v36 = vmul.f32 %v2072_v27, %v2056_v8  ;;  %v2111_v57 = vmul.f32 %v2106_v21, %v2056_v8 }
0x2559   :  { %v2081_v55 = vsub.f32 1.0, %v2077_v36  ;;  %2094 = vrot.lane.b32.xlu1 %v2083_v42, %s3328_s15 }
0x255b   :  { %2090 = vrot.lane.b32.xlu0 %v2081_v55, %s3328_s15 }
0x2566   :  { %v2063_v43 = vpop.permute.xlu1 %2062 }
0x2567   :  { %v2078_v1 = vmul.f32 %v2073_v26, %v2063_v43  ;;  %v2112_v48 = vmul.f32 %v2107_v50, %v2063_v43 }
0x2569   :  { %v2082_v56 = vsub.f32 1.0, %v2078_v1  ;;  %2122 = vrot.lane.b32.xlu0 %v2112_v48, %s3328_s15  ;;  %v4085_v48 = vld [vmem:[#allocation5 + $0x18] sm:$0xff] }
0x256b   :  { %2092 = vrot.lane.b32.xlu2 %v2082_v56, %s3328_s15  ;;  %v4088_v56 = vld [vmem:[#allocation5 + $0x10] sm:$0xff] }
0x256e   :  { %v2050_v52 = vpop.permute.xlu1 %2049 }
0x256f   :  { %v2076_v37 = vmul.f32 %v2072_v27, %v2050_v52  ;;  %v2110_v30 = vmul.f32 %v2106_v21, %v2050_v52  ;;  %v1999_v27 = vor.u32 1.1754944e-38, %v1998_v33  ;;  %v4094_v52 = vld [vmem:[#allocation5] sm:$0xff] }
0x2571   :  { %v2080_v19 = vsub.f32 1.0, %v2076_v37  ;;  %2234 = vrot.lane.b32.xlu0 %v4033_v60, %s3325_s25  ;;  %v1991_v60 = vadd.f32 %v3170_v38, %v1990_v9  ;;  %v4133_v9 = vpop.f32.mrf.mxu3 }
0x2573   :  { %2088 = vrot.lane.b32.xlu1 %v2080_v19, %s3328_s15  ;;  %2118 = vrot.lane.b32.xlu2 %v2110_v30, %s3328_s15  ;;  %v1995_v26 = vsel %vm1994_vm10, %v3170_v38, %v1991_v60  ;;  %v4121_v38 = vld [vmem:[#allocation2 + $0x18] sm:$0xff] }
0x2574   :  { %v2000_v8 = vsel %vm1997_vm11, %v1999_v27, %v1995_v26 }
0x2575   :  { %v4077_v36 = vmul.f32 %v4047_v12, %v2000_v8  ;;  %v4091_v12 = vld [vmem:[#allocation5 + $0x8] sm:$0xff] }
0x2577   :  { %v2135_v1 = vrot.slane %v4077_v36, 1 }
0x257b   :  { %2120 = vrot.lane.b32.xlu1 %v2111_v57, %s3328_s15 }
0x25c3   :  { %v2125_v2 = vpop.permute.xlu1 %2124 }
0x25c5   :  { %v2093_v42 = vpop.permute.xlu2 %2092 }
0x25cb   :  { %v2095_v0 = vpop.permute.xlu1 %2094 }
0x25cc   :  { %v2103_v17 = vmul.f32 %v2095_v0, %v3978_v58  ;;  %v2102_v58 = vmul.f32 %v2093_v42, %v3996_v45 }
0x25cd   :  { %v2091_v20 = vpop.permute.xlu0 %2090  ;;  %v2119_v57 = vpop.permute.xlu2 %2118 }
0x25ce   :  { %v4073_v50 = vadd.f32 %v2125_v2, %v2103_v17  ;;  %v2101_v21 = vmul.f32 %v2091_v20, %v3982_v49  ;;  %v4115_v49 = vld [vmem:[#allocation2 + $0x28] sm:$0xff] }
0x25cf   :  { %v4127_v2 = vld [vmem:[#allocation2 + $0x8] sm:$0xff] }
0x25d0   :  { %2174 = vmatpush.msra.mxu3 %v4073_v50 }
0x25db   :  { %v2123_v55 = vpop.permute.xlu0 %2122 }
0x25dc   :  { %v4080_v43 = vadd.f32 %v2123_v55, %v2102_v58  ;;  %v4147_v58 = vld [vmem:[%s4474_s4] ss:$0 sm:$0xff] }
0x25de   :  { %2175 = vmatpush.msra.mxu3 %v4080_v43 }
0x25df   :  { %3000 = vmatmul.msk.f32.vlgmr.msra.gmra.mxu3 %vm91_vm0, %v2135_v1 }
0x25e0   :  { %2316 = vmatpush.msrb.mxu3 %v4085_v48 }
0x25e2   :  { %2317 = vmatpush.msrb.mxu3 %v4088_v56 }
0x25e3   :  { %v2235_v20 = vpop.permute.xlu0 %2234 }
0x25e4   :  { %2318 = vmatpush.msrb.mxu3 %v4091_v12 }
0x25e5   :  { %v2089_v45 = vpop.permute.xlu1 %2088 }
0x25e6   :  { %2319 = vmatpush.msrb.mxu3 %v4094_v52  ;;  %v2100_v37 = vmul.f32 %v2089_v45, %v3986_v31  ;;  %v4118_v31 = vld [vmem:[#allocation2 + $0x20] sm:$0xff] }
0x25e8   :  { %2546 = vmatpush.msra.mxu3 %v3909_v23  ;;  %v4103_v40 = vadd.f32 %v2119_v57, %v2100_v37  ;;  %v4109_v23 = vld [vmem:[#allocation2 + $0x38] sm:$0xff] }
0x25ea   :  { %2547 = vmatpush.msra.mxu3 %v3916_v47  ;;  %v4112_v47 = vld [vmem:[#allocation2 + $0x30] sm:$0xff] }
0x25ed   :  { %v2121_v19 = vpop.permute.xlu1 %2120 }
0x25ee   :  { %v4101_v30 = vadd.f32 %v2121_v19, %v2101_v21 }
0x25f0   :  { %2152 = vmatpush.msrb.mxu2 %v4101_v30 }
0x25f2   :  { %2153 = vmatpush.msrb.mxu2 %v4103_v40 }
0x25f3   :  { %2999 = vmatmul.msk.f32.vlgmr.msrb.gmra.mxu2 %vm91_vm0, %v4077_v36 }
0x25f4   :  { %2250 = vmatpush.msra.mxu2 %v4109_v23 }
0x25f6   :  { %2251 = vmatpush.msra.mxu2 %v4112_v47 }
0x25f8   :  { %2252 = vmatpush.msra.mxu2 %v4115_v49 }
0x25fa   :  { %2253 = vmatpush.msra.mxu2 %v4118_v31 }
0x25fc   :  { %2254 = vmatpush.msra.mxu2 %v4121_v38 }
0x25fe   :  { %2255 = vmatpush.msra.mxu2 %v4124_v11 }
0x2600   :  { %2256 = vmatpush.msra.mxu2 %v4127_v2 }
0x2602   :  { %2257 = vmatpush.msra.mxu2 %v4130_v16 }
0x2662   :  { %v2177_v0 = vpop.f32.mrf.mxu3 }
0x2663   :  { %v2182_v17 = vrot.slane %v2177_v0, 7 }
0x2676   :  { %v2155_v60 = vpop.f32.mrf.mxu2 }
0x2677   :  { %v2183_v33 = vsel %vm142_vm1, %v2182_v17, %v2155_v60 }
0x2678   :  { %2231 = vrot.lane.b32.xlu1 %v2183_v33, %s3326_s2  ;;  %3001 = vmatmul.msk.f32.vlgmr.msrb.gmra.mxu1 %vm91_vm0, %v2183_v33 }
0x26ea   :  { %v2232_v26 = vpop.permute.xlu1 %2231 }
0x26eb   :  { %v2237_v27 = vsel %vm91_vm0, %v3003_v3, %v2232_v26 }
0x26ec   :  { %v2238_v8 = vsel %vm151_vm2, %v2237_v27, %v2235_v20 }
0x26ed   :  { %3004 = vmatmul.msk.f32.vlgmr.msra.gmra.mxu2 %vm156_vm3, %v2238_v8 }
0x2770   :  { %v2259_v42 = vpop.f32.mrf.mxu2 }
0x2771   :  { %v2260_v55 = vadd.f32 %v4147_v58, %v2259_v42 }
0x2773   :  { %3171 = vtanh.f32 %v2260_v55  ;;  %v3005_v45 = vmul.f32 -1.442695, %v2260_v55 }
0x2775   :  { %3173 = vpow2.f32 %v3005_v45 }
0x2779   :  { %v3172_v1 = vpop.eup %3171 }
0x277a   :  { %2284 = vrot.lane.b32.xlu2 %v3172_v1, %s3325_s25 }
0x277b   :  { %v3174_v21 = vpop.eup %3173 }
0x277c   :  { %v2265_v37 = vadd.f32 1.0, %v3174_v21 }
0x277e   :  { %3175 = vrcp.f32 %v2265_v37  ;;  %v2277_v33 = vand.u32 2147483648, %v2265_v37  ;;  %vm2271_vm13 = vweird.f32 %v2265_v37  ;;  %v2275_v3 = vand.u32 2147483647, %v2265_v37 }
0x2780   :  { %v2278_v20 = vor.u32 1.1754944e-38, %v2277_v33  ;;  %vm2276_vm15 = vcmp.eq.f32.partialorder %v2275_v3, 8.507059e+37 }
0x2784   :  { %v3176_v19 = vpop.eup %3175 }
0x2785   :  { %v2267_v57 = vmul.f32 %v3176_v19, %v2265_v37  ;;  %vm2272_vm12 = vweird.f32 %v3176_v19 }
0x2786   :  { %vm2273_vm14 = vmor %vm2271_vm13, %vm2272_vm12 }
0x2787   :  { %v2268_v0 = vsub.f32 1.0, %v2267_v57 }
0x2789   :  { %v2269_v17 = vmul.f32 %v3176_v19, %v2268_v0 }
0x278b   :  { %v2270_v60 = vadd.f32 %v3176_v19, %v2269_v17  ;;  %v4168_v17 = vld [vmem:[%s4477_s7] ss:$0 sm:$0xff] }
0x278d   :  { %v2274_v26 = vsel %vm2273_vm14, %v3176_v19, %v2270_v60 }
0x278e   :  { %v2279_v8 = vsel %vm2276_vm15, %v2278_v20, %v2274_v26 }
0x278f   :  { %v2282_v55 = vmul.f32 %v2279_v8, %v4029_v4 }
0x27d4   :  { %v2285_v27 = vpop.permute.xlu2 %2284 }
0x27d5   :  { %v2287_v42 = vmul.f32 %v2285_v27, %v2279_v8 }
0x27d7   :  { %2289 = vrot.lane.b32.xlu1 %v2287_v42, %s3327_s29 }
0x2849   :  { %v2290_v1 = vpop.permute.xlu1 %2289 }
0x284a   :  { %v4153_v45 = vadd.f32 %v2290_v1, %v2282_v55 }
0x284c   :  { %3177 = vtanh.f32 %v4153_v45 }
0x2852   :  { %v3178_v21 = vpop.eup %3177 }
0x2853   :  { %2295 = vrot.lane.b32.xlu0 %v3178_v21, %s3325_s25 }
0x28c5   :  { %v2296_v37 = vpop.permute.xlu0 %2295 }
0x28c6   :  { %v4157_v57 = vmul.f32 %v2296_v37, %v2279_v8 }
0x28c8   :  { %2300 = vrot.lane.b32.xlu2 %v4157_v57, %s3327_s29 }
0x2922   :  { %v4161_v19 = vpop.permute.xlu2 %2300 }
0x2923   :  { %4510 = vst [vmem:[#allocation25_spill] sm:$0xff] %v4161_v19  ;;  %3006 = vmatmul.msk.f32.vlgmr.msrb.gmra.mxu3 %vm151_vm2, %v4161_v19 }
0x29a6   :  { %v2321_v0 = vpop.f32.mrf.mxu3 }
0x29a7   :  { %v4171_v60 = vadd.f32 %v4168_v17, %v2321_v0 }
0x29a9   :  { %v2324_v33 = vsel %vm245_vm8, %v4171_v60, -inf }
0x29aa   :  { %2325 = vmax.xlane.f32.xlu1 %v2324_v33 }
0x2a1d   :  { %v2326_v3 = vpop.xlane.xlu1 %2325 }
0x2a1e   :  { %v2327_v26 = vsub.f32 %v4171_v60, %v2326_v3 }
0x2a20   :  { %v2328_v20 = vmul.f32 1.442695, %v2327_v26 }
0x2a22   :  { %3179 = vpow2.f32 %v2328_v20 }
0x2a28   :  { %v4176_v27 = vpop.eup %3179 }
0x2a29   :  { %2349 = vrot.lane.b32.xlu0 %v4176_v27, %s3328_s15  ;;  %v2330_v55 = vsel %vm252_vm9, %v4176_v27, 0.0 }
0x2a9b   :  { %v2350_v8 = vpop.permute.xlu0 %2349 }
0x2a9c   :  { %v2352_v42 = vsel %vm252_vm9, %v2350_v8, 0.0 }
0x2a9d   :  { %2353 = vadd.xlane.f32.xlu2 %v2352_v42 }
0x2aa5   :  { %2331 = vadd.xlane.f32.xlu2 %v2330_v55 }
0x2b10   :  { %v2354_v1 = vpop.xlane.xlu2 %2353 }
0x2b11   :  { %3181 = vrcp.f32 %v2354_v1  ;;  %v2366_v33 = vand.u32 2147483648, %v2354_v1  ;;  %v2364_v26 = vand.u32 2147483647, %v2354_v1  ;;  %vm2360_vm5 = vweird.f32 %v2354_v1 }
0x2b13   :  { %v2367_v19 = vor.u32 1.1754944e-38, %v2366_v33  ;;  %vm2365_vm7 = vcmp.eq.f32.partialorder %v2364_v26, 8.507059e+37 }
0x2b17   :  { %v3182_v21 = vpop.eup %3181 }
0x2b18   :  { %v2356_v37 = vmul.f32 %v3182_v21, %v2354_v1  ;;  %vm2361_vm4 = vweird.f32 %v3182_v21  ;;  %v3007_v1 = vmul.f32 -1.442695, %v4171_v60 }
0x2b19   :  { %vm2362_vm6 = vmor %vm2360_vm5, %vm2361_vm4 }
0x2b1a   :  { %v2357_v0 = vsub.f32 1.0, %v2356_v37  ;;  %3183 = vpow2.f32 %v3007_v1 }
0x2b1c   :  { %v2358_v3 = vmul.f32 %v3182_v21, %v2357_v0 }
0x2b1e   :  { %v2359_v20 = vadd.f32 %v3182_v21, %v2358_v3 }
0x2b20   :  { %v2363_v32 = vsel %vm2362_vm6, %v3182_v21, %v2359_v20 }
0x2b21   :  { %v2368_v8 = vsel %vm2365_vm7, %v2367_v19, %v2363_v32  ;;  %v3184_v32 = vpop.eup %3183 }
0x2b22   :  { %v4184_v42 = vmul.f32 %v4176_v27, %v2368_v8  ;;  %v2373_v19 = vadd.f32 1.0, %v3184_v32 }
0x2b24   :  { %4511 = vst [vmem:[#allocation26_spill] sm:$0xff] %v4184_v42  ;;  %v2403_v55 = vperm.slane %v4184_v42, 1  ;;  %v2390_v29 = vperm.slane %v4184_v42, 0  ;;  %3185 = vrcp.f32 %v2373_v19  ;;  %v2385_v3 = vand.u32 2147483648, %v2373_v19 }
0x2b25   :  { %3187 = vtanh.f32 %v4171_v60  ;;  %vm2379_vm11 = vweird.f32 %v2373_v19  ;;  %v2383_v26 = vand.u32 2147483647, %v2373_v19 }
0x2b26   :  { %2414 = vperm.xlu0 %3044, %v2403_v55   ;;  %2395 = vperm.xlu1 %3043, %v2390_v29   ;;  %v2386_v8 = vor.u32 1.1754944e-38, %v2385_v3 }
0x2b27   :  { %vm2384_vm13 = vcmp.eq.f32.partialorder %v2383_v26, 8.507059e+37 }
0x2b2a   :  { %v3186_v21 = vpop.eup %3185 }
0x2b2b   :  { %v2375_v37 = vmul.f32 %v3186_v21, %v2373_v19  ;;  %vm2380_vm10 = vweird.f32 %v3186_v21  ;;  %v3188_v20 = vpop.eup %3187 }
0x2b2c   :  { %vm2381_vm12 = vmor %vm2379_vm11, %vm2380_vm10  ;;  %v2452_v26 = vperm.slane %v3188_v20, 0 }
0x2b2d   :  { %v2376_v0 = vsub.f32 1.0, %v2375_v37 }
0x2b2e   :  { %2401 = vperm.xlu0 %3044, %v2390_v29   ;;  %3046 = vset.pattern.permute.xlu1 %v3512_v13 }
0x2b2f   :  { %v2377_v33 = vmul.f32 %v3186_v21, %v2376_v0 }
0x2b31   :  { %v2378_v29 = vadd.f32 %v3186_v21, %v2377_v33 }
0x2b36   :  { %3045 = vset.pattern.permute.xlu0 %v3514_v14 }
0x2b3e   :  { %2408 = vperm.xlu0 %3045, %v2403_v55   ;;  %v2451_v55 = vrot.slane %v3188_v20, 1 }
0x2b40   :  { %v2453_v42 = vperm.slane %v2451_v55, 0 }
0x2b46   :  { %3048 = vset.pattern.permute.xlu0 %v3512_v13  ;;  %v2382_v13 = vsel %vm2381_vm12, %v3186_v21, %v2378_v29 }
0x2b47   :  { %v2387_v1 = vsel %vm2384_vm13, %v2386_v8, %v2382_v13 }
0x2b48   :  { %v2417_v32 = vrot.slane %v2387_v1, 1  ;;  %v2418_v4 = vperm.slane %v2387_v1, 0 }
0x2b4a   :  { %v2419_v24 = vperm.slane %v2417_v32, 0 }
0x2b98   :  { %v2415_v25 = vpop.permute.xlu0 %2414  ;;  %v2396_v37 = vpop.permute.xlu1 %2395 }
0x2b99   :  { %v2459_v0 = vmul.f32 %v2453_v42, %v2415_v25  ;;  %v2422_v22 = vmul.f32 %v2418_v4, %v2396_v37  ;;  %v2425_v6 = vmul.f32 %v2419_v24, %v2415_v25  ;;  %v2456_v13 = vmul.f32 %v2452_v26, %v2396_v37 }
0x2b9b   :  { %v2426_v33 = vsub.f32 1.0, %v2422_v22  ;;  %2470 = vrot.lane.b32.xlu0 %v2459_v0, %s3328_s15  ;;  %v2429_v21 = vsub.f32 1.0, %v2425_v6  ;;  %v2332_v6 = vpop.xlane.xlu2 %2331 }
0x2b9c   :  { %3189 = vrcp.f32 %v2332_v6  ;;  %vm2338_vm15 = vweird.f32 %v2332_v6 }
0x2b9d   :  { %2434 = vrot.lane.b32.xlu1 %v2426_v33, %s3328_s15 }
0x2ba0   :  { %v2402_v19 = vpop.permute.xlu0 %2401 }
0x2ba1   :  { %v2423_v29 = vmul.f32 %v2418_v4, %v2402_v19  ;;  %v2457_v25 = vmul.f32 %v2452_v26, %v2402_v19 }
0x2ba2   :  { %v3190_v20 = vpop.eup %3189 }
0x2ba3   :  { %v2427_v3 = vsub.f32 1.0, %v2423_v29  ;;  %2440 = vrot.lane.b32.xlu0 %v2429_v21, %s3328_s15  ;;  %v2334_v32 = vmul.f32 %v3190_v20, %v2332_v6  ;;  %vm2339_vm14 = vweird.f32 %v3190_v20  ;;  %v2344_v21 = vand.u32 2147483648, %v2332_v6 }
0x2ba4   :  { %vm2340_vm4 = vmor %vm2338_vm15, %vm2339_vm14 }
0x2ba5   :  { %2436 = vrot.lane.b32.xlu2 %v2427_v3, %s3328_s15  ;;  %v2335_v37 = vsub.f32 1.0, %v2334_v32  ;;  %v2345_v26 = vor.u32 1.1754944e-38, %v2344_v21 }
0x2ba7   :  { %v2336_v33 = vmul.f32 %v3190_v20, %v2335_v37 }
0x2ba9   :  { %v2337_v19 = vadd.f32 %v3190_v20, %v2336_v33 }
0x2bab   :  { %v2341_v29 = vsel %vm2340_vm4, %v3190_v20, %v2337_v19 }
0x2bad   :  { %2464 = vrot.lane.b32.xlu2 %v2456_v13, %s3328_s15 }
0x2bb0   :  { %v2409_v8 = vpop.permute.xlu0 %2408 }
0x2bb1   :  { %v2424_v55 = vmul.f32 %v2419_v24, %v2409_v8  ;;  %v2458_v22 = vmul.f32 %v2453_v42, %v2409_v8 }
0x2bb3   :  { %v2428_v1 = vsub.f32 1.0, %v2424_v55  ;;  %2468 = vrot.lane.b32.xlu1 %v2458_v22, %s3328_s15 }
0x2bb5   :  { %2438 = vrot.lane.b32.xlu0 %v2428_v1, %s3328_s15 }
0x2bbb   :  { %2580 = vrot.lane.b32.xlu1 %v4157_v57, %s3325_s25  ;;  %v2342_v57 = vand.u32 2147483647, %v2332_v6 }
0x2bbd   :  { %2466 = vrot.lane.b32.xlu0 %v2457_v25, %s3328_s15  ;;  %vm2343_vm5 = vcmp.eq.f32.partialorder %v2342_v57, 8.507059e+37 }
0x2bbe   :  { %v2346_v13 = vsel %vm2343_vm5, %v2345_v26, %v2341_v29 }
0x2bbf   :  { %v4208_v8 = vmul.f32 %v4176_v27, %v2346_v13 }
0x2c0d   :  { %v2471_v4 = vpop.permute.xlu0 %2470 }
0x2c0f   :  { %v2435_v3 = vpop.permute.xlu1 %2434 }
0x2c10   :  { %v2446_v20 = vmul.f32 %v2435_v3, %v4103_v40 }
0x2c15   :  { %v2441_v0 = vpop.permute.xlu0 %2440 }
0x2c16   :  { %v2449_v24 = vmul.f32 %v2441_v0, %v4073_v50  ;;  %v2437_v50 = vpop.permute.xlu2 %2436 }
0x2c17   :  { %v2447_v6 = vmul.f32 %v2437_v50, %v4101_v30 }
0x2c18   :  { %v4204_v42 = vadd.f32 %v2471_v4, %v2449_v24  ;;  %v2481_v4 = vrot.slane %v4208_v8, 1 }
0x2c1a   :  { %2520 = vmatpush.msra.mxu1 %v4204_v42 }
0x2c25   :  { %v2469_v1 = vpop.permute.xlu1 %2468 }
0x2c27   :  { %v2439_v55 = vpop.permute.xlu0 %2438 }
0x2c28   :  { %v2448_v22 = vmul.f32 %v2439_v55, %v4080_v43  ;;  %v2465_v43 = vpop.permute.xlu2 %2464 }
0x2c29   :  { %v4222_v37 = vadd.f32 %v2465_v43, %v2446_v20 }
0x2c2a   :  { %v4211_v25 = vadd.f32 %v2469_v1, %v2448_v22 }
0x2c2c   :  { %2521 = vmatpush.msra.mxu1 %v4211_v25 }
0x2c2d   :  { %3009 = vmatmul.msk.f32.vlgmr.msra.gmra.mxu1 %vm91_vm0, %v2481_v4 }
0x2c2e   :  { %2662 = vmatpush.msrb.mxu1 %v4085_v48  ;;  %v3241_v48 = vld [vmem:[%s4476_s6 + $0x8] sm:$0xff] }
0x2c2f   :  { %v2467_v27 = vpop.permute.xlu0 %2466 }
0x2c30   :  { %v4219_v32 = vadd.f32 %v2467_v27, %v2447_v6  ;;  %2663 = vmatpush.msrb.mxu1 %v4088_v56  ;;  %v3242_v56 = vld [vmem:[%s4476_s6] sm:$0xff] }
0x2c32   :  { %2498 = vmatpush.msrb.mxu0 %v4219_v32  ;;  %2664 = vmatpush.msrb.mxu1 %v4091_v12  ;;  %v4244_v12 = vpop.f32.mrf.mxu1 }
0x2c34   :  { %2499 = vmatpush.msrb.mxu0 %v4222_v37  ;;  %2665 = vmatpush.msrb.mxu1 %v4094_v52 }
0x2c35   :  { %3008 = vmatmul.msk.f32.vlgmr.msrb.gmra.mxu0 %vm91_vm0, %v4208_v8 }
0x2c36   :  { %2892 = vmatpush.msra.mxu1 %v3241_v48  ;;  %2596 = vmatpush.msra.mxu0 %v4109_v23 }
0x2c38   :  { %2893 = vmatpush.msra.mxu1 %v3242_v56  ;;  %2597 = vmatpush.msra.mxu0 %v4112_v47  ;;  %v3012_v47 = vld [vmem:[%s4470_s0 + $0xe] sm:$0x3] }
0x2c3a   :  { %2598 = vmatpush.msra.mxu0 %v4115_v49 }
0x2c3c   :  { %2599 = vmatpush.msra.mxu0 %v4118_v31  ;;  %v2581_v31 = vpop.permute.xlu1 %2580 }
0x2c3e   :  { %2600 = vmatpush.msra.mxu0 %v4121_v38 }
0x2c40   :  { %2601 = vmatpush.msra.mxu0 %v4124_v11 }
0x2c42   :  { %2602 = vmatpush.msra.mxu0 %v4127_v2 }
0x2c44   :  { %2603 = vmatpush.msra.mxu0 %v4130_v16 }
0x2caa   :  { %v2523_v52 = vpop.f32.mrf.mxu1 }
0x2cab   :  { %v2528_v30 = vrot.slane %v2523_v52, 7 }
0x2cb2   :  { %v2501_v40 = vpop.f32.mrf.mxu0 }
0x2cb3   :  { %v2529_v23 = vsel %vm142_vm1, %v2528_v30, %v2501_v40 }
0x2cb4   :  { %2577 = vrot.lane.b32.xlu0 %v2529_v23, %s3326_s2  ;;  %3010 = vmatmul.msk.f32.vlgmr.msra.gmra.mxu3 %vm91_vm0, %v2529_v23 }
0x2d26   :  { %v2578_v49 = vpop.permute.xlu0 %2577 }
0x2d27   :  { %v2583_v38 = vsel %vm91_vm0, %v3012_v47, %v2578_v49 }
0x2d28   :  { %v2584_v11 = vsel %vm151_vm2, %v2583_v38, %v2581_v31 }
0x2d29   :  { %3013 = vmatmul.msk.f32.vlgmr.msra.gmra.mxu0 %vm156_vm3, %v2584_v11 }
0x2da6   :  { %v2605_v2 = vpop.f32.mrf.mxu0 }
0x2da7   :  { %v2606_v16 = vadd.f32 %v4147_v58, %v2605_v2 }
0x2da9   :  { %3191 = vtanh.f32 %v2606_v16  ;;  %v3014_v24 = vmul.f32 -1.442695, %v2606_v16 }
0x2dab   :  { %3193 = vpow2.f32 %v3014_v24 }
0x2daf   :  { %v3192_v0 = vpop.eup %3191 }
0x2db0   :  { %2630 = vrot.lane.b32.xlu2 %v3192_v0, %s3325_s25 }
0x2db1   :  { %v3194_v33 = vpop.eup %3193 }
0x2db2   :  { %v2611_v19 = vadd.f32 1.0, %v3194_v33 }
0x2db4   :  { %3195 = vrcp.f32 %v2611_v19  ;;  %v2623_v13 = vand.u32 2147483648, %v2611_v19  ;;  %vm2617_vm7 = vweird.f32 %v2611_v19  ;;  %v2621_v50 = vand.u32 2147483647, %v2611_v19 }
0x2db6   :  { %v2624_v55 = vor.u32 1.1754944e-38, %v2623_v13  ;;  %vm2622_vm11 = vcmp.eq.f32.partialorder %v2621_v50, 8.507059e+37 }
0x2dba   :  { %v3196_v21 = vpop.eup %3195 }
0x2dbb   :  { %v2613_v57 = vmul.f32 %v3196_v21, %v2611_v19  ;;  %vm2618_vm6 = vweird.f32 %v3196_v21 }
0x2dbc   :  { %vm2619_vm10 = vmor %vm2617_vm7, %vm2618_vm6 }
0x2dbd   :  { %v2614_v29 = vsub.f32 1.0, %v2613_v57 }
0x2dbf   :  { %v2615_v3 = vmul.f32 %v3196_v21, %v2614_v29 }
0x2dc1   :  { %v2616_v26 = vadd.f32 %v3196_v21, %v2615_v3 }
0x2dc3   :  { %v2620_v58 = vsel %vm2619_vm10, %v3196_v21, %v2616_v26 }
0x2dc4   :  { %v2625_v1 = vsel %vm2622_vm11, %v2624_v55, %v2620_v58 }
0x2dc5   :  { %v2628_v6 = vmul.f32 %v2625_v1, %v4153_v45 }
0x2e0a   :  { %v2631_v22 = vpop.permute.xlu2 %2630 }
0x2e0b   :  { %v2633_v4 = vmul.f32 %v2631_v22, %v2625_v1 }
0x2e0d   :  { %2635 = vrot.lane.b32.xlu0 %v2633_v4, %s3327_s29 }
0x2e7f   :  { %v2636_v20 = vpop.permute.xlu0 %2635 }
0x2e80   :  { %v4259_v27 = vadd.f32 %v2636_v20, %v2628_v6 }
0x2e82   :  { %3197 = vtanh.f32 %v4259_v27 }
0x2e88   :  { %v3198_v43 = vpop.eup %3197 }
0x2e89   :  { %2641 = vrot.lane.b32.xlu1 %v3198_v43, %s3325_s25 }
0x2efb   :  { %v2642_v48 = vpop.permute.xlu1 %2641 }
0x2efc   :  { %v2644_v56 = vmul.f32 %v2642_v48, %v2625_v1 }
0x2efe   :  { %2646 = vrot.lane.b32.xlu2 %v2644_v56, %s3327_s29 }
0x2f58   :  { %v4264_v52 = vpop.permute.xlu2 %2646 }
0x2f59   :  { %3015 = vmatmul.msk.f32.vlgmr.msrb.gmra.mxu1 %vm151_vm2, %v4264_v52 }
0x2fd6   :  { %v2667_v30 = vpop.f32.mrf.mxu1 }
0x2fd7   :  { %v4269_v40 = vadd.f32 %v4168_v17, %v2667_v30 }
0x2fd9   :  { %v2670_v23 = vsel %vm245_vm8, %v4269_v40, -inf  ;;  %v3016_v55 = vmul.f32 -1.442695, %v4269_v40 }
0x2fda   :  { %2671 = vmax.xlane.f32.xlu0 %v2670_v23 }
0x304d   :  { %v2672_v47 = vpop.xlane.xlu0 %2671 }
0x304e   :  { %v2673_v49 = vsub.f32 %v4269_v40, %v2672_v47 }
0x3050   :  { %v2674_v31 = vmul.f32 1.442695, %v2673_v49 }
0x3052   :  { %3199 = vpow2.f32 %v2674_v31 }
0x3058   :  { %v4274_v38 = vpop.eup %3199 }
0x3059   :  { %2695 = vrot.lane.b32.xlu1 %v4274_v38, %s3328_s15  ;;  %v2676_v22 = vsel %vm252_vm9, %v4274_v38, 0.0 }
0x30cb   :  { %v2696_v11 = vpop.permute.xlu1 %2695 }
0x30cc   :  { %v2698_v2 = vsel %vm252_vm9, %v2696_v11, 0.0 }
0x30cd   :  { %2699 = vadd.xlane.f32.xlu2 %v2698_v2 }
0x3140   :  { %v2700_v17 = vpop.xlane.xlu2 %2699 }
0x3141   :  { %3201 = vrcp.f32 %v2700_v17  ;;  %v2712_v33 = vand.u32 2147483648, %v2700_v17  ;;  %v2710_v21 = vand.u32 2147483647, %v2700_v17  ;;  %vm2706_vm12 = vweird.f32 %v2700_v17 }
0x3142   :  { %3203 = vpow2.f32 %v3016_v55 }
0x3143   :  { %v2713_v29 = vor.u32 1.1754944e-38, %v2712_v33  ;;  %vm2711_vm14 = vcmp.eq.f32.partialorder %v2710_v21, 8.507059e+37 }
0x3147   :  { %v3202_v16 = vpop.eup %3201 }
0x3148   :  { %v2702_v0 = vmul.f32 %v3202_v16, %v2700_v17  ;;  %vm2707_vm8 = vweird.f32 %v3202_v16  ;;  %v3204_v1 = vpop.eup %3203 }
0x3149   :  { %vm2708_vm13 = vmor %vm2706_vm12, %vm2707_vm8  ;;  %v2719_v4 = vadd.f32 1.0, %v3204_v1  ;;  %vm494_vm8 = vcmask 654336   ;;  %vm496_vm12 = vcmask 785408  }
0x314a   :  { %v2703_v24 = vsub.f32 1.0, %v2702_v0 }
0x314b   :  { %3205 = vrcp.f32 %v2719_v4  ;;  %vm2725_vm4 = vweird.f32 %v2719_v4  ;;  %v2729_v30 = vand.u32 2147483647, %v2719_v4 }
0x314c   :  { %v2704_v19 = vmul.f32 %v3202_v16, %v2703_v24  ;;  %3207 = vtanh.f32 %v4269_v40 }
0x314d   :  { %vm2730_vm9 = vcmp.eq.f32.partialorder %v2729_v30, 8.507059e+37 }
0x314e   :  { %v2705_v57 = vadd.f32 %v3202_v16, %v2704_v19 }
0x3150   :  { %v2709_v3 = vsel %vm2708_vm13, %v3202_v16, %v2705_v57 }
0x3151   :  { %v2714_v26 = vsel %vm2711_vm14, %v2713_v29, %v2709_v3  ;;  %v3206_v6 = vpop.eup %3205 }
0x3152   :  { %v4280_v13 = vmul.f32 %v4274_v38, %v2714_v26  ;;  %v2721_v20 = vmul.f32 %v3206_v6, %v2719_v4  ;;  %vm2726_vm15 = vweird.f32 %v3206_v6  ;;  %v3208_v23 = vpop.eup %3207 }
0x3153   :  { %vm2727_vm5 = vmor %vm2725_vm4, %vm2726_vm15  ;;  %v2797_v31 = vrot.slane %v3208_v23, 1  ;;  %v2798_v55 = vperm.slane %v3208_v23, 0 }
0x3154   :  { %v2749_v50 = vperm.slane %v4280_v13, 1  ;;  %v2736_v58 = vperm.slane %v4280_v13, 0  ;;  %v2722_v43 = vsub.f32 1.0, %v2721_v20 }
0x3155   :  { %v2799_v17 = vperm.slane %v2797_v31, 0 }
0x3156   :  { %2760 = vperm.xlu1 %3046, %v2749_v50   ;;  %v2723_v48 = vmul.f32 %v3206_v6, %v2722_v43  ;;  %v2549_v43 = vpop.f32.mrf.mxu3 }
0x3158   :  { %v2724_v56 = vadd.f32 %v3206_v6, %v2723_v48 }
0x315a   :  { %v2728_v47 = vsel %vm2727_vm5, %v3206_v6, %v2724_v56 }
0x315e   :  { %2747 = vperm.xlu1 %3046, %v2736_v58  }
0x3166   :  { %3047 = vset.pattern.permute.xlu1 %v3514_v14  ;;  %v2731_v14 = vand.u32 2147483648, %v2719_v4 }
0x3168   :  { %v2732_v49 = vor.u32 1.1754944e-38, %v2731_v14 }
0x316a   :  { %v2733_v11 = vsel %vm2730_vm9, %v2732_v49, %v2728_v47 }
0x316b   :  { %v2763_v2 = vrot.slane %v2733_v11, 1  ;;  %v2764_v19 = vperm.slane %v2733_v11, 0 }
0x316d   :  { %v2765_v24 = vperm.slane %v2763_v2, 0 }
0x316e   :  { %2754 = vperm.xlu1 %3047, %v2749_v50  }
0x3176   :  { %2741 = vperm.xlu1 %3047, %v2736_v58  }
0x31a0   :  { %2677 = vadd.xlane.f32.xlu1 %v2676_v22 }
0x31c8   :  { %v2761_v16 = vpop.permute.xlu1 %2760 }
0x31c9   :  { %v2805_v0 = vmul.f32 %v2799_v17, %v2761_v16  ;;  %v2771_v33 = vmul.f32 %v2765_v24, %v2761_v16 }
0x31cb   :  { %2816 = vrot.lane.b32.xlu0 %v2805_v0, %s3328_s15  ;;  %v2775_v57 = vsub.f32 1.0, %v2771_v33 }
0x31d0   :  { %v2748_v21 = vpop.permute.xlu1 %2747 }
0x31d1   :  { %v2769_v29 = vmul.f32 %v2764_v19, %v2748_v21  ;;  %v2803_v6 = vmul.f32 %v2798_v55, %v2748_v21 }
0x31d3   :  { %v2773_v3 = vsub.f32 1.0, %v2769_v29  ;;  %2786 = vrot.lane.b32.xlu0 %v2775_v57, %s3328_s15 }
0x31d5   :  { %2782 = vrot.lane.b32.xlu2 %v2773_v3, %s3328_s15 }
0x31e0   :  { %v2755_v26 = vpop.permute.xlu1 %2754 }
0x31e1   :  { %v2770_v50 = vmul.f32 %v2765_v24, %v2755_v26  ;;  %v2804_v48 = vmul.f32 %v2799_v17, %v2755_v26 }
0x31e3   :  { %v2774_v58 = vsub.f32 1.0, %v2770_v50 }
0x31e5   :  { %2784 = vrot.lane.b32.xlu0 %v2774_v58, %s3328_s15 }
0x31e8   :  { %v2742_v22 = vpop.permute.xlu1 %2741 }
0x31e9   :  { %v2768_v1 = vmul.f32 %v2764_v19, %v2742_v22  ;;  %v2802_v4 = vmul.f32 %v2798_v55, %v2742_v22  ;;  %v4513_v55 = vld [vmem:[#allocation21_spill] sm:$0xff] }
0x31eb   :  { %v2772_v20 = vsub.f32 1.0, %v2768_v1  ;;  %2810 = vrot.lane.b32.xlu1 %v2802_v4, %s3328_s15 }
0x31ed   :  { %2812 = vrot.lane.b32.xlu0 %v2803_v6, %s3328_s15  ;;  %2780 = vrot.lane.b32.xlu2 %v2772_v20, %s3328_s15 }
0x31f3   :  { %2553 = vrot.lane.b32.xlu1 %v2549_v43, %s3327_s29 }
0x31f5   :  { %476 = vrot.lane.b32.xlu0 %v3682_v10, %s3327_s29  ;;  %2814 = vrot.lane.b32.xlu2 %v2804_v48, %s3328_s15 }
0x31fb   :  { %828 = vrot.lane.b32.xlu1 %v3657_v35, %s3325_s25 }
0x31fd   :  { %1169 = vrot.lane.b32.xlu0 %v3919_v5, %s3327_s29  ;;  %823 = vrot.lane.b32.xlu2 %v3803_v18, %s3327_s29 }
0x3203   :  { %1866 = vrot.lane.b32.xlu1 %v3989_v51, %s3325_s25 }
0x3205   :  { %1861 = vrot.lane.b32.xlu0 %v4133_v9, %s3327_s29  ;;  %1515 = vrot.lane.b32.xlu2 %v4014_v34, %s3327_s29 }
0x320d   :  { %1174 = vrot.lane.b32.xlu0 %v3747_v7, %s3325_s25  ;;  %2207 = vrot.lane.b32.xlu2 %v4244_v12, %s3327_s29 }
0x3213   :  { %v2678_v35 = vpop.xlane.xlu1 %2677 }
0x3214   :  { %3209 = vrcp.f32 %v2678_v35  ;;  %v2690_v51 = vand.u32 2147483648, %v2678_v35  ;;  %v2688_v7 = vand.u32 2147483647, %v2678_v35  ;;  %vm2684_vm7 = vweird.f32 %v2678_v35 }
0x3215   :  { %2212 = vrot.lane.b32.xlu0 %v4077_v36, %s3325_s25  ;;  %481 = vrot.lane.b32.xlu2 %v3551_v63, %s3325_s25 }
0x3216   :  { %v2691_v12 = vor.u32 1.1754944e-38, %v2690_v51  ;;  %vm2689_vm11 = vcmp.eq.f32.partialorder %v2688_v7, 8.507059e+37  ;;  %v4515_v51 = vld [vmem:[#allocation16_spill] sm:$0xff] }
0x321a   :  { %v3210_v10 = vpop.eup %3209 }
0x321b   :  { %v2680_v18 = vmul.f32 %v3210_v10, %v2678_v35  ;;  %vm2685_vm6 = vweird.f32 %v3210_v10 }
0x321c   :  { %vm2686_vm10 = vmor %vm2684_vm7, %vm2685_vm6 }
0x321d   :  { %v2681_v5 = vsub.f32 1.0, %v2680_v18  ;;  %1520 = vrot.lane.b32.xlu2 %v3884_v15, %s3325_s25 }
0x321f   :  { %v2682_v34 = vmul.f32 %v3210_v10, %v2681_v5  ;;  %v4514_v5 = vld [vmem:[#allocation15_spill] sm:$0xff] }
0x3221   :  { %v2683_v9 = vadd.f32 %v3210_v10, %v2682_v34  ;;  %v1185_v34 = vsel %vm151_vm2, %v4515_v51, %v4514_v5 }
0x3223   :  { %v2687_v56 = vsel %vm2686_vm10, %v3210_v10, %v2683_v9 }
0x3224   :  { %v2692_v36 = vsel %vm2689_vm11, %v2691_v12, %v2687_v56 }
0x3225   :  { %2558 = vrot.lane.b32.xlu2 %v4208_v8, %s3325_s25  ;;  %v2693_v63 = vmul.f32 %v4274_v38, %v2692_v36  ;;  %v4516_v36 = vld [vmem:[#allocation23_spill] sm:$0xff] }
0x3227   :  { %2904 = vrot.lane.b32.xlu1 %v2693_v63, %s3325_s25  ;;  %v2827_v49 = vrot.slane %v2693_v63, 1 }
0x322d   :  { %832 = vrot.lane.b32.xlu2 %v3627_v39, %s3325_s25 }
0x322f   :  { %1178 = vrot.lane.b32.xlu1 %v3723_v53, %s3325_s25  ;;  %v2783_v8 = vpop.permute.xlu2 %2782 }
0x3235   :  { %1870 = vrot.lane.b32.xlu2 %v3958_v44, %s3325_s25 }
0x3237   :  { %2216 = vrot.lane.b32.xlu1 %v4055_v46, %s3325_s25 }
0x323d   :  { %v2817_v15 = vpop.permute.xlu0 %2816  ;;  %2908 = vrot.lane.b32.xlu2 %v4280_v13, %s3325_s25 }
0x3245   :  { %v2787_v38 = vpop.permute.xlu0 %2786 }
0x3246   :  { %v2795_v14 = vmul.f32 %v2787_v38, %v4204_v42  ;;  %v2793_v42 = vmul.f32 %v2783_v8, %v4219_v32 }
0x3247   :  { %v2781_v30 = vpop.permute.xlu2 %2780 }
0x3248   :  { %v2825_v23 = vadd.f32 %v2817_v15, %v2795_v14  ;;  %v2792_v31 = vmul.f32 %v2781_v30, %v4222_v37 }
0x324a   :  { %2924 = vst.msk [vmem:[#allocation7 + $0x18] sm:$0xff] %vm91_vm0, %v2825_v23  ;;  %2866 = vmatpush.msrb.mxu3 %v2825_v23 }
0x324f   :  { %v2815_v39 = vpop.permute.xlu2 %2814 }
0x3257   :  { %v2785_v53 = vpop.permute.xlu0 %2784  ;;  %v4338_v47 = vpop.permute.xlu2 %823 }
0x3258   :  { %v2794_v44 = vmul.f32 %v2785_v53, %v4211_v25 }
0x325a   :  { %v2824_v46 = vadd.f32 %v2815_v39, %v2794_v44 }
0x325c   :  { %2923 = vst.msk [vmem:[#allocation7 + $0x10] sm:$0xff] %vm91_vm0, %v2824_v46  ;;  %2867 = vmatpush.msrb.mxu3 %v2824_v46 }
0x325d   :  { %v2811_v13 = vpop.permute.xlu1 %2810  ;;  %3018 = vmatmul.msk.f32.vlgmr.msrb.gmra.mxu3 %vm91_vm0, %v2827_v49  ;;  %v4518_v49 = vld [vmem:[#allocation13_spill] sm:$0xff] }
0x325e   :  { %v2822_v11 = vadd.f32 %v2811_v13, %v2792_v31  ;;  %v4519_v31 = vld [vmem:[#allocation19_spill] sm:$0xff]  ;;  %v4520_v13 = vld [vmem:[#allocation26_spill] sm:$0xff] }
0x325f   :  { %v2813_v2 = vpop.permute.xlu0 %2812  ;;  %v1516_v17 = vpop.permute.xlu2 %1515 }
0x3260   :  { %2921 = vst.msk [vmem:[#allocation7] sm:$0xff] %vm91_vm0, %v2822_v11  ;;  %v2823_v16 = vadd.f32 %v2813_v2, %v2793_v42  ;;  %v1518_v33 = vadd.f32 %v1516_v17, %v3841_v41  ;;  %v4521_v42 = vld [vmem:[#allocation14_spill] sm:$0xff] }
0x3261   :  { %v4522_v2 = vld [vmem:[#allocation22_spill] sm:$0xff] }
0x3262   :  { %2922 = vst.msk [vmem:[#allocation7 + $0x8] sm:$0xff] %vm91_vm0, %v2823_v16  ;;  %2844 = vmatpush.msrb.mxu2 %v2823_v16 }
0x3264   :  { %2845 = vmatpush.msrb.mxu2 %v2822_v11  ;;  %v826_v11 = vadd.f32 %v4338_v47, %v4521_v42 }
0x3265   :  { %3017 = vmatmul.msk.f32.vlgmr.msrb.gmra.mxu2 %vm91_vm0, %v2693_v63  ;;  %v2554_v21 = vpop.permute.xlu1 %2553  ;;  %v4517_v63 = vld [vmem:[#allocation24_spill] sm:$0xff] }
0x3266   :  { %v2556_v29 = vadd.f32 %v2554_v21, %v4171_v60  ;;  %v2223_v15 = vsel %vm151_vm2, %v4517_v63, %v4516_v36 }
0x3267   :  { %v477_v25 = vpop.permute.xlu0 %476  ;;  %v2208_v37 = vpop.permute.xlu2 %2207 }
0x3268   :  { %v479_v0 = vadd.f32 %v477_v25, %v3500_v59  ;;  %v2210_v59 = vadd.f32 %v2208_v37, %v4042_v62  ;;  %v4512_v62 = vld [vmem:[#allocation20_spill] sm:$0xff]  ;;  %v4523_v37 = vld [vmem:[#allocation11_spill] sm:$0xff] }
0x3269   :  { %v1877_v22 = vsel %vm151_vm2, %v4513_v55, %v4512_v62  ;;  %v4527_v62 = vld [vmem:[#allocation25_spill] sm:$0xff] }
0x326a   :  { %489 = vrot.lane.b32.xlu1 %v479_v0, %s3325_s25  ;;  %v4524_v0 = vld [vmem:[#allocation12_spill] sm:$0xff]  ;;  %v2569_v55 = vsel %vm151_vm2, %v4527_v62, %v4153_v45 }
0x326d   :  { %v829_v41 = vpop.permute.xlu1 %828 }
0x326f   :  { %v1170_v24 = vpop.permute.xlu0 %1169  ;;  %v4350_v32 = vpop.permute.xlu2 %481 }
0x3270   :  { %v1172_v19 = vadd.f32 %v1170_v24, %v3710_v28  ;;  %v839_v28 = vsel %vm151_vm2, %v3609_v61, %v3601_v54  ;;  %v2915_v54 = vsel %vm151_vm2, %v4264_v52, %v4259_v27  ;;  %v492_v24 = vsel %vm151_vm2, %v4524_v0, %v4523_v37 }
0x3271   :  { %v840_v26 = vsel %vm156_vm3, %v839_v28, %v829_v41 }
0x3272   :  { %1182 = vrot.lane.b32.xlu2 %v1172_v19, %s3325_s25  ;;  %1528 = vrot.lane.b32.xlu1 %v1518_v33, %s3325_s25  ;;  %v493_v33 = vsel %vm156_vm3, %v492_v24, %v4350_v32 }
0x3275   :  { %v1867_v60 = vpop.permute.xlu1 %1866 }
0x3276   :  { %v1878_v1 = vsel %vm156_vm3, %v1877_v22, %v1867_v60 }
0x3277   :  { %v4356_v57 = vpop.permute.xlu2 %1520  ;;  %v1862_v35 = vpop.permute.xlu0 %1861 }
0x3278   :  { %v1864_v17 = vadd.f32 %v1862_v35, %v4522_v2 }
0x327a   :  { %2220 = vrot.lane.b32.xlu2 %v2210_v59, %s3325_s25  ;;  %2566 = vrot.lane.b32.xlu1 %v2556_v29, %s3325_s25  ;;  %v4526_v59 = vld [vmem:[#allocation18_spill] sm:$0xff] }
0x327f   :  { %v4362_v3 = vpop.permute.xlu2 %2558  ;;  %v1175_v10 = vpop.permute.xlu0 %1174 }
0x3280   :  { %v1186_v7 = vsel %vm156_vm3, %v1185_v34, %v1175_v10  ;;  %v2570_v22 = vsel %vm156_vm3, %v2569_v55, %v4362_v3 }
0x3287   :  { %v833_v50 = vpop.permute.xlu2 %832  ;;  %v2213_v12 = vpop.permute.xlu0 %2212 }
0x3288   :  { %v4369_v58 = vsel %vm494_vm8, %v840_v26, %v833_v50  ;;  %v2224_v8 = vsel %vm156_vm3, %v2223_v15, %v2213_v12 }
0x328f   :  { %v1871_v4 = vpop.permute.xlu2 %1870 }
0x3290   :  { %v4376_v6 = vsel %vm494_vm8, %v1878_v1, %v1871_v4 }
0x3297   :  { %v2909_v20 = vpop.permute.xlu2 %2908 }
0x3299   :  { %v2905_v61 = vpop.permute.xlu1 %2904 }
0x329a   :  { %v2916_v43 = vsel %vm156_vm3, %v2915_v54, %v2905_v61 }
0x329b   :  { %v4383_v48 = vsel %vm494_vm8, %v2916_v43, %v2909_v20 }
0x32a1   :  { %v1179_v18 = vpop.permute.xlu1 %1178 }
0x32a2   :  { %v1187_v9 = vsel %vm494_vm8, %v1186_v7, %v1179_v18 }
0x32a9   :  { %v2217_v56 = vpop.permute.xlu1 %2216 }
0x32aa   :  { %v2225_v38 = vsel %vm494_vm8, %v2224_v8, %v2217_v56 }
0x32cc   :  { %v1183_v27 = vpop.permute.xlu2 %1182 }
0x32cd   :  { %v1188_v52 = vsel %vm496_vm12, %v1187_v9, %v1183_v27 }
0x32ce   :  { %2975 = vst [vmem:[%s4478_s8 + $0x4] sm:$0x3] %v1188_v52 }
0x32d4   :  { %v2221_v14 = vpop.permute.xlu2 %2220 }
0x32d5   :  { %v2226_v30 = vsel %vm496_vm12, %v2225_v38, %v2221_v14 }
0x32d6   :  { %3002 = vst [vmem:[%s4478_s8 + $0xa] sm:$0x3] %v2226_v30 }
0x32dc   :  { %v490_v25 = vpop.permute.xlu1 %489 }
0x32e0   :  { %v2869_v23 = vpop.f32.mrf.mxu3 }
0x32e1   :  { %v2874_v39 = vrot.slane %v2869_v23, 7 }
0x32e4   :  { %v1529_v28 = vpop.permute.xlu1 %1528 }
0x32e8   :  { %v2847_v53 = vpop.f32.mrf.mxu2 }
0x32e9   :  { %v2875_v44 = vsel %vm142_vm1, %v2874_v39, %v2847_v53 }
0x32ea   :  { %3019 = vmatmul.msk.f32.vlgmr.msra.gmra.mxu1 %vm91_vm0, %v2875_v44 }
0x32ec   :  { %v2567_v4 = vpop.permute.xlu1 %2566 }
0x3367   :  { %v2895_v46 = vpop.f32.mrf.mxu1 }
0x3368   :  { %2899 = vrot.lane.b32.xlu0 %v2895_v46, %s3327_s29  ;;  %s2931_s29 = sshll.u32 %s3329_s30, 4  ;;  %s2932_s29 = int_to_ptr.vmem [resolvable:$true] %s2931_s29 }
0x3369   :  { %2939 = dma.vmem_to_hbm [thread:$0]  %s2932_s29, 512, %s2934_s12, [#allocation4], %s3322_s17, %s3322_s17, %s3323_s18  }
0x3370   :  { %485 = vrot.lane.b32.xlu0 %v4518_v49, %s3325_s25 }
0x3378   :  { %1524 = vrot.lane.b32.xlu0 %v4519_v31, %s3325_s25 }
0x3380   :  { %2562 = vrot.lane.b32.xlu0 %v4520_v13, %s3325_s25 }
0x3388   :  { %836 = vrot.lane.b32.xlu0 %v826_v11, %s3325_s25 }
0x3390   :  { %1874 = vrot.lane.b32.xlu0 %v1864_v17, %s3325_s25 }
0x33da   :  { %v2900_v16 = vpop.permute.xlu0 %2899 }
0x33db   :  { %v2902_v47 = vadd.f32 %v2900_v16, %v4269_v40  ;;  %v4525_v40 = vld [vmem:[#allocation17_spill] sm:$0xff] }
0x33dc   :  { %v1531_v41 = vsel %vm151_vm2, %v4526_v59, %v4525_v40 }
0x33dd   :  { %2912 = vrot.lane.b32.xlu0 %v2902_v47, %s3325_s25  ;;  %v1532_v26 = vsel %vm156_vm3, %v1531_v41, %v4356_v57 }
0x33e2   :  { %v486_v19 = vpop.permute.xlu0 %485 }
0x33e3   :  { %v495_v21 = vsel %vm494_vm8, %v493_v33, %v486_v19 }
0x33e4   :  { %v497_v29 = vsel %vm496_vm12, %v495_v21, %v490_v25 }
0x33e5   :  { %498 = vst [vmem:[%s4478_s8] sm:$0x3] %v497_v29 }
0x33ea   :  { %v1525_v50 = vpop.permute.xlu0 %1524 }
0x33eb   :  { %v1533_v32 = vsel %vm494_vm8, %v1532_v26, %v1525_v50 }
0x33ec   :  { %v1534_v60 = vsel %vm496_vm12, %v1533_v32, %v1529_v28 }
0x33ed   :  { %2984 = vst [vmem:[%s4478_s8 + $0x6] sm:$0x3] %v1534_v60 }
0x33f2   :  { %v2563_v1 = vpop.permute.xlu0 %2562 }
0x33f3   :  { %v2571_v57 = vsel %vm494_vm8, %v2570_v22, %v2563_v1 }
0x33f4   :  { %v2572_v54 = vsel %vm496_vm12, %v2571_v57, %v2567_v4 }
0x33f5   :  { %3011 = vst [vmem:[%s4478_s8 + $0xc] sm:$0x3] %v2572_v54 }
0x33fa   :  { %v837_v61 = vpop.permute.xlu0 %836 }
0x33fb   :  { %v842_v20 = vsel %vm496_vm12, %v4369_v58, %v837_v61 }
0x33fc   :  { %2966 = vst [vmem:[%s4478_s8 + $0x2] sm:$0x3] %v842_v20 }
0x3402   :  { %v1875_v45 = vpop.permute.xlu0 %1874 }
0x3403   :  { %v1880_v3 = vsel %vm496_vm12, %v4376_v6, %v1875_v45 }
0x3404   :  { %2993 = vst [vmem:[%s4478_s8 + $0x8] sm:$0x3] %v1880_v3 }
0x344f   :  { %v2913_v43 = vpop.permute.xlu0 %2912 }
0x3450   :  { %v2918_v35 = vsel %vm496_vm12, %v4383_v48, %v2913_v43 }
0x3451   :  { %3020 = vst [vmem:[%s4478_s8 + $0xe] sm:$0x3] %v2918_v35 }
0x3452   :  { %3319 = dma.done.wait [#allocation4], 512  }
0x3453   :  { %3320 = vsyncadd [#allocation4], 4294966784 }
0x3454   :  { %2946 = vsyncpa [#allocation3], 1 }
0x3455   :  { %2947 = vsyncpa [#allocation6], 1 }
0x3456   :  { %2948 = vsyncpa [#allocation4], 1 }

</bundles_post_ra>
